<compile_context>
chip_gen: v6e
topology: v6e:2x2x1
jax: 0.10.0
libtpu: 0.0.40
codegen_flags: <defaults>
</compile_context>

<pallas_src>
from functools import partial

import jax
import jax.numpy as jnp
from jax.experimental import pallas as pl
from jax.experimental.pallas import tpu as pltpu


def _norm_no_affine(t, eps=1e-5):
    # PyTorch nn.LayerNorm core: biased variance over the last dim, eps=1e-5.
    # (gamma/beta are folded into the projection weights in the wrapper.)
    mu = jnp.mean(t, axis=-1, keepdims=True)
    var = jnp.mean((t - mu) ** 2, axis=-1, keepdims=True)
    return (t - mu) * jax.lax.rsqrt(var + eps)


def _layernorm(t, g, b, eps=1e-5):
    return _norm_no_affine(t, eps) * g + b


def cva_attention_kernel(xc_ref, wqk_ref, wvf_ref, b_ref, o_ref, *,
                         num_heads, batch, seq, pad_seq):
    C = wqk_ref.shape[0]
    H = num_heads
    hd = C // H
    N = seq
    NP = pad_seq
    B = batch

    # One LayerNorm pass over x and CVA_input for both batches (affine folded away).
    xc = xc_ref[...]                    # (2, B*NP, C): [x ; CVA_input], rows zero-padded
    normed = _norm_no_affine(xc)
    nx = normed[0]                      # (B*NP, C)  LN(x)   -> V path
    ncva = normed[1]                    # (B*NP, C)  LN(cva) -> Q/K path

    # Batch-hoisted fused projections (softmax scale folded into Q, K bias dropped).
    qk = jnp.dot(ncva, wqk_ref[...], preferred_element_type=jnp.float32) + b_ref[0:1, :]
    # V projection folded with the per-head output projection: (B*NP, H*C).
    vfold = jnp.dot(nx, wvf_ref[...], preferred_element_type=jnp.float32)

    # Scores for every (batch, head); contract last dims so K needs no explicit transpose.
    dn = (((1,), (1,)), ((), ()))
    s_list = []
    for b in range(B):
        r = b * NP
        for h in range(H):
            lo = h * hd
            qh = qk[r:r + N, lo:lo + hd]            # (N, hd), scale & bias already applied
            kh = qk[r:r + N, C + lo:C + lo + hd]    # (N, hd)
            s_list.append(jax.lax.dot_general(qh, kh, dn,
                                              preferred_element_type=jnp.float32))

    # Single batched softmax over all B*H score matrices.
    s_all = jnp.stack(s_list)                                   # (B*H, N, N)
    s_all = s_all - jnp.max(s_all, axis=-1, keepdims=True)
    e = jnp.exp(s_all)
    p_all = e * pl.reciprocal(jnp.sum(e, axis=-1, keepdims=True), approx=False)

    b_out = b_ref[1:2, :C]              # (1, C): folded V-bias @ Wp + proj bias
    for b in range(B):
        r = b * NP
        # Constant-shape (N, C) accumulation chain over heads.
        acc = jnp.dot(p_all[b * H], vfold[r:r + N, 0:C],
                      preferred_element_type=jnp.float32)
        for h in range(1, H):
            acc = acc + jnp.dot(p_all[b * H + h], vfold[r:r + N, h * C:(h + 1) * C],
                                preferred_element_type=jnp.float32)
        o_ref[b] = acc + b_out


def cva_attention(x, cva_input, edge_embedding, params, num_heads):
    # TODO(synk): the edge_embedding Linear in the reference forward produces a value
    # that is never used (dead branch); it is omitted entirely here.
    del edge_embedding

    B, N, C = x.shape
    H = num_heads
    hd = C // H
    scale = hd ** (-0.5)
    NP = ((N + 7) // 8) * 8   # pad rows so per-batch slices start on sublane boundaries

    hi = jax.lax.Precision.HIGHEST
    mm = lambda a, b: jnp.matmul(a, b, precision=hi)

    wq_t = params["wq"].T
    wk_t = params["wk"].T
    wv_t = params["wv"].T
    wp_t = params["wp"].T

    # Fold LayerNorm affine params into the linears; fold the softmax scale into Q.
    wq_f = (params["qn_g"][:, None] * wq_t) * scale
    bq_f = (mm(params["qn_b"], wq_t) + params["bq"]) * scale
    wk_f = params["kn_g"][:, None] * wk_t
    # K bias adds a per-row constant to the scores -> softmax-invariant -> dropped.
    wv_f = params["vn_g"][:, None] * wv_t
    bv_f = mm(params["vn_b"], wv_t) + params["bv"]

    # Per-head V @ output-projection fold, packed along lanes: (C, H*C).
    wvfold = jnp.concatenate(
        [mm(wv_f[:, h * hd:(h + 1) * hd], wp_t[h * hd:(h + 1) * hd, :]) for h in range(H)],
        axis=1)
    # V bias passes through the row-stochastic softmax unchanged -> output constant.
    b_out = mm(bv_f, wp_t) + params["bp"]

    wqk = jnp.concatenate([wq_f, wk_f], axis=1)                # (C, 2C): [Wq' | Wk']
    zeros_c = jnp.zeros((C,), jnp.float32)
    bias = jnp.stack([jnp.concatenate([bq_f, zeros_c]),
                      jnp.concatenate([b_out, zeros_c])])      # (2, 2C)

    # Pack x and CVA_input into one padded input: one DMA stream, one LN pass,
    # 8-aligned per-batch row offsets inside the kernel.
    def pad_rows(t):
        return jnp.pad(t, ((0, 0), (0, NP - N), (0, 0))).reshape(B * NP, C)

    xc = jnp.stack([pad_rows(x), pad_rows(cva_input)])         # (2, B*NP, C)

    kernel = partial(cva_attention_kernel, num_heads=H, batch=B, seq=N, pad_seq=NP)
    return pl.pallas_call(
        kernel,
        out_shape=jax.ShapeDtypeStruct((B, N, C), jnp.float32),
        grid=(1,),
        in_specs=[
            pl.BlockSpec((2, B * NP, C), lambda i: (0, 0, 0)),   # packed [x ; cva]
            pl.BlockSpec((C, 2 * C), lambda i: (0, 0)),          # fused Q|K weight
            pl.BlockSpec((C, H * C), lambda i: (0, 0)),          # folded V@Wp weight
            pl.BlockSpec((2, 2 * C), lambda i: (0, 0)),          # packed biases
        ],
        out_specs=pl.BlockSpec((B, N, C), lambda i: (0, 0, 0)),
        compiler_params=pltpu.CompilerParams(dimension_semantics=("arbitrary",)),
    )(xc, wqk, wvfold, bias)


def cva_attention_ref(x, cva_input, params, num_heads):
    """Pure-JAX reference matching the PyTorch forward."""
    B, N, C = x.shape
    hd = C // num_heads
    scale = hd ** (-0.5)
    ln = lambda t, g, b: _layernorm(t, g, b)
    lin = lambda t, w, b: jnp.einsum("bnc,oc->bno", t, w) + b
    q = lin(ln(cva_input, params["qn_g"], params["qn_b"]), params["wq"], params["bq"])
    k = lin(ln(cva_input, params["kn_g"], params["kn_b"]), params["wk"], params["bk"])
    v = lin(ln(x, params["vn_g"], params["vn_b"]), params["wv"], params["bv"])
    reshp = lambda t: t.reshape(B, N, num_heads, hd).transpose(0, 2, 1, 3)
    q, k, v = reshp(q), reshp(k), reshp(v)
    attn = jnp.einsum("bhnd,bhmd->bhnm", q, k) * scale
    attn = jax.nn.softmax(attn, axis=-1)
    o = jnp.einsum("bhnm,bhmd->bhnd", attn, v).transpose(0, 2, 1, 3).reshape(B, N, C)
    return lin(o, params["wp"], params["bp"])


def init_params(key, dim):
    ks = jax.random.split(key, 12)
    n = lambda k, shape, s=0.05: (s * jax.random.normal(k, shape)).astype(jnp.float32)
    return {
        # LayerNorm affine params (perturbed away from default gamma=1, beta=0)
        "qn_g": jnp.ones((dim,), jnp.float32) + n(ks[0], (dim,)),
        "qn_b": n(ks[1], (dim,)),
        "kn_g": jnp.ones((dim,), jnp.float32) + n(ks[2], (dim,)),
        "kn_b": n(ks[3], (dim,)),
        "vn_g": jnp.ones((dim,), jnp.float32) + n(ks[4], (dim,)),
        "vn_b": n(ks[5], (dim,)),
        # nn.Linear weights stored PyTorch-style as (out, in)
        "wq": n(ks[6], (dim, dim), 0.2), "bq": n(ks[6], (dim,)),
        "wk": n(ks[7], (dim, dim), 0.2), "bk": n(ks[7], (dim,)),
        "wv": n(ks[8], (dim, dim), 0.2), "bv": n(ks[8], (dim,)),
        "wp": n(ks[9], (dim, dim), 0.2), "bp": n(ks[9], (dim,)),
        # edge_embedding: Linear(17*17, 17*17) -- dead branch in the reference forward
        "we": n(ks[10], (17 * 17, 17 * 17), 0.05), "be": n(ks[10], (17 * 17,)),
    }


if __name__ == "__main__":
    B, N, C, H = 2, 17, 32, 8   # N = 17 matches the module's 17x17 edge embedding
    key = jax.random.PRNGKey(0)
    kx, kc, ke, kp = jax.random.split(key, 4)

    x = jax.random.normal(kx, (B, N, C), dtype=jnp.float32)
    cva = jax.random.normal(kc, (B, N, C), dtype=jnp.float32)
    edge = jax.random.normal(ke, (17 * 17,), dtype=jnp.float32)
    params = init_params(kp, C)

    fwd = jax.jit(partial(cva_attention, num_heads=H))
    out = fwd(x, cva, edge, params)
    out = jax.block_until_ready(out)

    ref = cva_attention_ref(x, cva, params, num_heads=H)
    assert out.shape == (B, N, C)
    assert jnp.allclose(out, ref, atol=2e-2, rtol=2e-2), (
        f"max abs diff {jnp.max(jnp.abs(out - ref))}"
    )
    print("KERNEL_OK")
</pallas_src>

<mosaic_0001>
module attributes {stable_mosaic.version = 11 : i64} {
  func.func @cva_attention_kernel(%arg0: i32, %arg1: memref<2x48x32xf32, #tpu.memory_space<vmem>>, %arg2: memref<32x64xf32, #tpu.memory_space<vmem>>, %arg3: memref<32x256xf32, #tpu.memory_space<vmem>>, %arg4: memref<2x64xf32, #tpu.memory_space<vmem>>, %arg5: memref<2x17x32xf32, #tpu.memory_space<vmem>>) attributes {dimension_semantics = [#tpu.dimension_semantics<arbitrary>], iteration_bounds = array<i64: 1>, scalar_prefetch = 0 : i64, scratch_operands = 0 : i64, tpu.core_type = #tpu.core_type<tc>, window_params = [{pipeline_mode = #tpu.pipeline_mode<synchronous>, transform_indices = @transform_0, window_bounds = array<i64: 2, 48, 32>}, {pipeline_mode = #tpu.pipeline_mode<synchronous>, transform_indices = @transform_1, window_bounds = array<i64: 32, 64>}, {pipeline_mode = #tpu.pipeline_mode<synchronous>, transform_indices = @transform_2, window_bounds = array<i64: 32, 256>}, {pipeline_mode = #tpu.pipeline_mode<synchronous>, transform_indices = @transform_3, window_bounds = array<i64: 2, 64>}, {pipeline_mode = #tpu.pipeline_mode<synchronous>, transform_indices = @transform_4, window_bounds = array<i64: 2, 17, 32>}]} {
    %c0 = arith.constant 0 : index
    %c0_0 = arith.constant 0 : index
    %c0_1 = arith.constant 0 : index
    %0 = vector.load %arg1[%c0, %c0_0, %c0_1] : memref<2x48x32xf32, #tpu.memory_space<vmem>>, vector<2x48x32xf32>
    %cst = arith.constant dense<0.000000e+00> : vector<2x48xf32>
    %1 = vector.multi_reduction <add>, %0, %cst [2] : vector<2x48x32xf32> to vector<2x48xf32>
    %2 = vector.shape_cast %1 : vector<2x48xf32> to vector<2x48x1xf32>
    %cst_2 = arith.constant 3.200000e+01 : f32
    %3 = vector.broadcast %cst_2 : f32 to vector<2x48x1xf32>
    %4 = arith.divf %2, %3 : vector<2x48x1xf32>
    %5 = vector.broadcast %4 : vector<2x48x1xf32> to vector<2x48x32xf32>
    %6 = arith.subf %0, %5 : vector<2x48x32xf32>
    %7 = arith.mulf %6, %6 : vector<2x48x32xf32>
    %cst_3 = arith.constant dense<0.000000e+00> : vector<2x48xf32>
    %8 = vector.multi_reduction <add>, %7, %cst_3 [2] : vector<2x48x32xf32> to vector<2x48xf32>
    %9 = vector.shape_cast %8 : vector<2x48xf32> to vector<2x48x1xf32>
    %cst_4 = arith.constant 3.200000e+01 : f32
    %10 = vector.broadcast %cst_4 : f32 to vector<2x48x1xf32>
    %11 = arith.divf %9, %10 : vector<2x48x1xf32>
    %12 = vector.broadcast %4 : vector<2x48x1xf32> to vector<2x48x32xf32>
    %13 = arith.subf %0, %12 : vector<2x48x32xf32>
    %cst_5 = arith.constant 9.99999974E-6 : f32
    %14 = vector.broadcast %cst_5 : f32 to vector<2x48x1xf32>
    %15 = arith.addf %11, %14 : vector<2x48x1xf32>
    %16 = math.rsqrt %15 : vector<2x48x1xf32>
    %17 = vector.broadcast %16 : vector<2x48x1xf32> to vector<2x48x32xf32>
    %18 = arith.mulf %13, %17 : vector<2x48x32xf32>
    %19 = vector.extract_strided_slice %18 {offsets = [0, 0, 0], sizes = [1, 48, 32], strides = [1, 1, 1]} : vector<2x48x32xf32> to vector<1x48x32xf32>
    %20 = vector.shape_cast %19 : vector<1x48x32xf32> to vector<48x32xf32>
    %21 = vector.extract_strided_slice %18 {offsets = [1, 0, 0], sizes = [1, 48, 32], strides = [1, 1, 1]} : vector<2x48x32xf32> to vector<1x48x32xf32>
    %22 = vector.shape_cast %21 : vector<1x48x32xf32> to vector<48x32xf32>
    %c0_6 = arith.constant 0 : index
    %c0_7 = arith.constant 0 : index
    %23 = vector.load %arg2[%c0_6, %c0_7] : memref<32x64xf32, #tpu.memory_space<vmem>>, vector<32x64xf32>
    %cst_8 = arith.constant dense<0.000000e+00> : vector<48x64xf32>
    %24 = tpu.matmul %22, %23, %cst_8 {dimension_numbers = #tpu.dot_dimension_numbers<[1], [0], [0], [1], [0, 0, 1, 1], [], []>} : vector<48x32xf32>, vector<32x64xf32>, vector<48x64xf32> -> vector<48x64xf32>
    %c0_9 = arith.constant 0 : index
    %c0_10 = arith.constant 0 : index
    %25 = vector.load %arg4[%c0_9, %c0_10] : memref<2x64xf32, #tpu.memory_space<vmem>>, vector<1x64xf32>
    %26 = vector.broadcast %25 : vector<1x64xf32> to vector<48x64xf32>
    %27 = arith.addf %24, %26 : vector<48x64xf32>
    %c0_11 = arith.constant 0 : index
    %c0_12 = arith.constant 0 : index
    %28 = vector.load %arg3[%c0_11, %c0_12] : memref<32x256xf32, #tpu.memory_space<vmem>>, vector<32x256xf32>
    %cst_13 = arith.constant dense<0.000000e+00> : vector<48x256xf32>
    %29 = tpu.matmul %20, %28, %cst_13 {dimension_numbers = #tpu.dot_dimension_numbers<[1], [0], [0], [1], [0, 0, 1, 1], [], []>} : vector<48x32xf32>, vector<32x256xf32>, vector<48x256xf32> -> vector<48x256xf32>
    %30 = vector.extract_strided_slice %27 {offsets = [0, 0], sizes = [17, 4], strides = [1, 1]} : vector<48x64xf32> to vector<17x4xf32>
    %31 = vector.extract_strided_slice %27 {offsets = [0, 32], sizes = [17, 4], strides = [1, 1]} : vector<48x64xf32> to vector<17x4xf32>
    %cst_14 = arith.constant dense<0.000000e+00> : vector<17x17xf32>
    %32 = tpu.matmul %30, %31, %cst_14 {dimension_numbers = #tpu.dot_dimension_numbers<[1], [1], [0], [0], [0, 0, 1, 0], [], []>} : vector<17x4xf32>, vector<17x4xf32>, vector<17x17xf32> -> vector<17x17xf32>
    %33 = vector.extract_strided_slice %27 {offsets = [0, 4], sizes = [17, 4], strides = [1, 1]} : vector<48x64xf32> to vector<17x4xf32>
    %34 = vector.extract_strided_slice %27 {offsets = [0, 36], sizes = [17, 4], strides = [1, 1]} : vector<48x64xf32> to vector<17x4xf32>
    %cst_15 = arith.constant dense<0.000000e+00> : vector<17x17xf32>
    %35 = tpu.matmul %33, %34, %cst_15 {dimension_numbers = #tpu.dot_dimension_numbers<[1], [1], [0], [0], [0, 0, 1, 0], [], []>} : vector<17x4xf32>, vector<17x4xf32>, vector<17x17xf32> -> vector<17x17xf32>
    %36 = vector.extract_strided_slice %27 {offsets = [0, 8], sizes = [17, 4], strides = [1, 1]} : vector<48x64xf32> to vector<17x4xf32>
    %37 = vector.extract_strided_slice %27 {offsets = [0, 40], sizes = [17, 4], strides = [1, 1]} : vector<48x64xf32> to vector<17x4xf32>
    %cst_16 = arith.constant dense<0.000000e+00> : vector<17x17xf32>
    %38 = tpu.matmul %36, %37, %cst_16 {dimension_numbers = #tpu.dot_dimension_numbers<[1], [1], [0], [0], [0, 0, 1, 0], [], []>} : vector<17x4xf32>, vector<17x4xf32>, vector<17x17xf32> -> vector<17x17xf32>
    %39 = vector.extract_strided_slice %27 {offsets = [0, 12], sizes = [17, 4], strides = [1, 1]} : vector<48x64xf32> to vector<17x4xf32>
    %40 = vector.extract_strided_slice %27 {offsets = [0, 44], sizes = [17, 4], strides = [1, 1]} : vector<48x64xf32> to vector<17x4xf32>
    %cst_17 = arith.constant dense<0.000000e+00> : vector<17x17xf32>
    %41 = tpu.matmul %39, %40, %cst_17 {dimension_numbers = #tpu.dot_dimension_numbers<[1], [1], [0], [0], [0, 0, 1, 0], [], []>} : vector<17x4xf32>, vector<17x4xf32>, vector<17x17xf32> -> vector<17x17xf32>
    %42 = vector.extract_strided_slice %27 {offsets = [0, 16], sizes = [17, 4], strides = [1, 1]} : vector<48x64xf32> to vector<17x4xf32>
    %43 = vector.extract_strided_slice %27 {offsets = [0, 48], sizes = [17, 4], strides = [1, 1]} : vector<48x64xf32> to vector<17x4xf32>
    %cst_18 = arith.constant dense<0.000000e+00> : vector<17x17xf32>
    %44 = tpu.matmul %42, %43, %cst_18 {dimension_numbers = #tpu.dot_dimension_numbers<[1], [1], [0], [0], [0, 0, 1, 0], [], []>} : vector<17x4xf32>, vector<17x4xf32>, vector<17x17xf32> -> vector<17x17xf32>
    %45 = vector.extract_strided_slice %27 {offsets = [0, 20], sizes = [17, 4], strides = [1, 1]} : vector<48x64xf32> to vector<17x4xf32>
    %46 = vector.extract_strided_slice %27 {offsets = [0, 52], sizes = [17, 4], strides = [1, 1]} : vector<48x64xf32> to vector<17x4xf32>
    %cst_19 = arith.constant dense<0.000000e+00> : vector<17x17xf32>
    %47 = tpu.matmul %45, %46, %cst_19 {dimension_numbers = #tpu.dot_dimension_numbers<[1], [1], [0], [0], [0, 0, 1, 0], [], []>} : vector<17x4xf32>, vector<17x4xf32>, vector<17x17xf32> -> vector<17x17xf32>
    %48 = vector.extract_strided_slice %27 {offsets = [0, 24], sizes = [17, 4], strides = [1, 1]} : vector<48x64xf32> to vector<17x4xf32>
    %49 = vector.extract_strided_slice %27 {offsets = [0, 56], sizes = [17, 4], strides = [1, 1]} : vector<48x64xf32> to vector<17x4xf32>
    %cst_20 = arith.constant dense<0.000000e+00> : vector<17x17xf32>
    %50 = tpu.matmul %48, %49, %cst_20 {dimension_numbers = #tpu.dot_dimension_numbers<[1], [1], [0], [0], [0, 0, 1, 0], [], []>} : vector<17x4xf32>, vector<17x4xf32>, vector<17x17xf32> -> vector<17x17xf32>
    %51 = vector.extract_strided_slice %27 {offsets = [0, 28], sizes = [17, 4], strides = [1, 1]} : vector<48x64xf32> to vector<17x4xf32>
    %52 = vector.extract_strided_slice %27 {offsets = [0, 60], sizes = [17, 4], strides = [1, 1]} : vector<48x64xf32> to vector<17x4xf32>
    %cst_21 = arith.constant dense<0.000000e+00> : vector<17x17xf32>
    %53 = tpu.matmul %51, %52, %cst_21 {dimension_numbers = #tpu.dot_dimension_numbers<[1], [1], [0], [0], [0, 0, 1, 0], [], []>} : vector<17x4xf32>, vector<17x4xf32>, vector<17x17xf32> -> vector<17x17xf32>
    %54 = vector.extract_strided_slice %27 {offsets = [24, 0], sizes = [17, 4], strides = [1, 1]} : vector<48x64xf32> to vector<17x4xf32>
    %55 = vector.extract_strided_slice %27 {offsets = [24, 32], sizes = [17, 4], strides = [1, 1]} : vector<48x64xf32> to vector<17x4xf32>
    %cst_22 = arith.constant dense<0.000000e+00> : vector<17x17xf32>
    %56 = tpu.matmul %54, %55, %cst_22 {dimension_numbers = #tpu.dot_dimension_numbers<[1], [1], [0], [0], [0, 0, 1, 0], [], []>} : vector<17x4xf32>, vector<17x4xf32>, vector<17x17xf32> -> vector<17x17xf32>
    %57 = vector.extract_strided_slice %27 {offsets = [24, 4], sizes = [17, 4], strides = [1, 1]} : vector<48x64xf32> to vector<17x4xf32>
    %58 = vector.extract_strided_slice %27 {offsets = [24, 36], sizes = [17, 4], strides = [1, 1]} : vector<48x64xf32> to vector<17x4xf32>
    %cst_23 = arith.constant dense<0.000000e+00> : vector<17x17xf32>
    %59 = tpu.matmul %57, %58, %cst_23 {dimension_numbers = #tpu.dot_dimension_numbers<[1], [1], [0], [0], [0, 0, 1, 0], [], []>} : vector<17x4xf32>, vector<17x4xf32>, vector<17x17xf32> -> vector<17x17xf32>
    %60 = vector.extract_strided_slice %27 {offsets = [24, 8], sizes = [17, 4], strides = [1, 1]} : vector<48x64xf32> to vector<17x4xf32>
    %61 = vector.extract_strided_slice %27 {offsets = [24, 40], sizes = [17, 4], strides = [1, 1]} : vector<48x64xf32> to vector<17x4xf32>
    %cst_24 = arith.constant dense<0.000000e+00> : vector<17x17xf32>
    %62 = tpu.matmul %60, %61, %cst_24 {dimension_numbers = #tpu.dot_dimension_numbers<[1], [1], [0], [0], [0, 0, 1, 0], [], []>} : vector<17x4xf32>, vector<17x4xf32>, vector<17x17xf32> -> vector<17x17xf32>
    %63 = vector.extract_strided_slice %27 {offsets = [24, 12], sizes = [17, 4], strides = [1, 1]} : vector<48x64xf32> to vector<17x4xf32>
    %64 = vector.extract_strided_slice %27 {offsets = [24, 44], sizes = [17, 4], strides = [1, 1]} : vector<48x64xf32> to vector<17x4xf32>
    %cst_25 = arith.constant dense<0.000000e+00> : vector<17x17xf32>
    %65 = tpu.matmul %63, %64, %cst_25 {dimension_numbers = #tpu.dot_dimension_numbers<[1], [1], [0], [0], [0, 0, 1, 0], [], []>} : vector<17x4xf32>, vector<17x4xf32>, vector<17x17xf32> -> vector<17x17xf32>
    %66 = vector.extract_strided_slice %27 {offsets = [24, 16], sizes = [17, 4], strides = [1, 1]} : vector<48x64xf32> to vector<17x4xf32>
    %67 = vector.extract_strided_slice %27 {offsets = [24, 48], sizes = [17, 4], strides = [1, 1]} : vector<48x64xf32> to vector<17x4xf32>
    %cst_26 = arith.constant dense<0.000000e+00> : vector<17x17xf32>
    %68 = tpu.matmul %66, %67, %cst_26 {dimension_numbers = #tpu.dot_dimension_numbers<[1], [1], [0], [0], [0, 0, 1, 0], [], []>} : vector<17x4xf32>, vector<17x4xf32>, vector<17x17xf32> -> vector<17x17xf32>
    %69 = vector.extract_strided_slice %27 {offsets = [24, 20], sizes = [17, 4], strides = [1, 1]} : vector<48x64xf32> to vector<17x4xf32>
    %70 = vector.extract_strided_slice %27 {offsets = [24, 52], sizes = [17, 4], strides = [1, 1]} : vector<48x64xf32> to vector<17x4xf32>
    %cst_27 = arith.constant dense<0.000000e+00> : vector<17x17xf32>
    %71 = tpu.matmul %69, %70, %cst_27 {dimension_numbers = #tpu.dot_dimension_numbers<[1], [1], [0], [0], [0, 0, 1, 0], [], []>} : vector<17x4xf32>, vector<17x4xf32>, vector<17x17xf32> -> vector<17x17xf32>
    %72 = vector.extract_strided_slice %27 {offsets = [24, 24], sizes = [17, 4], strides = [1, 1]} : vector<48x64xf32> to vector<17x4xf32>
    %73 = vector.extract_strided_slice %27 {offsets = [24, 56], sizes = [17, 4], strides = [1, 1]} : vector<48x64xf32> to vector<17x4xf32>
    %cst_28 = arith.constant dense<0.000000e+00> : vector<17x17xf32>
    %74 = tpu.matmul %72, %73, %cst_28 {dimension_numbers = #tpu.dot_dimension_numbers<[1], [1], [0], [0], [0, 0, 1, 0], [], []>} : vector<17x4xf32>, vector<17x4xf32>, vector<17x17xf32> -> vector<17x17xf32>
    %75 = vector.extract_strided_slice %27 {offsets = [24, 28], sizes = [17, 4], strides = [1, 1]} : vector<48x64xf32> to vector<17x4xf32>
    %76 = vector.extract_strided_slice %27 {offsets = [24, 60], sizes = [17, 4], strides = [1, 1]} : vector<48x64xf32> to vector<17x4xf32>
    %cst_29 = arith.constant dense<0.000000e+00> : vector<17x17xf32>
    %77 = tpu.matmul %75, %76, %cst_29 {dimension_numbers = #tpu.dot_dimension_numbers<[1], [1], [0], [0], [0, 0, 1, 0], [], []>} : vector<17x4xf32>, vector<17x4xf32>, vector<17x17xf32> -> vector<17x17xf32>
    %78 = vector.shape_cast %32 : vector<17x17xf32> to vector<1x17x17xf32>
    %79 = vector.shape_cast %35 : vector<17x17xf32> to vector<1x17x17xf32>
    %80 = vector.shape_cast %38 : vector<17x17xf32> to vector<1x17x17xf32>
    %81 = vector.shape_cast %41 : vector<17x17xf32> to vector<1x17x17xf32>
    %82 = vector.shape_cast %44 : vector<17x17xf32> to vector<1x17x17xf32>
    %83 = vector.shape_cast %47 : vector<17x17xf32> to vector<1x17x17xf32>
    %84 = vector.shape_cast %50 : vector<17x17xf32> to vector<1x17x17xf32>
    %85 = vector.shape_cast %53 : vector<17x17xf32> to vector<1x17x17xf32>
    %86 = vector.shape_cast %56 : vector<17x17xf32> to vector<1x17x17xf32>
    %87 = vector.shape_cast %59 : vector<17x17xf32> to vector<1x17x17xf32>
    %88 = vector.shape_cast %62 : vector<17x17xf32> to vector<1x17x17xf32>
    %89 = vector.shape_cast %65 : vector<17x17xf32> to vector<1x17x17xf32>
    %90 = vector.shape_cast %68 : vector<17x17xf32> to vector<1x17x17xf32>
    %91 = vector.shape_cast %71 : vector<17x17xf32> to vector<1x17x17xf32>
    %92 = vector.shape_cast %74 : vector<17x17xf32> to vector<1x17x17xf32>
    %93 = vector.shape_cast %77 : vector<17x17xf32> to vector<1x17x17xf32>
    %94 = tpu.concatenate %78, %79, %80, %81, %82, %83, %84, %85, %86, %87, %88, %89, %90, %91, %92, %93 in 0 : vector<1x17x17xf32>, vector<1x17x17xf32>, vector<1x17x17xf32>, vector<1x17x17xf32>, vector<1x17x17xf32>, vector<1x17x17xf32>, vector<1x17x17xf32>, vector<1x17x17xf32>, vector<1x17x17xf32>, vector<1x17x17xf32>, vector<1x17x17xf32>, vector<1x17x17xf32>, vector<1x17x17xf32>, vector<1x17x17xf32>, vector<1x17x17xf32>, vector<1x17x17xf32> -> vector<16x17x17xf32>
    %cst_30 = arith.constant dense<0xFF800000> : vector<16x17xf32>
    %95 = vector.multi_reduction <maximumf>, %94, %cst_30 [2] : vector<16x17x17xf32> to vector<16x17xf32>
    %96 = vector.shape_cast %95 : vector<16x17xf32> to vector<16x17x1xf32>
    %97 = vector.broadcast %96 : vector<16x17x1xf32> to vector<16x17x17xf32>
    %98 = arith.subf %94, %97 : vector<16x17x17xf32>
    %99 = math.exp %98 : vector<16x17x17xf32>
    %cst_31 = arith.constant dense<0.000000e+00> : vector<16x17xf32>
    %100 = vector.multi_reduction <add>, %99, %cst_31 [2] : vector<16x17x17xf32> to vector<16x17xf32>
    %101 = vector.shape_cast %100 : vector<16x17xf32> to vector<16x17x1xf32>
    %102 = tpu.reciprocal %101 : vector<16x17x1xf32> -> vector<16x17x1xf32>
    %103 = vector.broadcast %102 : vector<16x17x1xf32> to vector<16x17x17xf32>
    %104 = arith.mulf %99, %103 : vector<16x17x17xf32>
    %c1 = arith.constant 1 : index
    %c0_32 = arith.constant 0 : index
    %105 = vector.load %arg4[%c1, %c0_32] : memref<2x64xf32, #tpu.memory_space<vmem>>, vector<1x32xf32>
    %106 = vector.extract_strided_slice %104 {offsets = [0, 0, 0], sizes = [1, 17, 17], strides = [1, 1, 1]} : vector<16x17x17xf32> to vector<1x17x17xf32>
    %107 = vector.shape_cast %106 : vector<1x17x17xf32> to vector<17x17xf32>
    %108 = vector.extract_strided_slice %29 {offsets = [0, 0], sizes = [17, 32], strides = [1, 1]} : vector<48x256xf32> to vector<17x32xf32>
    %cst_33 = arith.constant dense<0.000000e+00> : vector<17x32xf32>
    %109 = tpu.matmul %107, %108, %cst_33 {dimension_numbers = #tpu.dot_dimension_numbers<[1], [0], [0], [1], [0, 0, 1, 1], [], []>} : vector<17x17xf32>, vector<17x32xf32>, vector<17x32xf32> -> vector<17x32xf32>
    %110 = vector.extract_strided_slice %104 {offsets = [1, 0, 0], sizes = [1, 17, 17], strides = [1, 1, 1]} : vector<16x17x17xf32> to vector<1x17x17xf32>
    %111 = vector.shape_cast %110 : vector<1x17x17xf32> to vector<17x17xf32>
    %112 = vector.extract_strided_slice %29 {offsets = [0, 32], sizes = [17, 32], strides = [1, 1]} : vector<48x256xf32> to vector<17x32xf32>
    %cst_34 = arith.constant dense<0.000000e+00> : vector<17x32xf32>
    %113 = tpu.matmul %111, %112, %cst_34 {dimension_numbers = #tpu.dot_dimension_numbers<[1], [0], [0], [1], [0, 0, 1, 1], [], []>} : vector<17x17xf32>, vector<17x32xf32>, vector<17x32xf32> -> vector<17x32xf32>
    %114 = arith.addf %109, %113 : vector<17x32xf32>
    %115 = vector.extract_strided_slice %104 {offsets = [2, 0, 0], sizes = [1, 17, 17], strides = [1, 1, 1]} : vector<16x17x17xf32> to vector<1x17x17xf32>
    %116 = vector.shape_cast %115 : vector<1x17x17xf32> to vector<17x17xf32>
    %117 = vector.extract_strided_slice %29 {offsets = [0, 64], sizes = [17, 32], strides = [1, 1]} : vector<48x256xf32> to vector<17x32xf32>
    %cst_35 = arith.constant dense<0.000000e+00> : vector<17x32xf32>
    %118 = tpu.matmul %116, %117, %cst_35 {dimension_numbers = #tpu.dot_dimension_numbers<[1], [0], [0], [1], [0, 0, 1, 1], [], []>} : vector<17x17xf32>, vector<17x32xf32>, vector<17x32xf32> -> vector<17x32xf32>
    %119 = arith.addf %114, %118 : vector<17x32xf32>
    %120 = vector.extract_strided_slice %104 {offsets = [3, 0, 0], sizes = [1, 17, 17], strides = [1, 1, 1]} : vector<16x17x17xf32> to vector<1x17x17xf32>
    %121 = vector.shape_cast %120 : vector<1x17x17xf32> to vector<17x17xf32>
    %122 = vector.extract_strided_slice %29 {offsets = [0, 96], sizes = [17, 32], strides = [1, 1]} : vector<48x256xf32> to vector<17x32xf32>
    %cst_36 = arith.constant dense<0.000000e+00> : vector<17x32xf32>
    %123 = tpu.matmul %121, %122, %cst_36 {dimension_numbers = #tpu.dot_dimension_numbers<[1], [0], [0], [1], [0, 0, 1, 1], [], []>} : vector<17x17xf32>, vector<17x32xf32>, vector<17x32xf32> -> vector<17x32xf32>
    %124 = arith.addf %119, %123 : vector<17x32xf32>
    %125 = vector.extract_strided_slice %104 {offsets = [4, 0, 0], sizes = [1, 17, 17], strides = [1, 1, 1]} : vector<16x17x17xf32> to vector<1x17x17xf32>
    %126 = vector.shape_cast %125 : vector<1x17x17xf32> to vector<17x17xf32>
    %127 = vector.extract_strided_slice %29 {offsets = [0, 128], sizes = [17, 32], strides = [1, 1]} : vector<48x256xf32> to vector<17x32xf32>
    %cst_37 = arith.constant dense<0.000000e+00> : vector<17x32xf32>
    %128 = tpu.matmul %126, %127, %cst_37 {dimension_numbers = #tpu.dot_dimension_numbers<[1], [0], [0], [1], [0, 0, 1, 1], [], []>} : vector<17x17xf32>, vector<17x32xf32>, vector<17x32xf32> -> vector<17x32xf32>
    %129 = arith.addf %124, %128 : vector<17x32xf32>
    %130 = vector.extract_strided_slice %104 {offsets = [5, 0, 0], sizes = [1, 17, 17], strides = [1, 1, 1]} : vector<16x17x17xf32> to vector<1x17x17xf32>
    %131 = vector.shape_cast %130 : vector<1x17x17xf32> to vector<17x17xf32>
    %132 = vector.extract_strided_slice %29 {offsets = [0, 160], sizes = [17, 32], strides = [1, 1]} : vector<48x256xf32> to vector<17x32xf32>
    %cst_38 = arith.constant dense<0.000000e+00> : vector<17x32xf32>
    %133 = tpu.matmul %131, %132, %cst_38 {dimension_numbers = #tpu.dot_dimension_numbers<[1], [0], [0], [1], [0, 0, 1, 1], [], []>} : vector<17x17xf32>, vector<17x32xf32>, vector<17x32xf32> -> vector<17x32xf32>
    %134 = arith.addf %129, %133 : vector<17x32xf32>
    %135 = vector.extract_strided_slice %104 {offsets = [6, 0, 0], sizes = [1, 17, 17], strides = [1, 1, 1]} : vector<16x17x17xf32> to vector<1x17x17xf32>
    %136 = vector.shape_cast %135 : vector<1x17x17xf32> to vector<17x17xf32>
    %137 = vector.extract_strided_slice %29 {offsets = [0, 192], sizes = [17, 32], strides = [1, 1]} : vector<48x256xf32> to vector<17x32xf32>
    %cst_39 = arith.constant dense<0.000000e+00> : vector<17x32xf32>
    %138 = tpu.matmul %136, %137, %cst_39 {dimension_numbers = #tpu.dot_dimension_numbers<[1], [0], [0], [1], [0, 0, 1, 1], [], []>} : vector<17x17xf32>, vector<17x32xf32>, vector<17x32xf32> -> vector<17x32xf32>
    %139 = arith.addf %134, %138 : vector<17x32xf32>
    %140 = vector.extract_strided_slice %104 {offsets = [7, 0, 0], sizes = [1, 17, 17], strides = [1, 1, 1]} : vector<16x17x17xf32> to vector<1x17x17xf32>
    %141 = vector.shape_cast %140 : vector<1x17x17xf32> to vector<17x17xf32>
    %142 = vector.extract_strided_slice %29 {offsets = [0, 224], sizes = [17, 32], strides = [1, 1]} : vector<48x256xf32> to vector<17x32xf32>
    %cst_40 = arith.constant dense<0.000000e+00> : vector<17x32xf32>
    %143 = tpu.matmul %141, %142, %cst_40 {dimension_numbers = #tpu.dot_dimension_numbers<[1], [0], [0], [1], [0, 0, 1, 1], [], []>} : vector<17x17xf32>, vector<17x32xf32>, vector<17x32xf32> -> vector<17x32xf32>
    %144 = arith.addf %139, %143 : vector<17x32xf32>
    %145 = vector.broadcast %105 : vector<1x32xf32> to vector<17x32xf32>
    %146 = arith.addf %144, %145 : vector<17x32xf32>
    %c0_41 = arith.constant 0 : index
    %c0_42 = arith.constant 0 : index
    %c0_43 = arith.constant 0 : index
    %147 = vector.load %arg5[%c0_41, %c0_42, %c0_43] : memref<2x17x32xf32, #tpu.memory_space<vmem>>, vector<1x17x32xf32>
    %148 = vector.shape_cast %147 : vector<1x17x32xf32> to vector<17x32xf32>
    %149 = vector.shape_cast %146 : vector<17x32xf32> to vector<1x17x32xf32>
    tpu.vector_store %arg5[%c0_41, %c0_42, %c0_43], %149 {strides = array<i32>} : memref<2x17x32xf32, #tpu.memory_space<vmem>>, vector<1x17x32xf32>,
    %150 = vector.extract_strided_slice %104 {offsets = [8, 0, 0], sizes = [1, 17, 17], strides = [1, 1, 1]} : vector<16x17x17xf32> to vector<1x17x17xf32>
    %151 = vector.shape_cast %150 : vector<1x17x17xf32> to vector<17x17xf32>
    %152 = vector.extract_strided_slice %29 {offsets = [24, 0], sizes = [17, 32], strides = [1, 1]} : vector<48x256xf32> to vector<17x32xf32>
    %cst_44 = arith.constant dense<0.000000e+00> : vector<17x32xf32>
    %153 = tpu.matmul %151, %152, %cst_44 {dimension_numbers = #tpu.dot_dimension_numbers<[1], [0], [0], [1], [0, 0, 1, 1], [], []>} : vector<17x17xf32>, vector<17x32xf32>, vector<17x32xf32> -> vector<17x32xf32>
    %154 = vector.extract_strided_slice %104 {offsets = [9, 0, 0], sizes = [1, 17, 17], strides = [1, 1, 1]} : vector<16x17x17xf32> to vector<1x17x17xf32>
    %155 = vector.shape_cast %154 : vector<1x17x17xf32> to vector<17x17xf32>
    %156 = vector.extract_strided_slice %29 {offsets = [24, 32], sizes = [17, 32], strides = [1, 1]} : vector<48x256xf32> to vector<17x32xf32>
    %cst_45 = arith.constant dense<0.000000e+00> : vector<17x32xf32>
    %157 = tpu.matmul %155, %156, %cst_45 {dimension_numbers = #tpu.dot_dimension_numbers<[1], [0], [0], [1], [0, 0, 1, 1], [], []>} : vector<17x17xf32>, vector<17x32xf32>, vector<17x32xf32> -> vector<17x32xf32>
    %158 = arith.addf %153, %157 : vector<17x32xf32>
    %159 = vector.extract_strided_slice %104 {offsets = [10, 0, 0], sizes = [1, 17, 17], strides = [1, 1, 1]} : vector<16x17x17xf32> to vector<1x17x17xf32>
    %160 = vector.shape_cast %159 : vector<1x17x17xf32> to vector<17x17xf32>
    %161 = vector.extract_strided_slice %29 {offsets = [24, 64], sizes = [17, 32], strides = [1, 1]} : vector<48x256xf32> to vector<17x32xf32>
    %cst_46 = arith.constant dense<0.000000e+00> : vector<17x32xf32>
    %162 = tpu.matmul %160, %161, %cst_46 {dimension_numbers = #tpu.dot_dimension_numbers<[1], [0], [0], [1], [0, 0, 1, 1], [], []>} : vector<17x17xf32>, vector<17x32xf32>, vector<17x32xf32> -> vector<17x32xf32>
    %163 = arith.addf %158, %162 : vector<17x32xf32>
    %164 = vector.extract_strided_slice %104 {offsets = [11, 0, 0], sizes = [1, 17, 17], strides = [1, 1, 1]} : vector<16x17x17xf32> to vector<1x17x17xf32>
    %165 = vector.shape_cast %164 : vector<1x17x17xf32> to vector<17x17xf32>
    %166 = vector.extract_strided_slice %29 {offsets = [24, 96], sizes = [17, 32], strides = [1, 1]} : vector<48x256xf32> to vector<17x32xf32>
    %cst_47 = arith.constant dense<0.000000e+00> : vector<17x32xf32>
    %167 = tpu.matmul %165, %166, %cst_47 {dimension_numbers = #tpu.dot_dimension_numbers<[1], [0], [0], [1], [0, 0, 1, 1], [], []>} : vector<17x17xf32>, vector<17x32xf32>, vector<17x32xf32> -> vector<17x32xf32>
    %168 = arith.addf %163, %167 : vector<17x32xf32>
    %169 = vector.extract_strided_slice %104 {offsets = [12, 0, 0], sizes = [1, 17, 17], strides = [1, 1, 1]} : vector<16x17x17xf32> to vector<1x17x17xf32>
    %170 = vector.shape_cast %169 : vector<1x17x17xf32> to vector<17x17xf32>
    %171 = vector.extract_strided_slice %29 {offsets = [24, 128], sizes = [17, 32], strides = [1, 1]} : vector<48x256xf32> to vector<17x32xf32>
    %cst_48 = arith.constant dense<0.000000e+00> : vector<17x32xf32>
    %172 = tpu.matmul %170, %171, %cst_48 {dimension_numbers = #tpu.dot_dimension_numbers<[1], [0], [0], [1], [0, 0, 1, 1], [], []>} : vector<17x17xf32>, vector<17x32xf32>, vector<17x32xf32> -> vector<17x32xf32>
    %173 = arith.addf %168, %172 : vector<17x32xf32>
    %174 = vector.extract_strided_slice %104 {offsets = [13, 0, 0], sizes = [1, 17, 17], strides = [1, 1, 1]} : vector<16x17x17xf32> to vector<1x17x17xf32>
    %175 = vector.shape_cast %174 : vector<1x17x17xf32> to vector<17x17xf32>
    %176 = vector.extract_strided_slice %29 {offsets = [24, 160], sizes = [17, 32], strides = [1, 1]} : vector<48x256xf32> to vector<17x32xf32>
    %cst_49 = arith.constant dense<0.000000e+00> : vector<17x32xf32>
    %177 = tpu.matmul %175, %176, %cst_49 {dimension_numbers = #tpu.dot_dimension_numbers<[1], [0], [0], [1], [0, 0, 1, 1], [], []>} : vector<17x17xf32>, vector<17x32xf32>, vector<17x32xf32> -> vector<17x32xf32>
    %178 = arith.addf %173, %177 : vector<17x32xf32>
    %179 = vector.extract_strided_slice %104 {offsets = [14, 0, 0], sizes = [1, 17, 17], strides = [1, 1, 1]} : vector<16x17x17xf32> to vector<1x17x17xf32>
    %180 = vector.shape_cast %179 : vector<1x17x17xf32> to vector<17x17xf32>
    %181 = vector.extract_strided_slice %29 {offsets = [24, 192], sizes = [17, 32], strides = [1, 1]} : vector<48x256xf32> to vector<17x32xf32>
    %cst_50 = arith.constant dense<0.000000e+00> : vector<17x32xf32>
    %182 = tpu.matmul %180, %181, %cst_50 {dimension_numbers = #tpu.dot_dimension_numbers<[1], [0], [0], [1], [0, 0, 1, 1], [], []>} : vector<17x17xf32>, vector<17x32xf32>, vector<17x32xf32> -> vector<17x32xf32>
    %183 = arith.addf %178, %182 : vector<17x32xf32>
    %184 = vector.extract_strided_slice %104 {offsets = [15, 0, 0], sizes = [1, 17, 17], strides = [1, 1, 1]} : vector<16x17x17xf32> to vector<1x17x17xf32>
    %185 = vector.shape_cast %184 : vector<1x17x17xf32> to vector<17x17xf32>
    %186 = vector.extract_strided_slice %29 {offsets = [24, 224], sizes = [17, 32], strides = [1, 1]} : vector<48x256xf32> to vector<17x32xf32>
    %cst_51 = arith.constant dense<0.000000e+00> : vector<17x32xf32>
    %187 = tpu.matmul %185, %186, %cst_51 {dimension_numbers = #tpu.dot_dimension_numbers<[1], [0], [0], [1], [0, 0, 1, 1], [], []>} : vector<17x17xf32>, vector<17x32xf32>, vector<17x32xf32> -> vector<17x32xf32>
    %188 = arith.addf %183, %187 : vector<17x32xf32>
    %189 = vector.broadcast %105 : vector<1x32xf32> to vector<17x32xf32>
    %190 = arith.addf %188, %189 : vector<17x32xf32>
    %c1_52 = arith.constant 1 : index
    %c0_53 = arith.constant 0 : index
    %c0_54 = arith.constant 0 : index
    %191 = vector.load %arg5[%c1_52, %c0_53, %c0_54] : memref<2x17x32xf32, #tpu.memory_space<vmem>>, vector<1x17x32xf32>
    %192 = vector.shape_cast %191 : vector<1x17x32xf32> to vector<17x32xf32>
    %193 = vector.shape_cast %190 : vector<17x32xf32> to vector<1x17x32xf32>
    tpu.vector_store %arg5[%c1_52, %c0_53, %c0_54], %193 {strides = array<i32>} : memref<2x17x32xf32, #tpu.memory_space<vmem>>, vector<1x17x32xf32>,
    return
  }
  func.func @transform_0(%arg0: i32) -> (i32, i32, i32) {
    %c0_i32 = arith.constant 0 : i32
    %c0_i32_0 = arith.constant 0 : i32
    %c0_i32_1 = arith.constant 0 : i32
    %c0_i32_2 = arith.constant 0 : i32
    return %c0_i32, %c0_i32_0, %c0_i32_1 : i32, i32, i32
  }
  func.func @transform_1(%arg0: i32) -> (i32, i32) {
    %c0_i32 = arith.constant 0 : i32
    %c0_i32_0 = arith.constant 0 : i32
    %c0_i32_1 = arith.constant 0 : i32
    return %c0_i32, %c0_i32_0 : i32, i32
  }
  func.func @transform_2(%arg0: i32) -> (i32, i32) {
    %c0_i32 = arith.constant 0 : i32
    %c0_i32_0 = arith.constant 0 : i32
    %c0_i32_1 = arith.constant 0 : i32
    return %c0_i32, %c0_i32_0 : i32, i32
  }
  func.func @transform_3(%arg0: i32) -> (i32, i32) {
    %c0_i32 = arith.constant 0 : i32
    %c0_i32_0 = arith.constant 0 : i32
    %c0_i32_1 = arith.constant 0 : i32
    return %c0_i32, %c0_i32_0 : i32, i32
  }
  func.func @transform_4(%arg0: i32) -> (i32, i32, i32) {
    %c0_i32 = arith.constant 0 : i32
    %c0_i32_0 = arith.constant 0 : i32
    %c0_i32_1 = arith.constant 0 : i32
    %c0_i32_2 = arith.constant 0 : i32
    return %c0_i32, %c0_i32_0, %c0_i32_1 : i32, i32, i32
  }
}

</mosaic_0001>

<bundles_post_ra>
// kernel: cva_attention.1
= control target key start
LH: loop header
LB: loop body
LE: loop exit
PB: predicated region body
PF: predicated region fallthrough
CT: control target
= control target key end

     0   :  { %vm29_vm0 = vcmask 261120   ;;  %s5367_s10 = smov 96   ;;  %s5368_s11 = smov 92   ;;  %vm5382_vm1 = vmmov 0   ;;  %vm445_vm2 = vcmask 31744   ;;  %vm2646_vm3 = vcmask 1040384   ;;  %s7172_s0 = inlined_call_operand.vmem [shape: f32[2,48,32], index: 0, kind: input, shape index: {}]   ;;  %s7173_s1 = inlined_call_operand.vmem [shape: f32[32,64], index: 1, kind: input, shape index: {}]   ;;  %s7174_s2 = inlined_call_operand.vmem [shape: f32[32,256], index: 2, kind: input, shape index: {}]   ;;  %s7175_s3 = inlined_call_operand.vmem [shape: f32[2,64], index: 3, kind: input, shape index: {}]   ;;  %s7176_s4 = inlined_call_operand.vmem [shape: f32[2,17,32], index: 4, kind: output, shape index: {}]  }
   0x1   :  { %v23_v0 = vld [vmem:[%s7172_s0 + $0x30] sm:$0xff]  ;;  %v25_v1 = vld [vmem:[%s7172_s0 + $0x40] sm:$0xff]  ;;  %v24_v2 = vld [vmem:[%s7172_s0 + $0x38] sm:$0xff]  ;;  %s5369_s12 = smov 88   ;;  %s5370_s13 = smov 124   ;;  %vm2095_vm4 = vcmask 138240  }
   0x2   :  { %v48_v3 = vsel %vm29_vm0, %v23_v0, 0.0  ;;  %v54_v4 = vsel %vm29_vm0, %v25_v1, 0.0  ;;  %v26_v5 = vld [vmem:[%s7172_s0 + $0x48] sm:$0xff]  ;;  %v51_v6 = vsel %vm29_vm0, %v24_v2, 0.0  ;;  %v27_v8 = vld [vmem:[%s7172_s0 + $0x50] sm:$0xff]  ;;  %v28_v9 = vld [vmem:[%s7172_s0 + $0x58] sm:$0xff] }
   0x3   :  { %49 = vadd.xlane.f32.xlu0 %v48_v3  ;;  %55 = vadd.xlane.f32.xlu1 %v54_v4  ;;  %v57_v7 = vsel %vm29_vm0, %v26_v5, 0.0  ;;  %v60_v10 = vsel %vm29_vm0, %v27_v8, 0.0  ;;  %v63_v11 = vsel %vm29_vm0, %v28_v9, 0.0  ;;  %v17_v40 = vld [vmem:[%s7172_s0] sm:$0xff]  ;;  %v5471_v44 = vld [vmem:[%s7172_s0 + $0x8] sm:$0xff]  ;;  %v5476_v45 = vld [vmem:[%s7172_s0 + $0x10] sm:$0xff] }
   0x4   :  { %v30_v43 = vsel %vm29_vm0, %v17_v40, 0.0  ;;  %v33_v46 = vsel %vm29_vm0, %v5471_v44, 0.0  ;;  %v36_v47 = vsel %vm29_vm0, %v5476_v45, 0.0  ;;  %v5485_v48 = vld [vmem:[%s7172_s0 + $0x18] sm:$0xff]  ;;  %v5490_v49 = vld [vmem:[%s7172_s0 + $0x20] sm:$0xff]  ;;  %v5499_v52 = vld [vmem:[%s7172_s0 + $0x28] sm:$0xff] }
   0x5   :  { %v39_v50 = vsel %vm29_vm0, %v5485_v48, 0.0  ;;  %v42_v51 = vsel %vm29_vm0, %v5490_v49, 0.0  ;;  %v45_v53 = vsel %vm29_vm0, %v5499_v52, 0.0  ;;  %v190_v54 = vld [vmem:[%s7173_s1 + $0x18] sm:$0xff]  ;;  %v189_v55 = vld [vmem:[%s7173_s1 + $0x10] sm:$0xff]  ;;  %v188_v56 = vld [vmem:[%s7173_s1 + $0x8] sm:$0xff] }
   0x6   :  { %4628 = vmatprep.subr.mxu0 %v190_v54  ;;  %v187_v57 = vld [vmem:[%s7173_s1] sm:$0xff]  ;;  %s5371_s14 = smov 84   ;;  %s5372_s15 = smov 80   ;;  %vm2102_vm5 = vcmask 131072   ;;  %vm3436_vm6 = vcmask 253952  }
   0x7   :  { %52 = vadd.xlane.f32.xlu0 %v51_v6  ;;  %58 = vadd.xlane.f32.xlu1 %v57_v7  ;;  %s5373_s16 = smov 120   ;;  %s5374_s17 = smov 76  }
   0x8   :  { %4629 = vmatpush3.msra.mxu0 %v190_v54  ;;  %s5375_s0 = smov 116   ;;  %s5376_s18 = smov 72  }
   0x9   :  { %4630 = vmatprep.subr.mxu0 %v189_v55  ;;  %s5377_s19 = smov 112   ;;  %s5378_s1 = smov 68  }
   0xa   :  { %4631 = vmatpush3.msra.mxu0 %v189_v55  ;;  %s5379_s20 = smov 108   ;;  %s5380_s21 = smov 104  }
   0xb   :  { %61 = vadd.xlane.f32.xlu0 %v60_v10  ;;  %64 = vadd.xlane.f32.xlu1 %v63_v11  ;;  %s5381_s22 = smov 100   ;;  %s5383_s23 = smov 64  }
   0xc   :  { %4632 = vmatprep.subr.mxu0 %v188_v56  ;;  %s5384_s24 = smov 32  }
   0xd   :  { %4633 = vmatpush3.msra.mxu0 %v188_v56 }
   0xe   :  { %4634 = vmatprep.subr.mxu0 %v187_v57 }
   0xf   :  { %4635 = vmatpush3.msra.mxu0 %v187_v57  ;;  %v314_v57 = vld [vmem:[%s7174_s2 + $0x28] sm:$0xff] }
  0x8c   :  { %v50_v12 = vpop.xlane.xlu0 %49  ;;  %v56_v13 = vpop.xlane.xlu1 %55 }
  0x8d   :  { %v73_v14 = vmul.f32 0.03125, %v50_v12  ;;  %v75_v15 = vmul.f32 0.03125, %v56_v13 }
  0x8f   :  { %v5434_v16 = vsub.f32 %v23_v0, %v73_v14  ;;  %v5436_v17 = vsub.f32 %v25_v1, %v75_v15 }
  0x90   :  { %v53_v18 = vpop.xlane.xlu0 %52  ;;  %v59_v19 = vpop.xlane.xlu1 %58 }
  0x91   :  { %v74_v20 = vmul.f32 0.03125, %v53_v18  ;;  %v76_v21 = vmul.f32 0.03125, %v59_v19  ;;  %v97_v22 = vmul.f32 %v5434_v16, %v5434_v16  ;;  %v99_v23 = vmul.f32 %v5436_v17, %v5436_v17 }
  0x93   :  { %v5442_v24 = vsub.f32 %v24_v2, %v74_v20  ;;  %v5444_v25 = vsub.f32 %v26_v5, %v76_v21  ;;  %v121_v26 = vsel %vm29_vm0, %v97_v22, 0.0  ;;  %v127_v29 = vsel %vm29_vm0, %v99_v23, 0.0 }
  0x94   :  { %122 = vadd.xlane.f32.xlu0 %v121_v26  ;;  %v62_v27 = vpop.xlane.xlu0 %61  ;;  %v65_v28 = vpop.xlane.xlu1 %64 }
  0x95   :  { %v77_v30 = vmul.f32 0.03125, %v62_v27  ;;  %v78_v31 = vmul.f32 0.03125, %v65_v28  ;;  %v98_v32 = vmul.f32 %v5442_v24, %v5442_v24  ;;  %v100_v33 = vmul.f32 %v5444_v25, %v5444_v25 }
  0x97   :  { %v5452_v34 = vsub.f32 %v27_v8, %v77_v30  ;;  %v5454_v35 = vsub.f32 %v28_v9, %v78_v31  ;;  %v124_v36 = vsel %vm29_vm0, %v98_v32, 0.0  ;;  %v130_v37 = vsel %vm29_vm0, %v100_v33, 0.0 }
  0x98   :  { %128 = vadd.xlane.f32.xlu0 %v127_v29  ;;  %125 = vadd.xlane.f32.xlu1 %v124_v36 }
  0x99   :  { %v101_v38 = vmul.f32 %v5452_v34, %v5452_v34  ;;  %v102_v39 = vmul.f32 %v5454_v35, %v5454_v35 }
  0x9b   :  { %v133_v41 = vsel %vm29_vm0, %v101_v38, 0.0  ;;  %v136_v42 = vsel %vm29_vm0, %v102_v39, 0.0 }
  0x9c   :  { %131 = vadd.xlane.f32.xlu1 %v130_v37  ;;  %134 = vadd.xlane.f32.xlu0 %v133_v41 }
  0xa0   :  { %137 = vadd.xlane.f32.xlu1 %v136_v42  ;;  %31 = vadd.xlane.f32.xlu0 %v30_v43 }
  0xa4   :  { %34 = vadd.xlane.f32.xlu1 %v33_v46  ;;  %37 = vadd.xlane.f32.xlu0 %v36_v47 }
  0xa8   :  { %40 = vadd.xlane.f32.xlu1 %v39_v50  ;;  %43 = vadd.xlane.f32.xlu0 %v42_v51 }
  0xac   :  { %46 = vadd.xlane.f32.xlu1 %v45_v53 }
 0x11d   :  { %v123_v58 = vpop.xlane.xlu0 %122 }
 0x11e   :  { %v145_v59 = vmul.f32 0.03125, %v123_v58  ;;  %v312_v58 = vld [vmem:[%s7174_s2 + $0x18] sm:$0xff] }
 0x120   :  { %v157_v60 = vadd.f32 1e-05, %v145_v59  ;;  %v7177_v59 = vmov 0.0  }
 0x121   :  { %v126_v61 = vpop.xlane.xlu1 %125  ;;  %v129_v62 = vpop.xlane.xlu0 %128  ;;  %399 = vmatprep.mubr.f32.mxu1 %v7177_v59  ;;  %4645 = vmatprep.subr.mxu0 %v7177_v59 }
 0x122   :  { %5150 = vrsqrt.f32 %v157_v60  ;;  %v146_v63 = vmul.f32 0.03125, %v126_v61  ;;  %v147_v0 = vmul.f32 0.03125, %v129_v62  ;;  %v311_v60 = vld [vmem:[%s7174_s2 + $0x10] sm:$0xff]  ;;  %v310_v61 = vld [vmem:[%s7174_s2 + $0x8] sm:$0xff]  ;;  %v309_v62 = vld [vmem:[%s7174_s2] sm:$0xff] }
 0x124   :  { %v158_v1 = vadd.f32 1e-05, %v146_v63  ;;  %v159_v2 = vadd.f32 1e-05, %v147_v0 }
 0x125   :  { %v132_v3 = vpop.xlane.xlu1 %131  ;;  %v135_v4 = vpop.xlane.xlu0 %134 }
 0x126   :  { %5152 = vrsqrt.f32 %v158_v1  ;;  %v148_v5 = vmul.f32 0.03125, %v132_v3  ;;  %v149_v6 = vmul.f32 0.03125, %v135_v4 }
 0x127   :  { %5154 = vrsqrt.f32 %v159_v2 }
 0x128   :  { %v160_v7 = vadd.f32 1e-05, %v148_v5  ;;  %v161_v8 = vadd.f32 1e-05, %v149_v6 }
 0x129   :  { %v138_v9 = vpop.xlane.xlu1 %137  ;;  %v32_v10 = vpop.xlane.xlu0 %31 }
 0x12a   :  { %5156 = vrsqrt.f32 %v160_v7  ;;  %v150_v11 = vmul.f32 0.03125, %v138_v9  ;;  %v67_v12 = vmul.f32 0.03125, %v32_v10 }
 0x12b   :  { %5158 = vrsqrt.f32 %v161_v8 }
 0x12c   :  { %v162_v13 = vadd.f32 1e-05, %v150_v11  ;;  %v5515_v14 = vsub.f32 %v17_v40, %v67_v12 }
 0x12d   :  { %v35_v15 = vpop.xlane.xlu1 %34  ;;  %v38_v18 = vpop.xlane.xlu0 %37 }
 0x12e   :  { %5160 = vrsqrt.f32 %v162_v13  ;;  %v68_v19 = vmul.f32 0.03125, %v35_v15  ;;  %v69_v20 = vmul.f32 0.03125, %v38_v18  ;;  %v91_v21 = vmul.f32 %v5515_v14, %v5515_v14 }
 0x12f   :  { %v5151_v22 = vpop.eup %5150 }
 0x130   :  { %v5520_v23 = vsub.f32 %v5471_v44, %v68_v19  ;;  %v5523_v26 = vsub.f32 %v5476_v45, %v69_v20  ;;  %v103_v27 = vsel %vm29_vm0, %v91_v21, 0.0  ;;  %v181_v28 = vmul.f32 %v5151_v22, %v5434_v16 }
 0x131   :  { %104 = vadd.xlane.f32.xlu0 %v103_v27  ;;  %v41_v29 = vpop.xlane.xlu1 %40  ;;  %v44_v30 = vpop.xlane.xlu0 %43 }
 0x132   :  { %4636 = vmatprep.mubr.msk.f32.mxu0 %vm29_vm0, %v181_v28  ;;  %v92_v31 = vmul.f32 %v5520_v23, %v5520_v23  ;;  %v70_v32 = vmul.f32 0.03125, %v41_v29  ;;  %v93_v33 = vmul.f32 %v5523_v26, %v5523_v26  ;;  %v71_v36 = vmul.f32 0.03125, %v44_v30 }
 0x133   :  { %v5153_v37 = vpop.eup %5152 }
 0x134   :  { %v5155_v38 = vpop.eup %5154  ;;  %v106_v39 = vsel %vm29_vm0, %v92_v31, 0.0  ;;  %v5534_v40 = vsub.f32 %v5485_v48, %v70_v32  ;;  %v109_v16 = vsel %vm29_vm0, %v93_v33, 0.0  ;;  %v182_v41 = vmul.f32 %v5153_v37, %v5442_v24 }
 0x135   :  { %107 = vadd.xlane.f32.xlu1 %v106_v39  ;;  %110 = vadd.xlane.f32.xlu0 %v109_v16  ;;  %v183_v42 = vmul.f32 %v5155_v38, %v5436_v17  ;;  %v5540_v43 = vsub.f32 %v5490_v49, %v71_v36  ;;  %v47_v44 = vpop.xlane.xlu1 %46 }
 0x136   :  { %4637 = vmatmul.mubr.msk.f32.vlgmr.msra.gmra.mxu0 %vm29_vm0, %v182_v41  ;;  %v94_v45 = vmul.f32 %v5534_v40, %v5534_v40  ;;  %v72_v46 = vmul.f32 0.03125, %v47_v44 }
 0x137   :  { %v5157_v47 = vpop.eup %5156  ;;  %4639 = vmatprep.mubr.msk.f32.mxu0 %vm29_vm0, %v183_v42  ;;  %v95_v24 = vmul.f32 %v5540_v43, %v5540_v43 }
 0x138   :  { %v5159_v48 = vpop.eup %5158  ;;  %v184_v50 = vmul.f32 %v5157_v47, %v5444_v25  ;;  %v112_v17 = vsel %vm29_vm0, %v94_v45, 0.0  ;;  %v5551_v49 = vsub.f32 %v5499_v52, %v72_v46  ;;  %v315_v52 = vld [vmem:[%s7174_s2 + $0x30] sm:$0xff] }
 0x139   :  { %v185_v51 = vmul.f32 %v5159_v48, %v5452_v34  ;;  %113 = vadd.xlane.f32.xlu1 %v112_v17  ;;  %v115_v53 = vsel %vm29_vm0, %v95_v24, 0.0  ;;  %v316_v34 = vld [vmem:[%s7174_s2 + $0x38] sm:$0xff] }
 0x13a   :  { %4640 = vmatmul.mubr.msk.f32.gmra.mxu0 %vm29_vm0, %v184_v50  ;;  %116 = vadd.xlane.f32.xlu0 %v115_v53  ;;  %v96_v54 = vmul.f32 %v5551_v49, %v5551_v49 }
 0x13b   :  { %v5161_v55 = vpop.eup %5160  ;;  %4642 = vmatprep.mubr.msk.f32.mxu0 %vm29_vm0, %v185_v51  ;;  %359 = vmatprep.subr.mxu1 %v316_v34 }
 0x13c   :  { %v186_v25 = vmul.f32 %v5161_v55, %v5454_v35  ;;  %v118_v56 = vsel %vm29_vm0, %v96_v54, 0.0  ;;  %v313_v35 = vld [vmem:[%s7174_s2 + $0x20] sm:$0xff]  ;;  %360 = vmatpush1.msra.mxu1 %v315_v52 }
 0x13d   :  { %119 = vadd.xlane.f32.xlu1 %v118_v56  ;;  %361 = vmatprep.subr.mxu1 %v314_v57 }
 0x13e   :  { %4643 = vmatmul.mubr.msk.f32.gmra.mxu0 %vm29_vm0, %v186_v25  ;;  %362 = vmatpush1.msra.mxu1 %v313_v35 }
 0x13f   :  { %363 = vmatprep.subr.mxu1 %v312_v58  ;;  %4651 = vmatprep.mubr.msk.f32.mxu0 %vm5382_vm1, %v7177_v59 }
 0x140   :  { %364 = vmatpush1.msra.mxu1 %v311_v60 }
 0x141   :  { %365 = vmatprep.subr.mxu1 %v310_v61 }
 0x142   :  { %366 = vmatpush1.msra.mxu1 %v309_v62 }
 0x143   :  { %4675 = vmatprep.subr.mxu1 %v7177_v59 }
 0x1ba   :  { %v105_v63 = vpop.xlane.xlu0 %104 }
 0x1bb   :  { %v139_v0 = vmul.f32 0.03125, %v105_v63 }
 0x1bd   :  { %v151_v1 = vadd.f32 1e-05, %v139_v0 }
 0x1be   :  { %v108_v2 = vpop.xlane.xlu1 %107  ;;  %v111_v3 = vpop.xlane.xlu0 %110 }
 0x1bf   :  { %5162 = vrsqrt.f32 %v151_v1  ;;  %v140_v4 = vmul.f32 0.03125, %v108_v2  ;;  %v141_v5 = vmul.f32 0.03125, %v111_v3 }
 0x1c1   :  { %v152_v6 = vadd.f32 1e-05, %v140_v4  ;;  %v153_v7 = vadd.f32 1e-05, %v141_v5 }
 0x1c2   :  { %v114_v8 = vpop.xlane.xlu1 %113 }
 0x1c3   :  { %5164 = vrsqrt.f32 %v152_v6  ;;  %v142_v9 = vmul.f32 0.03125, %v114_v8  ;;  %v117_v10 = vpop.xlane.xlu0 %116 }
 0x1c4   :  { %5166 = vrsqrt.f32 %v153_v7  ;;  %v143_v12 = vmul.f32 0.03125, %v117_v10 }
 0x1c5   :  { %v154_v11 = vadd.f32 1e-05, %v142_v9 }
 0x1c6   :  { %v120_v13 = vpop.xlane.xlu1 %119  ;;  %v155_v18 = vadd.f32 1e-05, %v143_v12 }
 0x1c7   :  { %5168 = vrsqrt.f32 %v154_v11  ;;  %v144_v15 = vmul.f32 0.03125, %v120_v13 }
 0x1c8   :  { %5170 = vrsqrt.f32 %v155_v18 }
 0x1c9   :  { %v156_v19 = vadd.f32 1e-05, %v144_v15 }
 0x1cb   :  { %5172 = vrsqrt.f32 %v156_v19 }
 0x1cc   :  { %v5163_v20 = vpop.eup %5162 }
 0x1cd   :  { %v175_v21 = vmul.f32 %v5163_v20, %v5515_v14 }
 0x1cf   :  { %4256 = vmatmul.mubr.msk.f32.vlgmr.msra.gmra.mxu1 %vm29_vm0, %v175_v21 }
 0x1d0   :  { %v5165_v22 = vpop.eup %5164  ;;  %405 = vmatprep.mubr.f32.mxu1 %v7177_v59 }
 0x1d1   :  { %v176_v27 = vmul.f32 %v5165_v22, %v5520_v23  ;;  %v5167_v28 = vpop.eup %5166 }
 0x1d2   :  { %v177_v30 = vmul.f32 %v5167_v28, %v5523_v26  ;;  %v5609_v26 = vld [vmem:[%s7175_s3] ss:$0 sm:$0xff] }
 0x1d3   :  { %4257 = vmatmul.mubr.msk.f32.gmra.mxu1 %vm29_vm0, %v176_v27 }
 0x1d4   :  { %v5169_v29 = vpop.eup %5168  ;;  %411 = vmatprep.mubr.f32.mxu1 %v7177_v59 }
 0x1d5   :  { %v178_v14 = vmul.f32 %v5169_v29, %v5534_v40  ;;  %v5171_v31 = vpop.eup %5170 }
 0x1d6   :  { %v179_v23 = vmul.f32 %v5171_v31, %v5540_v43 }
 0x1d7   :  { %4258 = vmatmul.mubr.msk.f32.gmra.mxu1 %vm29_vm0, %v177_v30 }
 0x1d8   :  { %417 = vmatprep.mubr.f32.mxu1 %v7177_v59  ;;  %v5173_v32 = vpop.eup %5172 }
 0x1d9   :  { %v180_v33 = vmul.f32 %v5173_v32, %v5551_v49 }
 0x1db   :  { %4259 = vmatmul.mubr.msk.f32.gmra.mxu1 %vm29_vm0, %v178_v14 }
 0x1dc   :  { %423 = vmatprep.mubr.f32.mxu1 %v7177_v59 }
 0x1df   :  { %4260 = vmatmul.mubr.msk.f32.gmra.mxu1 %vm29_vm0, %v179_v23 }
 0x1e0   :  { %429 = vmatprep.mubr.f32.mxu1 %v7177_v59 }
 0x1e3   :  { %4261 = vmatmul.mubr.msk.f32.gmra.mxu1 %vm29_vm0, %v180_v33 }
 0x1e4   :  { %4681 = vmatprep.mubr.msk.f32.mxu1 %vm5382_vm1, %v7177_v59 }
 0x1f6   :  { %v4638_v36 = vpop.f32.mrf.mxu0 }
 0x1f7   :  { %v5612_v37 = vadd.f32 %v4638_v36, %v5609_v26 }
 0x1f8   :  { %v280_v38 = vpop.f32.mrf.mxu0 }
 0x1f9   :  { %441 = vrot.lane.b32.xlu1 %v5612_v37, %s5367_s10  ;;  %546 = vrot.lane.b32.xlu0 %v5612_v37, %s5368_s11  ;;  %v5639_v39 = vadd.f32 %v5609_v26, %v280_v38 }
 0x1fa   :  { %v4641_v40 = vpop.f32.mrf.mxu0 }
 0x1fb   :  { %v5666_v16 = vadd.f32 %v4641_v40, %v5609_v26 }
 0x1fc   :  { %v290_v41 = vpop.f32.mrf.mxu0 }
 0x1fd   :  { %650 = vrot.lane.b32.xlu1 %v5612_v37, %s5369_s12  ;;  %540 = vrot.lane.b32.xlu0 %v5612_v37, %s5370_s13  ;;  %v5677_v42 = vadd.f32 %v5609_v26, %v290_v41 }
 0x1fe   :  { %v4644_v43 = vpop.f32.mrf.mxu0 }
 0x1ff   :  { %v5724_v44 = vadd.f32 %v4644_v43, %v5609_v26 }
 0x200   :  { %v300_v45 = vpop.f32.mrf.mxu0 }
 0x201   :  { %754 = vrot.lane.b32.xlu1 %v5612_v37, %s5371_s14  ;;  %858 = vrot.lane.b32.xlu0 %v5612_v37, %s5372_s15  ;;  %v5747_v46 = vadd.f32 %v5609_v26, %v300_v45 }
 0x205   :  { %644 = vrot.lane.b32.xlu1 %v5612_v37, %s5373_s16  ;;  %962 = vrot.lane.b32.xlu0 %v5612_v37, %s5374_s17 }
 0x209   :  { %748 = vrot.lane.b32.xlu1 %v5612_v37, %s5375_s0  ;;  %1066 = vrot.lane.b32.xlu0 %v5612_v37, %s5376_s18 }
 0x20d   :  { %852 = vrot.lane.b32.xlu1 %v5612_v37, %s5377_s19  ;;  %1170 = vrot.lane.b32.xlu0 %v5612_v37, %s5378_s1 }
 0x211   :  { %956 = vrot.lane.b32.xlu1 %v5612_v37, %s5379_s20  ;;  %648 = vrot.lane.b32.xlu0 %v5639_v39, %s5369_s12 }
 0x215   :  { %1060 = vrot.lane.b32.xlu1 %v5612_v37, %s5380_s21  ;;  %752 = vrot.lane.b32.xlu0 %v5639_v39, %s5371_s14 }
 0x219   :  { %1164 = vrot.lane.b32.xlu1 %v5612_v37, %s5381_s22  ;;  %856 = vrot.lane.b32.xlu0 %v5639_v39, %s5372_s15 }
 0x21d   :  { %439 = vrot.lane.b32.xlu1 %v5639_v39, %s5367_s10  ;;  %960 = vrot.lane.b32.xlu0 %v5639_v39, %s5374_s17 }
 0x221   :  { %544 = vrot.lane.b32.xlu1 %v5639_v39, %s5368_s11  ;;  %1064 = vrot.lane.b32.xlu0 %v5639_v39, %s5376_s18 }
 0x225   :  { %538 = vrot.lane.b32.xlu1 %v5639_v39, %s5370_s13  ;;  %1168 = vrot.lane.b32.xlu0 %v5639_v39, %s5378_s1 }
 0x229   :  { %642 = vrot.lane.b32.xlu1 %v5639_v39, %s5373_s16  ;;  %1269 = vrot.lane.b32.xlu0 %v5666_v16, %s5367_s10 }
 0x22d   :  { %746 = vrot.lane.b32.xlu1 %v5639_v39, %s5375_s0  ;;  %1373 = vrot.lane.b32.xlu0 %v5666_v16, %s5368_s11 }
 0x231   :  { %850 = vrot.lane.b32.xlu1 %v5639_v39, %s5377_s19  ;;  %443 = vrot.lane.b32.xlu0 %v5677_v42, %s5367_s10 }
 0x235   :  { %954 = vrot.lane.b32.xlu1 %v5639_v39, %s5379_s20  ;;  %1367 = vrot.lane.b32.xlu0 %v5666_v16, %s5370_s13 }
 0x239   :  { %1058 = vrot.lane.b32.xlu1 %v5639_v39, %s5380_s21  ;;  %1477 = vrot.lane.b32.xlu0 %v5666_v16, %s5369_s12 }
 0x23d   :  { %1162 = vrot.lane.b32.xlu1 %v5639_v39, %s5381_s22  ;;  %1581 = vrot.lane.b32.xlu0 %v5666_v16, %s5371_s14 }
 0x241   :  { %548 = vrot.lane.b32.xlu1 %v5677_v42, %s5368_s11  ;;  %652 = vrot.lane.b32.xlu0 %v5677_v42, %s5369_s12 }
 0x245   :  { %1471 = vrot.lane.b32.xlu1 %v5666_v16, %s5373_s16  ;;  %756 = vrot.lane.b32.xlu0 %v5677_v42, %s5371_s14 }
 0x249   :  { %1575 = vrot.lane.b32.xlu1 %v5666_v16, %s5375_s0  ;;  %860 = vrot.lane.b32.xlu0 %v5677_v42, %s5372_s15 }
 0x24d   :  { %542 = vrot.lane.b32.xlu1 %v5677_v42, %s5370_s13  ;;  %964 = vrot.lane.b32.xlu0 %v5677_v42, %s5374_s17 }
 0x251   :  { %646 = vrot.lane.b32.xlu1 %v5677_v42, %s5373_s16  ;;  %1068 = vrot.lane.b32.xlu0 %v5677_v42, %s5376_s18 }
 0x255   :  { %750 = vrot.lane.b32.xlu1 %v5677_v42, %s5375_s0  ;;  %1172 = vrot.lane.b32.xlu0 %v5677_v42, %s5378_s1 }
 0x259   :  { %854 = vrot.lane.b32.xlu1 %v5677_v42, %s5377_s19  ;;  %1273 = vrot.lane.b32.xlu0 %v5724_v44, %s5367_s10 }
 0x25d   :  { %958 = vrot.lane.b32.xlu1 %v5677_v42, %s5379_s20  ;;  %1377 = vrot.lane.b32.xlu0 %v5724_v44, %s5368_s11 }
 0x261   :  { %1062 = vrot.lane.b32.xlu1 %v5677_v42, %s5380_s21  ;;  %1585 = vrot.lane.b32.xlu0 %v5724_v44, %s5371_s14 }
 0x265   :  { %1166 = vrot.lane.b32.xlu1 %v5677_v42, %s5381_s22  ;;  %1371 = vrot.lane.b32.xlu0 %v5724_v44, %s5370_s13 }
 0x269   :  { %1481 = vrot.lane.b32.xlu1 %v5724_v44, %s5369_s12  ;;  %1475 = vrot.lane.b32.xlu0 %v5724_v44, %s5373_s16 }
 0x26b   :  { %v5749_v47 = vpop.permute.xlu1 %441  ;;  %v5751_v24 = vpop.permute.xlu0 %546 }
 0x26d   :  { %1689 = vrot.lane.b32.xlu1 %v5724_v44, %s5372_s15  ;;  %1271 = vrot.lane.b32.xlu0 %v5747_v46, %s5367_s10 }
 0x26f   :  { %v5757_v48 = vpop.permute.xlu1 %650  ;;  %v5759_v50 = vpop.permute.xlu0 %540 }
 0x271   :  { %1793 = vrot.lane.b32.xlu1 %v5724_v44, %s5374_s17  ;;  %1375 = vrot.lane.b32.xlu0 %v5747_v46, %s5368_s11 }
 0x273   :  { %v5765_v17 = vpop.permute.xlu1 %754  ;;  %v5767_v49 = vpop.permute.xlu0 %858 }
 0x275   :  { %1679 = vrot.lane.b32.xlu1 %v5666_v16, %s5377_s19  ;;  %1685 = vrot.lane.b32.xlu0 %v5666_v16, %s5372_s15 }
 0x277   :  { %v5773_v51 = vpop.permute.xlu1 %644  ;;  %v5775_v53 = vpop.permute.xlu0 %962 }
 0x279   :  { %1897 = vrot.lane.b32.xlu1 %v5724_v44, %s5376_s18  ;;  %1579 = vrot.lane.b32.xlu0 %v5724_v44, %s5375_s0 }
 0x27b   :  { %v5781_v54 = vpop.permute.xlu1 %748  ;;  %v5783_v55 = vpop.permute.xlu0 %1066 }
 0x27d   :  { %1479 = vrot.lane.b32.xlu1 %v5747_v46, %s5369_s12  ;;  %1789 = vrot.lane.b32.xlu0 %v5666_v16, %s5374_s17 }
 0x27f   :  { %v5789_v25 = vpop.permute.xlu1 %852  ;;  %v5791_v56 = vpop.permute.xlu0 %1170 }
 0x281   :  { %1369 = vrot.lane.b32.xlu1 %v5747_v46, %s5370_s13  ;;  %1473 = vrot.lane.b32.xlu0 %v5747_v46, %s5373_s16 }
 0x283   :  { %v5797_v34 = vpop.permute.xlu1 %956  ;;  %v5799_v52 = vpop.permute.xlu0 %648 }
 0x285   :  { %1583 = vrot.lane.b32.xlu1 %v5747_v46, %s5371_s14  ;;  %1687 = vrot.lane.b32.xlu0 %v5747_v46, %s5372_s15 }
 0x287   :  { %v5805_v57 = vpop.permute.xlu1 %1060  ;;  %v5807_v35 = vpop.permute.xlu0 %752 }
 0x289   :  { %1783 = vrot.lane.b32.xlu1 %v5666_v16, %s5379_s20  ;;  %1683 = vrot.lane.b32.xlu0 %v5724_v44, %s5377_s19 }
 0x28b   :  { %v5813_v58 = vpop.permute.xlu1 %1164  ;;  %v5815_v60 = vpop.permute.xlu0 %856 }
 0x28d   :  { %1577 = vrot.lane.b32.xlu1 %v5747_v46, %s5375_s0  ;;  %1893 = vrot.lane.b32.xlu0 %v5666_v16, %s5376_s18 }
 0x28f   :  { %v440_v61 = vpop.permute.xlu1 %439  ;;  %v5821_v62 = vpop.permute.xlu0 %960 }
 0x290   :  { %v5839_v3 = vpop.f32.mrf.mxu1 }
 0x291   :  { %1791 = vrot.lane.b32.xlu1 %v5747_v46, %s5374_s17  ;;  %1681 = vrot.lane.b32.xlu0 %v5747_v46, %s5377_s19 }
 0x292   :  { %v5849_v6 = vpop.f32.mrf.mxu1 }
 0x293   :  { %v5827_v63 = vpop.permute.xlu1 %544  ;;  %v5829_v0 = vpop.permute.xlu0 %1064  ;;  %7201 = vst [vmem:[#allocation2_spill] sm:$0xff] %v5849_v6 }
 0x294   :  { %v5859_v9 = vpop.f32.mrf.mxu1 }
 0x295   :  { %2001 = vrot.lane.b32.xlu1 %v5724_v44, %s5378_s1  ;;  %1895 = vrot.lane.b32.xlu0 %v5747_v46, %s5376_s18 }
 0x296   :  { %v5867_v12 = vpop.f32.mrf.mxu1 }
 0x297   :  { %v5835_v1 = vpop.permute.xlu1 %538  ;;  %v5837_v2 = vpop.permute.xlu0 %1168  ;;  %7202 = vst [vmem:[#allocation3_spill] sm:$0xff] %v5867_v12 }
 0x298   :  { %v5879_v18 = vpop.f32.mrf.mxu1 }
 0x299   :  { %1785 = vrot.lane.b32.xlu1 %v5747_v46, %s5379_s20  ;;  %1787 = vrot.lane.b32.xlu0 %v5724_v44, %s5379_s20 }
 0x29a   :  { %v5940_v32 = vpop.f32.mrf.mxu1 }
 0x29b   :  { %v5845_v4 = vpop.permute.xlu1 %642  ;;  %v5847_v5 = vpop.permute.xlu0 %1269  ;;  %7203 = vst [vmem:[#allocation4_spill] sm:$0xff] %v5940_v32 }
 0x29c   :  { %v6004_v41 = vpop.f32.mrf.mxu1 }
 0x29d   :  { %1999 = vrot.lane.b32.xlu1 %v5747_v46, %s5378_s1  ;;  %1997 = vrot.lane.b32.xlu0 %v5666_v16, %s5378_s1  ;;  %7204 = vst [vmem:[#allocation5_spill] sm:$0xff] %v6004_v41 }
 0x29e   :  { %v6020_v45 = vpop.f32.mrf.mxu1 }
 0x29f   :  { %v5855_v7 = vpop.permute.xlu1 %746  ;;  %v5857_v8 = vpop.permute.xlu0 %1373 }
 0x2a1   :  { %1887 = vrot.lane.b32.xlu1 %v5666_v16, %s5380_s21  ;;  %1991 = vrot.lane.b32.xlu0 %v5666_v16, %s5381_s22 }
 0x2a3   :  { %v5865_v10 = vpop.permute.xlu1 %850  ;;  %v444_v11 = vpop.permute.xlu0 %443 }
 0x2a4   :  { %4646 = vmatpush3.xpose.msk.msra.mxu0 %vm445_vm2, %v444_v11 }
 0x2a5   :  { %1889 = vrot.lane.b32.xlu1 %v5747_v46, %s5380_s21  ;;  %1993 = vrot.lane.b32.xlu0 %v5747_v46, %s5381_s22 }
 0x2a6   :  { %4647 = vmatprep.subr.mxu0 %v7177_v59 }
 0x2a7   :  { %v5875_v13 = vpop.permute.xlu1 %954  ;;  %v5877_v15 = vpop.permute.xlu0 %1367 }
 0x2a8   :  { %4648 = vmatpush3.xpose.msk.msra.mxu0 %vm445_vm2, %v5749_v47 }
 0x2a9   :  { %1891 = vrot.lane.b32.xlu1 %v5724_v44, %s5380_s21  ;;  %2633 = vrot.lane.b32.xlu0 %v5879_v18, %s5367_s10 }
 0x2aa   :  { %4649 = vmatprep.subr.mxu0 %v7177_v59 }
 0x2ab   :  { %v5888_v19 = vpop.permute.xlu1 %1058  ;;  %v5890_v20 = vpop.permute.xlu0 %1477 }
 0x2ac   :  { %4650 = vmatpush3.xpose.msk.msra.mxu0 %vm445_vm2, %v440_v61 }
 0x2ad   :  { %1995 = vrot.lane.b32.xlu1 %v5724_v44, %s5381_s22  ;;  %2629 = vrot.lane.b32.xlu0 %v5839_v3, %s5367_s10 }
 0x2ae   :  { %4660 = vmatprep.subr.mxu0 %v7177_v59 }
 0x2af   :  { %v5898_v21 = vpop.permute.xlu1 %1162  ;;  %4652 = vmatmul.mubr.msk.f32.vlgmr.msra.gmra.mxu0 %vm445_vm2, %v5639_v39  ;;  %v5902_v22 = vpop.permute.xlu0 %1581 }
 0x2b0   :  { %4654 = vmatprep.mubr.msk.f32.mxu0 %vm5382_vm1, %v7177_v59 }
 0x2b1   :  { %2631 = vrot.lane.b32.xlu1 %v5859_v9, %s5367_s10  ;;  %2822 = vrot.lane.b32.xlu0 %v5859_v9, %s5383_s23 }
 0x2b3   :  { %v549_v27 = vpop.permute.xlu1 %548  ;;  %4655 = vmatmul.mubr.msk.f32.gmra.mxu0 %vm445_vm2, %v5612_v37  ;;  %v653_v28 = vpop.permute.xlu0 %652 }
 0x2b4   :  { %4661 = vmatpush3.xpose.msk.msra.mxu0 %vm445_vm2, %v549_v27  ;;  %4676 = vmatpush3.xpose.msk.msra.mxu1 %vm445_vm2, %v653_v28 }
 0x2b5   :  { %2824 = vrot.lane.b32.xlu1 %v5879_v18, %s5383_s23  ;;  %2820 = vrot.lane.b32.xlu0 %v5839_v3, %s5383_s23 }
 0x2b6   :  { %4657 = vmatprep.mubr.msk.f32.mxu0 %vm5382_vm1, %v7177_v59  ;;  %4662 = vmatprep.subr.mxu0 %v7177_v59 }
 0x2b7   :  { %v5920_v29 = vpop.permute.xlu1 %1471  ;;  %4658 = vmatmul.mubr.msk.f32.gmra.mxu0 %vm445_vm2, %v5677_v42  ;;  %4677 = vmatprep.subr.mxu1 %v7177_v59  ;;  %v757_v30 = vpop.permute.xlu0 %756 }
 0x2b8   :  { %4663 = vmatpush3.xpose.msk.msra.mxu0 %vm445_vm2, %v5751_v24  ;;  %4678 = vmatpush3.xpose.msk.msra.mxu1 %vm445_vm2, %v5757_v48  ;;  %v6038_v48 = vpop.f32.mrf.mxu1 }
 0x2b9   :  { %2926 = vrot.lane.b32.xlu1 %v5879_v18, %s5384_s24  ;;  %2924 = vrot.lane.b32.xlu0 %v5859_v9, %s5384_s24  ;;  %7205 = vst [vmem:[#allocation6_spill] sm:$0xff] %v6038_v48 }
 0x2ba   :  { %4664 = vmatprep.subr.mxu0 %v7177_v59  ;;  %4679 = vmatprep.subr.mxu1 %v7177_v59 }
 0x2bb   :  { %v5934_v14 = vpop.permute.xlu1 %1575  ;;  %v861_v31 = vpop.permute.xlu0 %860  ;;  %4666 = vmatprep.mubr.msk.f32.mxu0 %vm5382_vm1, %v7177_v59 }
 0x2bc   :  { %4665 = vmatpush3.xpose.msk.msra.mxu0 %vm445_vm2, %v5827_v63  ;;  %4680 = vmatpush3.xpose.msk.msra.mxu1 %vm445_vm2, %v5799_v52 }
 0x2bd   :  { %2922 = vrot.lane.b32.xlu1 %v5839_v3, %s5384_s24  ;;  %3125 = vrot.lane.b32.xlu0 %v5940_v32, %s5367_s10 }
 0x2be   :  { %4690 = vmatprep.subr.mxu0 %v7177_v59  ;;  %4705 = vmatprep.subr.mxu1 %v7177_v59 }
 0x2bf   :  { %v543_v23 = vpop.permute.xlu1 %542  ;;  %4667 = vmatmul.mubr.msk.f32.vlgmr.msra.gmra.mxu0 %vm445_vm2, %v5835_v1  ;;  %4682 = vmatmul.mubr.msk.f32.vlgmr.msra.gmra.mxu1 %vm445_vm2, %v5845_v4  ;;  %v965_v33 = vpop.permute.xlu0 %964 }
 0x2c0   :  { %4691 = vmatpush3.xpose.msk.msra.mxu0 %vm445_vm2, %v757_v30  ;;  %4706 = vmatpush3.xpose.msk.msra.mxu1 %vm445_vm2, %v861_v31 }
 0x2c1   :  { %3123 = vrot.lane.b32.xlu1 %v5867_v12, %s5367_s10  ;;  %3121 = vrot.lane.b32.xlu0 %v5849_v6, %s5367_s10 }
 0x2c2   :  { %4669 = vmatprep.mubr.msk.f32.mxu0 %vm5382_vm1, %v7177_v59  ;;  %4684 = vmatprep.mubr.msk.f32.mxu1 %vm5382_vm1, %v7177_v59 }
 0x2c3   :  { %v647_v26 = vpop.permute.xlu1 %646  ;;  %4670 = vmatmul.mubr.msk.f32.gmra.mxu0 %vm445_vm2, %v5759_v50  ;;  %4685 = vmatmul.mubr.msk.f32.gmra.mxu1 %vm445_vm2, %v5773_v51  ;;  %v1069_v36 = vpop.permute.xlu0 %1068 }
 0x2c4   :  { %4692 = vmatprep.subr.mxu0 %v7177_v59  ;;  %4707 = vmatprep.subr.mxu1 %v7177_v59 }
 0x2c5   :  { %4693 = vmatpush3.xpose.msk.msra.mxu0 %vm445_vm2, %v5765_v17  ;;  %4708 = vmatpush3.xpose.msk.msra.mxu1 %vm445_vm2, %v5767_v49  ;;  %v6056_v49 = vpop.f32.mrf.mxu1 }
 0x2c6   :  { %3227 = vrot.lane.b32.xlu1 %v5940_v32, %s5383_s23  ;;  %3329 = vrot.lane.b32.xlu0 %v5940_v32, %s5384_s24 }
 0x2c7   :  { %v751_v37 = vpop.permute.xlu1 %750  ;;  %4672 = vmatprep.mubr.msk.f32.mxu0 %vm5382_vm1, %v7177_v59  ;;  %4687 = vmatprep.mubr.msk.f32.mxu1 %vm5382_vm1, %v7177_v59  ;;  %v1173_v38 = vpop.permute.xlu0 %1172 }
 0x2c8   :  { %4673 = vmatmul.mubr.msk.f32.gmra.mxu0 %vm445_vm2, %v543_v23  ;;  %4688 = vmatmul.mubr.msk.f32.gmra.mxu1 %vm445_vm2, %v647_v26 }
 0x2c9   :  { %4694 = vmatprep.subr.mxu0 %v7177_v59  ;;  %4709 = vmatprep.subr.mxu1 %v7177_v59 }
 0x2ca   :  { %4695 = vmatpush3.xpose.msk.msra.mxu0 %vm445_vm2, %v5807_v35  ;;  %4710 = vmatpush3.xpose.msk.msra.mxu1 %vm445_vm2, %v5815_v60 }
 0x2cb   :  { %v855_v39 = vpop.permute.xlu1 %854  ;;  %3225 = vrot.lane.b32.xlu1 %v5867_v12, %s5383_s23  ;;  %3223 = vrot.lane.b32.xlu0 %v5849_v6, %s5383_s23  ;;  %v1274_v40 = vpop.permute.xlu0 %1273 }
 0x2cc   :  { %4696 = vmatprep.mubr.msk.f32.mxu0 %vm5382_vm1, %v7177_v59  ;;  %4711 = vmatprep.mubr.msk.f32.mxu1 %vm5382_vm1, %v7177_v59 }
 0x2cd   :  { %4697 = vmatmul.mubr.msk.f32.vlgmr.msra.gmra.mxu0 %vm445_vm2, %v5855_v7  ;;  %4712 = vmatmul.mubr.msk.f32.vlgmr.msra.gmra.mxu1 %vm445_vm2, %v5865_v10 }
 0x2ce   :  { %4720 = vmatprep.subr.mxu0 %v7177_v59  ;;  %4735 = vmatprep.subr.mxu1 %v7177_v59 }
 0x2cf   :  { %v959_v42 = vpop.permute.xlu1 %958  ;;  %4721 = vmatpush3.xpose.msk.msra.mxu0 %vm445_vm2, %v965_v33  ;;  %4736 = vmatpush3.xpose.msk.msra.mxu1 %vm445_vm2, %v1069_v36  ;;  %v6010_v43 = vpop.permute.xlu0 %1377 }
 0x2d0   :  { %3325 = vrot.lane.b32.xlu1 %v5849_v6, %s5384_s24  ;;  %3327 = vrot.lane.b32.xlu0 %v5867_v12, %s5384_s24 }
 0x2d1   :  { %4699 = vmatprep.mubr.msk.f32.mxu0 %vm5382_vm1, %v7177_v59  ;;  %4714 = vmatprep.mubr.msk.f32.mxu1 %vm5382_vm1, %v7177_v59 }
 0x2d2   :  { %4700 = vmatmul.mubr.msk.f32.gmra.mxu0 %vm445_vm2, %v5781_v54  ;;  %4715 = vmatmul.mubr.msk.f32.gmra.mxu1 %vm445_vm2, %v5789_v25  ;;  %v6074_v54 = vpop.f32.mrf.mxu1 }
 0x2d3   :  { %v1063_v47 = vpop.permute.xlu1 %1062  ;;  %4722 = vmatprep.subr.mxu0 %v7177_v59  ;;  %4737 = vmatprep.subr.mxu1 %v7177_v59  ;;  %v6028_v24 = vpop.permute.xlu0 %1585  ;;  %7206 = vst [vmem:[#allocation7_spill] sm:$0xff] %v6074_v54 }
 0x2d4   :  { %4723 = vmatpush3.xpose.msk.msra.mxu0 %vm445_vm2, %v5775_v53  ;;  %4738 = vmatpush3.xpose.msk.msra.mxu1 %vm445_vm2, %v5783_v55  ;;  %v6092_v52 = vpop.f32.mrf.mxu1 }
 0x2d5   :  { %3631 = vrot.lane.b32.xlu1 %v6004_v41, %s5383_s23  ;;  %3441 = vrot.lane.b32.xlu0 %v6004_v41, %s5367_s10  ;;  %7207 = vst [vmem:[#allocation8_spill] sm:$0xff] %v6092_v52 }
 0x2d6   :  { %4702 = vmatprep.mubr.msk.f32.mxu0 %vm5382_vm1, %v7177_v59  ;;  %4717 = vmatprep.mubr.msk.f32.mxu1 %vm5382_vm1, %v7177_v59 }
 0x2d7   :  { %v6044_v50 = vpop.permute.xlu1 %1166  ;;  %4703 = vmatmul.mubr.msk.f32.gmra.mxu0 %vm445_vm2, %v751_v37  ;;  %4718 = vmatmul.mubr.msk.f32.gmra.mxu1 %vm445_vm2, %v855_v39  ;;  %v6048_v17 = vpop.permute.xlu0 %1371 }
 0x2d8   :  { %4724 = vmatprep.subr.mxu0 %v7177_v59  ;;  %4739 = vmatprep.subr.mxu1 %v7177_v59 }
 0x2d9   :  { %4725 = vmatpush3.xpose.msk.msra.mxu0 %vm445_vm2, %v5821_v62  ;;  %4740 = vmatpush3.xpose.msk.msra.mxu1 %vm445_vm2, %v5829_v0 }
 0x2da   :  { %3735 = vrot.lane.b32.xlu1 %v6038_v48, %s5384_s24  ;;  %3733 = vrot.lane.b32.xlu0 %v6004_v41, %s5384_s24 }
 0x2db   :  { %v1482_v51 = vpop.permute.xlu1 %1481  ;;  %4726 = vmatprep.mubr.msk.f32.mxu0 %vm5382_vm1, %v7177_v59  ;;  %4741 = vmatprep.mubr.msk.f32.mxu1 %vm5382_vm1, %v7177_v59  ;;  %v6066_v53 = vpop.permute.xlu0 %1475 }
 0x2dc   :  { %4727 = vmatmul.mubr.msk.f32.vlgmr.msra.gmra.mxu0 %vm445_vm2, %v5875_v13  ;;  %4742 = vmatmul.mubr.msk.f32.vlgmr.msra.gmra.mxu1 %vm445_vm2, %v5888_v19 }
 0x2dd   :  { %4750 = vmatprep.subr.mxu0 %v7177_v59  ;;  %4765 = vmatprep.subr.mxu1 %v7177_v59 }
 0x2de   :  { %4751 = vmatpush3.xpose.msk.msra.mxu0 %vm445_vm2, %v1173_v38  ;;  %4766 = vmatpush3.xpose.msk.msra.mxu1 %vm445_vm2, %v1274_v40 }
 0x2df   :  { %v6078_v55 = vpop.permute.xlu1 %1689  ;;  %3635 = vrot.lane.b32.xlu1 %v6074_v54, %s5383_s23  ;;  %3443 = vrot.lane.b32.xlu0 %v6038_v48, %s5367_s10  ;;  %v1272_v25 = vpop.permute.xlu0 %1271 }
 0x2e0   :  { %4729 = vmatprep.mubr.msk.f32.mxu0 %vm5382_vm1, %v7177_v59  ;;  %4744 = vmatprep.mubr.msk.f32.mxu1 %vm5382_vm1, %v7177_v59 }
 0x2e1   :  { %4730 = vmatmul.mubr.msk.f32.gmra.mxu0 %vm445_vm2, %v5797_v34  ;;  %4745 = vmatmul.mubr.msk.f32.gmra.mxu1 %vm445_vm2, %v5805_v57 }
 0x2e2   :  { %4752 = vmatprep.subr.mxu0 %v7177_v59  ;;  %4732 = vmatprep.mubr.msk.f32.mxu0 %vm5382_vm1, %v7177_v59 }
 0x2e3   :  { %v6097_v35 = vpop.permute.xlu1 %1793  ;;  %4753 = vmatpush3.xpose.msk.msra.mxu0 %vm445_vm2, %v5791_v56  ;;  %3936 = vrot.lane.b32.xlu1 %v6092_v52, %s5367_s10  ;;  %v1376_v60 = vpop.permute.xlu0 %1375 }
 0x2e4   :  { %3633 = vrot.lane.b32.xlu0 %v6038_v48, %s5383_s23  ;;  %4747 = vmatprep.mubr.msk.f32.mxu1 %vm5382_vm1, %v7177_v59 }
 0x2e5   :  { %4733 = vmatmul.mubr.msk.f32.gmra.mxu0 %vm445_vm2, %v959_v42  ;;  %4748 = vmatmul.mubr.msk.f32.gmra.mxu1 %vm445_vm2, %v1063_v47 }
 0x2e6   :  { %4754 = vmatprep.subr.mxu0 %v7177_v59  ;;  %4767 = vmatprep.subr.mxu1 %v7177_v59 }
 0x2e7   :  { %v6111_v34 = vpop.permute.xlu1 %1679  ;;  %4755 = vmatpush3.xpose.msk.msra.mxu0 %vm445_vm2, %v5837_v2  ;;  %4768 = vmatpush3.xpose.msk.msra.mxu1 %vm445_vm2, %v1272_v25  ;;  %v6116_v56 = vpop.permute.xlu0 %1685 }
 0x2e8   :  { %3445 = vrot.lane.b32.xlu0 %v6074_v54, %s5367_s10  ;;  %4756 = vmatprep.mubr.msk.f32.mxu0 %vm5382_vm1, %v7177_v59 }
 0x2e9   :  { %4769 = vmatprep.subr.mxu1 %v7177_v59  ;;  %4780 = vmatprep.subr.mxu0 %v7177_v59 }
 0x2ea   :  { %4757 = vmatmul.mubr.msk.f32.vlgmr.msra.gmra.mxu0 %vm445_vm2, %v5898_v21  ;;  %4771 = vmatprep.mubr.msk.f32.mxu1 %vm5382_vm1, %v7177_v59 }
 0x2eb   :  { %v6128_v57 = vpop.permute.xlu1 %1897  ;;  %4770 = vmatpush3.xpose.msk.msra.mxu1 %vm445_vm2, %v5847_v5  ;;  %4781 = vmatpush3.xpose.msk.msra.mxu0 %vm445_vm2, %v6010_v43  ;;  %v6134_v61 = vpop.permute.xlu0 %1579 }
 0x2ec   :  { %3737 = vrot.lane.b32.xlu0 %v6074_v54, %s5384_s24  ;;  %4759 = vmatprep.mubr.msk.f32.mxu0 %vm5382_vm1, %v7177_v59 }
 0x2ed   :  { %4782 = vmatprep.subr.mxu0 %v7177_v59  ;;  %4795 = vmatprep.subr.mxu1 %v7177_v59 }
 0x2ee   :  { %4760 = vmatmul.mubr.msk.f32.gmra.mxu0 %vm445_vm2, %v5813_v58  ;;  %4772 = vmatmul.mubr.msk.f32.vlgmr.msra.gmra.mxu1 %vm445_vm2, %v5666_v16 }
 0x2ef   :  { %v1480_v62 = vpop.permute.xlu1 %1479  ;;  %4783 = vmatpush3.xpose.msk.msra.mxu0 %vm445_vm2, %v1376_v60  ;;  %4796 = vmatpush3.xpose.msk.msra.mxu1 %vm445_vm2, %v1482_v51  ;;  %v6148_v63 = vpop.permute.xlu0 %1789 }
 0x2f0   :  { %4762 = vmatprep.mubr.msk.f32.mxu0 %vm5382_vm1, %v7177_v59  ;;  %4774 = vmatprep.mubr.msk.f32.mxu1 %vm5382_vm1, %v7177_v59 }
 0x2f1   :  { %4784 = vmatprep.subr.mxu0 %v7177_v59  ;;  %4797 = vmatprep.subr.mxu1 %v7177_v59 }
 0x2f2   :  { %4763 = vmatmul.mubr.msk.f32.gmra.mxu0 %vm445_vm2, %v6044_v50  ;;  %4775 = vmatmul.mubr.msk.f32.gmra.mxu1 %vm445_vm2, %v5747_v46 }
 0x2f3   :  { %v1370_v16 = vpop.permute.xlu1 %1369  ;;  %4785 = vmatpush3.xpose.msk.msra.mxu0 %vm445_vm2, %v5857_v8  ;;  %4777 = vmatprep.mubr.msk.f32.mxu1 %vm5382_vm1, %v7177_v59  ;;  %v1474_v58 = vpop.permute.xlu0 %1473 }
 0x2f4   :  { %4786 = vmatprep.mubr.msk.f32.mxu0 %vm5382_vm1, %v7177_v59  ;;  %4810 = vmatprep.subr.mxu0 %v7177_v59 }
 0x2f5   :  { %4798 = vmatpush3.xpose.msk.msra.mxu1 %vm445_vm2, %v1480_v62 }
 0x2f6   :  { %4778 = vmatmul.mubr.msk.f32.gmra.mxu1 %vm445_vm2, %v5724_v44  ;;  %4787 = vmatmul.mubr.msk.f32.vlgmr.msra.gmra.mxu0 %vm445_vm2, %v5877_v15 }
 0x2f7   :  { %v1584_v46 = vpop.permute.xlu1 %1583  ;;  %4811 = vmatpush3.xpose.msk.msra.mxu0 %vm445_vm2, %v6028_v24  ;;  %4789 = vmatprep.mubr.msk.f32.mxu0 %vm5382_vm1, %v7177_v59  ;;  %v1688_v0 = vpop.permute.xlu0 %1687 }
 0x2f8   :  { %4799 = vmatprep.subr.mxu1 %v7177_v59  ;;  %4801 = vmatprep.mubr.msk.f32.mxu1 %vm5382_vm1, %v7177_v59 }
 0x2f9   :  { %4800 = vmatpush3.xpose.msk.msra.mxu1 %vm445_vm2, %v5890_v20  ;;  %4812 = vmatprep.subr.mxu0 %v7177_v59 }
 0x2fa   :  { %4790 = vmatmul.mubr.msk.f32.gmra.mxu0 %vm445_vm2, %v1370_v16  ;;  %4825 = vmatprep.subr.mxu1 %v7177_v59 }
 0x2fb   :  { %v1784_v44 = vpop.permute.xlu1 %1783  ;;  %4792 = vmatprep.mubr.msk.f32.mxu0 %vm5382_vm1, %v7177_v59  ;;  %4813 = vmatpush3.xpose.msk.msra.mxu0 %vm445_vm2, %v1584_v46  ;;  %v1684_v1 = vpop.permute.xlu0 %1683 }
 0x2fc   :  { %4802 = vmatmul.mubr.msk.f32.vlgmr.msra.gmra.mxu1 %vm445_vm2, %v5920_v29  ;;  %4814 = vmatprep.subr.mxu0 %v7177_v59 }
 0x2fd   :  { %4826 = vmatpush3.xpose.msk.msra.mxu1 %vm445_vm2, %v6078_v55  ;;  %4804 = vmatprep.mubr.msk.f32.mxu1 %vm5382_vm1, %v7177_v59 }
 0x2fe   :  { %4793 = vmatmul.mubr.msk.f32.gmra.mxu0 %vm445_vm2, %v6048_v17  ;;  %4827 = vmatprep.subr.mxu1 %v7177_v59 }
 0x2ff   :  { %v1578_v2 = vpop.permute.xlu1 %1577  ;;  %4815 = vmatpush3.xpose.msk.msra.mxu0 %vm445_vm2, %v5902_v22  ;;  %4816 = vmatprep.mubr.msk.f32.mxu0 %vm5382_vm1, %v7177_v59  ;;  %v1894_v4 = vpop.permute.xlu0 %1893 }
 0x300   :  { %4805 = vmatmul.mubr.msk.f32.gmra.mxu1 %vm445_vm2, %v1474_v58  ;;  %4840 = vmatprep.subr.mxu0 %v7177_v59 }
 0x301   :  { %4828 = vmatpush3.xpose.msk.msra.mxu1 %vm445_vm2, %v1688_v0  ;;  %4807 = vmatprep.mubr.msk.f32.mxu1 %vm5382_vm1, %v7177_v59 }
 0x302   :  { %4817 = vmatmul.mubr.msk.f32.vlgmr.msra.gmra.mxu0 %vm445_vm2, %v5934_v14  ;;  %4829 = vmatprep.subr.mxu1 %v7177_v59 }
 0x303   :  { %v1792_v5 = vpop.permute.xlu1 %1791  ;;  %4841 = vmatpush3.xpose.msk.msra.mxu0 %vm445_vm2, %v6097_v35  ;;  %4819 = vmatprep.mubr.msk.f32.mxu0 %vm5382_vm1, %v7177_v59  ;;  %v1682_v7 = vpop.permute.xlu0 %1681 }
 0x304   :  { %4808 = vmatmul.mubr.msk.f32.gmra.mxu1 %vm445_vm2, %v6066_v53  ;;  %4842 = vmatprep.subr.mxu0 %v7177_v59 }
 0x305   :  { %4830 = vmatpush3.xpose.msk.msra.mxu1 %vm445_vm2, %v6116_v56  ;;  %4831 = vmatprep.mubr.msk.f32.mxu1 %vm5382_vm1, %v7177_v59 }
 0x306   :  { %4820 = vmatmul.mubr.msk.f32.gmra.mxu0 %vm445_vm2, %v1578_v2  ;;  %4855 = vmatprep.subr.mxu1 %v7177_v59 }
 0x307   :  { %v2002_v8 = vpop.permute.xlu1 %2001  ;;  %4843 = vmatpush3.xpose.msk.msra.mxu0 %vm445_vm2, %v1792_v5  ;;  %4822 = vmatprep.mubr.msk.f32.mxu0 %vm5382_vm1, %v7177_v59  ;;  %v1896_v10 = vpop.permute.xlu0 %1895 }
 0x308   :  { %4832 = vmatmul.mubr.msk.f32.vlgmr.msra.gmra.mxu1 %vm445_vm2, %v6111_v34  ;;  %4844 = vmatprep.subr.mxu0 %v7177_v59 }
 0x309   :  { %4856 = vmatpush3.xpose.msk.msra.mxu1 %vm445_vm2, %v6128_v57  ;;  %4834 = vmatprep.mubr.msk.f32.mxu1 %vm5382_vm1, %v7177_v59 }
 0x30a   :  { %4823 = vmatmul.mubr.msk.f32.gmra.mxu0 %vm445_vm2, %v6134_v61  ;;  %4857 = vmatprep.subr.mxu1 %v7177_v59 }
 0x30b   :  { %v1786_v11 = vpop.permute.xlu1 %1785  ;;  %4845 = vmatpush3.xpose.msk.msra.mxu0 %vm445_vm2, %v6148_v63  ;;  %4846 = vmatprep.mubr.msk.f32.mxu0 %vm5382_vm1, %v7177_v59  ;;  %v1788_v13 = vpop.permute.xlu0 %1787 }
 0x30c   :  { %4835 = vmatmul.mubr.msk.f32.gmra.mxu1 %vm445_vm2, %v1682_v7  ;;  %4870 = vmatprep.subr.mxu0 %v7177_v59 }
 0x30d   :  { %4858 = vmatpush3.xpose.msk.msra.mxu1 %vm445_vm2, %v1896_v10  ;;  %4837 = vmatprep.mubr.msk.f32.mxu1 %vm5382_vm1, %v7177_v59 }
 0x30e   :  { %4847 = vmatmul.mubr.msk.f32.vlgmr.msra.gmra.mxu0 %vm445_vm2, %v1784_v44  ;;  %4859 = vmatprep.subr.mxu1 %v7177_v59 }
 0x30f   :  { %v2000_v15 = vpop.permute.xlu1 %1999  ;;  %4871 = vmatpush3.xpose.msk.msra.mxu0 %vm445_vm2, %v2002_v8  ;;  %4849 = vmatprep.mubr.msk.f32.mxu0 %vm5382_vm1, %v7177_v59  ;;  %v1998_v19 = vpop.permute.xlu0 %1997 }
 0x310   :  { %4838 = vmatmul.mubr.msk.f32.gmra.mxu1 %vm445_vm2, %v1684_v1  ;;  %4872 = vmatprep.subr.mxu0 %v7177_v59 }
 0x311   :  { %4860 = vmatpush3.xpose.msk.msra.mxu1 %vm445_vm2, %v1894_v4  ;;  %4861 = vmatprep.mubr.msk.f32.mxu1 %vm5382_vm1, %v7177_v59 }
 0x312   :  { %4850 = vmatmul.mubr.msk.f32.gmra.mxu0 %vm445_vm2, %v1786_v11  ;;  %5125 = vmatprep.subr.mxu1 %v7177_v59 }
 0x313   :  { %v1888_v20 = vpop.permute.xlu1 %1887  ;;  %4873 = vmatpush3.xpose.msk.msra.mxu0 %vm445_vm2, %v2000_v15  ;;  %4852 = vmatprep.mubr.msk.f32.mxu0 %vm5382_vm1, %v7177_v59  ;;  %v1992_v21 = vpop.permute.xlu0 %1991 }
 0x314   :  { %4874 = vmatprep.subr.mxu0 %v7177_v59  ;;  %4862 = vmatmul.mubr.msk.f32.vlgmr.msra.gmra.mxu1 %vm445_vm2, %v1888_v20 }
 0x315   :  { %5128 = vmatpush3.xpose.msk.msra.mxu1 %vm445_vm2, %v2002_v8  ;;  %4864 = vmatprep.mubr.msk.f32.mxu1 %vm5382_vm1, %v7177_v59 }
 0x316   :  { %4853 = vmatmul.mubr.msk.f32.gmra.mxu0 %vm445_vm2, %v1788_v13  ;;  %5126 = vmatprep.subr.mxu1 %v7177_v59 }
 0x317   :  { %v1890_v22 = vpop.permute.xlu1 %1889  ;;  %4875 = vmatpush3.xpose.msk.msra.mxu0 %vm445_vm2, %v1998_v19  ;;  %4876 = vmatprep.mubr.msk.f32.mxu0 %vm5382_vm1, %v7177_v59  ;;  %v1994_v27 = vpop.permute.xlu0 %1993 }
 0x318   :  { %4900 = vmatprep.subr.mxu0 %v7177_v59  ;;  %4865 = vmatmul.mubr.msk.f32.gmra.mxu1 %vm445_vm2, %v1890_v22 }
 0x319   :  { %5129 = vmatpush3.xpose.msk.msra.mxu1 %vm445_vm2, %v2000_v15  ;;  %4867 = vmatprep.mubr.msk.f32.mxu1 %vm5382_vm1, %v7177_v59 }
 0x31a   :  { %4877 = vmatmul.mubr.msk.f32.vlgmr.msra.gmra.mxu0 %vm445_vm2, %v1992_v21  ;;  %5127 = vmatprep.subr.mxu1 %v7177_v59 }
 0x31b   :  { %v1892_v28 = vpop.permute.xlu1 %1891  ;;  %4901 = vmatpush3.msk.msra.mxu0 %vm2646_vm3, %v5879_v18  ;;  %4879 = vmatprep.mubr.msk.f32.mxu0 %vm5382_vm1, %v7177_v59  ;;  %v2634_v29 = vpop.permute.xlu0 %2633 }
 0x31c   :  { %4902 = vmatprep.subr.mxu0 %v7177_v59  ;;  %4868 = vmatmul.mubr.msk.f32.gmra.mxu1 %vm445_vm2, %v1892_v28 }
 0x31d   :  { %4903 = vmatpush3.msra.mxu0 %v5859_v9  ;;  %5130 = vmatpush3.xpose.msk.msra.mxu1 %vm445_vm2, %v1998_v19 }
 0x31e   :  { %4880 = vmatmul.mubr.msk.f32.gmra.mxu0 %vm445_vm2, %v1994_v27  ;;  %4904 = vmatprep.subr.mxu0 %v7177_v59 }
 0x31f   :  { %v1996_v30 = vpop.permute.xlu1 %1995  ;;  %4905 = vmatpush3.msra.mxu0 %v5839_v3  ;;  %4882 = vmatprep.mubr.msk.f32.mxu1 %vm5382_vm1, %v7177_v59  ;;  %v2630_v3 = vpop.permute.xlu0 %2629 }
 0x320   :  { %4885 = vmatprep.subr.mxu1 %v7177_v59  ;;  %4883 = vmatmul.mubr.msk.f32.vlgmr.msra.gmra.mxu1 %vm445_vm2, %v1996_v30 }
 0x321   :  { %4886 = vmatpush3.msk.msra.mxu1 %vm2646_vm3, %v2634_v29  ;;  %4906 = vmatprep.mubr.msk.f32.mxu0 %vm5382_vm1, %v7177_v59 }
 0x322   :  { %4887 = vmatprep.subr.mxu1 %v7177_v59  ;;  %4930 = vmatprep.subr.mxu0 %v7177_v59 }
 0x323   :  { %v2632_v9 = vpop.permute.xlu1 %2631  ;;  %4891 = vmatprep.mubr.msk.f32.mxu1 %vm5382_vm1, %v7177_v59 }
 0x324   :  { %4888 = vmatpush3.msra.mxu1 %v2632_v9 }
 0x325   :  { %4889 = vmatprep.subr.mxu1 %v7177_v59 }
 0x326   :  { %4890 = vmatpush3.msra.mxu1 %v2630_v3 }
 0x327   :  { %4915 = vmatprep.subr.mxu1 %v7177_v59 }
 0x36f   :  { %v6300_v18 = vpop.f32.mrf.mxu0 }
 0x370   :  { %v2096_v14 = vsel %vm2095_vm4, %v6300_v18, -inf }
 0x371   :  { %2097 = vmax.xlane.f32.xlu1 %v2096_v14  ;;  %v4653_v31 = vpop.f32.mrf.mxu0 }
 0x373   :  { %v6304_v23 = vpop.f32.mrf.mxu0 }
 0x374   :  { %v2099_v50 = vsel %vm2095_vm4, %v6304_v23, -inf }
 0x375   :  { %v4656_v33 = vpop.f32.mrf.mxu0 }
 0x377   :  { %v6306_v26 = vpop.f32.mrf.mxu0 }
 0x378   :  { %v2103_v36 = vsel %vm2102_vm5, %v6306_v26, -inf }
 0x379   :  { %2104 = vmax.xlane.f32.xlu1 %v2103_v36  ;;  %v4659_v37 = vpop.f32.mrf.mxu0 }
 0x37f   :  { %v6310_v38 = vpop.f32.mrf.mxu0  ;;  %v6312_v39 = vpop.f32.mrf.mxu1 }
 0x380   :  { %v2115_v40 = vsel %vm2095_vm4, %v6312_v39, -inf  ;;  %v2106_v16 = vsel %vm2095_vm4, %v6310_v38, -inf }
 0x381   :  { %v4668_v42 = vpop.f32.mrf.mxu0  ;;  %2116 = vmax.xlane.f32.xlu0 %v2115_v40  ;;  %v4683_v43 = vpop.f32.mrf.mxu1 }
 0x383   :  { %v6316_v47 = vpop.f32.mrf.mxu0  ;;  %v6318_v24 = vpop.f32.mrf.mxu1 }
 0x384   :  { %v2118_v25 = vsel %vm2095_vm4, %v6318_v24, -inf  ;;  %v2109_v8 = vsel %vm2095_vm4, %v6316_v47, -inf }
 0x385   :  { %v4671_v17 = vpop.f32.mrf.mxu0  ;;  %2100 = vmax.xlane.f32.xlu0 %v2099_v50  ;;  %v4686_v51 = vpop.f32.mrf.mxu1 }
 0x388   :  { %v6322_v53 = vpop.f32.mrf.mxu0  ;;  %v6324_v55 = vpop.f32.mrf.mxu1 }
 0x389   :  { %2119 = vmax.xlane.f32.xlu0 %v2118_v25  ;;  %v2121_v34 = vsel %vm2102_vm5, %v6324_v55, -inf  ;;  %v2112_v27 = vsel %vm2102_vm5, %v6322_v53, -inf }
 0x38a   :  { %v4674_v35 = vpop.f32.mrf.mxu0  ;;  %v4689_v60 = vpop.f32.mrf.mxu1 }
 0x38d   :  { %v6330_v56 = vpop.f32.mrf.mxu0  ;;  %v6332_v57 = vpop.f32.mrf.mxu1  ;;  %2122 = vmax.xlane.f32.xlu0 %v2121_v34 }
 0x38e   :  { %v2124_v61 = vsel %vm2095_vm4, %v6330_v56, -inf  ;;  %v2133_v2 = vsel %vm2095_vm4, %v6332_v57, -inf }
 0x38f   :  { %2125 = vmax.xlane.f32.xlu1 %v2124_v61  ;;  %v4698_v62 = vpop.f32.mrf.mxu0  ;;  %v4713_v63 = vpop.f32.mrf.mxu1 }
 0x391   :  { %2107 = vmax.xlane.f32.xlu0 %v2106_v16 }
 0x392   :  { %v6338_v58 = vpop.f32.mrf.mxu0  ;;  %v6340_v46 = vpop.f32.mrf.mxu1 }
 0x393   :  { %v2127_v0 = vsel %vm2095_vm4, %v6338_v58, -inf  ;;  %v2136_v19 = vsel %vm2095_vm4, %v6340_v46, -inf }
 0x394   :  { %2128 = vmax.xlane.f32.xlu1 %v2127_v0  ;;  %v4701_v44 = vpop.f32.mrf.mxu0  ;;  %v4716_v1 = vpop.f32.mrf.mxu1 }
 0x395   :  { %2134 = vmax.xlane.f32.xlu0 %v2133_v2  ;;  %v6398_v1 = vpop.permute.xlu0 %2822 }
 0x396   :  { %7208 = vst [vmem:[#allocation9_spill] sm:$0xff] %v6398_v1 }
 0x397   :  { %v6346_v4 = vpop.f32.mrf.mxu0  ;;  %v6348_v5 = vpop.f32.mrf.mxu1 }
 0x398   :  { %v2130_v7 = vsel %vm2102_vm5, %v6346_v4, -inf  ;;  %v2139_v3 = vsel %vm2102_vm5, %v6348_v5, -inf }
 0x399   :  { %2131 = vmax.xlane.f32.xlu1 %v2130_v7  ;;  %v4704_v10 = vpop.f32.mrf.mxu0  ;;  %v4719_v11 = vpop.f32.mrf.mxu1  ;;  %2110 = vmax.xlane.f32.xlu0 %v2109_v8 }
 0x39a   :  { %v6402_v10 = vpop.permute.xlu1 %2824 }
 0x39b   :  { %7209 = vst [vmem:[#allocation10_spill] sm:$0xff] %v6402_v10 }
 0x39c   :  { %v6354_v13 = vpop.f32.mrf.mxu0  ;;  %v6356_v15 = vpop.f32.mrf.mxu1 }
 0x39d   :  { %v2142_v20 = vsel %vm2095_vm4, %v6354_v13, -inf  ;;  %2137 = vmax.xlane.f32.xlu0 %v2136_v19  ;;  %v2151_v37 = vsel %vm2095_vm4, %v6356_v15, -inf }
 0x39e   :  { %2143 = vmax.xlane.f32.xlu1 %v2142_v20  ;;  %v4728_v21 = vpop.f32.mrf.mxu0  ;;  %v4743_v22 = vpop.f32.mrf.mxu1 }
 0x39f   :  { %v6410_v22 = vpop.permute.xlu0 %2820 }
 0x3a0   :  { %7210 = vst [vmem:[#allocation11_spill] sm:$0xff] %v6410_v22 }
 0x3a1   :  { %v6364_v28 = vpop.f32.mrf.mxu0  ;;  %v6366_v29 = vpop.f32.mrf.mxu1  ;;  %2113 = vmax.xlane.f32.xlu0 %v2112_v27 }
 0x3a2   :  { %v2154_v43 = vsel %vm2095_vm4, %v6366_v29, -inf  ;;  %v2145_v62 = vsel %vm2095_vm4, %v6364_v28, -inf }
 0x3a3   :  { %v4731_v30 = vpop.f32.mrf.mxu0  ;;  %v4746_v9 = vpop.f32.mrf.mxu1 }
 0x3a5   :  { %v6370_v14 = vpop.f32.mrf.mxu0  ;;  %v6372_v31 = vpop.f32.mrf.mxu1  ;;  %2140 = vmax.xlane.f32.xlu0 %v2139_v3 }
 0x3a6   :  { %v2157_v60 = vsel %vm2102_vm5, %v6372_v31, -inf  ;;  %v2148_v19 = vsel %vm2102_vm5, %v6370_v14, -inf  ;;  %v6416_v3 = vpop.permute.xlu1 %2926 }
 0x3a7   :  { %v4734_v33 = vpop.f32.mrf.mxu0  ;;  %v4749_v36 = vpop.f32.mrf.mxu1 }
 0x3a9   :  { %2152 = vmax.xlane.f32.xlu0 %v2151_v37 }
 0x3aa   :  { %v6376_v40 = vpop.f32.mrf.mxu0 }
 0x3ac   :  { %v4758_v42 = vpop.f32.mrf.mxu0 }
 0x3ad   :  { %2155 = vmax.xlane.f32.xlu0 %v2154_v43 }
 0x3ae   :  { %v6380_v50 = vpop.f32.mrf.mxu0  ;;  %v6382_v17 = vpop.f32.mrf.mxu1 }
 0x3af   :  { %v2169_v51 = vsel %vm2095_vm4, %v6382_v17, -inf }
 0x3b0   :  { %v4761_v25 = vpop.f32.mrf.mxu0  ;;  %2170 = vmax.xlane.f32.xlu1 %v2169_v51  ;;  %v4773_v35 = vpop.f32.mrf.mxu1 }
 0x3b1   :  { %2158 = vmax.xlane.f32.xlu0 %v2157_v60  ;;  %v6426_v25 = vpop.permute.xlu0 %2924  ;;  %v2160_v35 = vsel %vm2095_vm4, %v6376_v40, -inf }
 0x3b2   :  { %v6388_v34 = vpop.f32.mrf.mxu0  ;;  %v6390_v61 = vpop.f32.mrf.mxu1 }
 0x3b3   :  { %v2172_v2 = vsel %vm2095_vm4, %v6390_v61, -inf }
 0x3b4   :  { %v4764_v63 = vpop.f32.mrf.mxu0  ;;  %2146 = vmax.xlane.f32.xlu1 %v2145_v62  ;;  %v4776_v16 = vpop.f32.mrf.mxu1 }
 0x3b5   :  { %v6432_v63 = vpop.permute.xlu1 %2922 }
 0x3b6   :  { %v6394_v0 = vpop.f32.mrf.mxu1  ;;  %v6396_v44 = vpop.f32.mrf.mxu0 }
 0x3b7   :  { %v2175_v33 = vsel %vm2102_vm5, %v6394_v0, -inf }
 0x3b8   :  { %2173 = vmax.xlane.f32.xlu1 %v2172_v2  ;;  %v4779_v7 = vpop.f32.mrf.mxu1  ;;  %v4788_v8 = vpop.f32.mrf.mxu0 }
 0x3b9   :  { %v2163_v8 = vsel %vm2095_vm4, %v6380_v50, -inf }
 0x3ba   :  { %v6404_v11 = vpop.f32.mrf.mxu0 }
 0x3bc   :  { %2149 = vmax.xlane.f32.xlu1 %v2148_v19  ;;  %v4791_v20 = vpop.f32.mrf.mxu0  ;;  %v6408_v21 = vpop.f32.mrf.mxu1 }
 0x3bd   :  { %v2187_v27 = vsel %vm2095_vm4, %v6408_v21, -inf }
 0x3be   :  { %v6414_v30 = vpop.f32.mrf.mxu0  ;;  %2188 = vmax.xlane.f32.xlu0 %v2187_v27  ;;  %v4803_v9 = vpop.f32.mrf.mxu1 }
 0x3bf   :  { %v6442_v27 = vpop.permute.xlu0 %3125  ;;  %v2178_v9 = vsel %vm2095_vm4, %v6396_v44, -inf }
 0x3c0   :  { %2176 = vmax.xlane.f32.xlu1 %v2175_v33  ;;  %v4794_v36 = vpop.f32.mrf.mxu0  ;;  %v6420_v37 = vpop.f32.mrf.mxu1  ;;  %7211 = vst [vmem:[#allocation12_spill] sm:$0xff] %v6442_v27 }
 0x3c1   :  { %v2190_v42 = vsel %vm2095_vm4, %v6420_v37, -inf }
 0x3c2   :  { %2191 = vmax.xlane.f32.xlu0 %v2190_v42  ;;  %v4806_v43 = vpop.f32.mrf.mxu1  ;;  %v6424_v51 = vpop.f32.mrf.mxu0 }
 0x3c3   :  { %v6448_v42 = vpop.permute.xlu1 %3123  ;;  %v2166_v43 = vsel %vm2102_vm5, %v6388_v34, -inf }
 0x3c4   :  { %2161 = vmax.xlane.f32.xlu1 %v2160_v35  ;;  %v6430_v60 = vpop.f32.mrf.mxu1  ;;  %v4818_v62 = vpop.f32.mrf.mxu0  ;;  %7212 = vst [vmem:[#allocation13_spill] sm:$0xff] %v6448_v42 }
 0x3c5   :  { %v2193_v16 = vsel %vm2102_vm5, %v6430_v60, -inf }
 0x3c6   :  { %2194 = vmax.xlane.f32.xlu0 %v2193_v16  ;;  %v4809_v2 = vpop.f32.mrf.mxu1  ;;  %v6436_v7 = vpop.f32.mrf.mxu0 }
 0x3c8   :  { %2164 = vmax.xlane.f32.xlu1 %v2163_v8  ;;  %v6440_v19 = vpop.f32.mrf.mxu1  ;;  %v4821_v20 = vpop.f32.mrf.mxu0 }
 0x3c9   :  { %v2205_v16 = vsel %vm2095_vm4, %v6440_v19, -inf  ;;  %v6458_v20 = vpop.permute.xlu0 %3121 }
 0x3ca   :  { %2179 = vmax.xlane.f32.xlu0 %v2178_v9  ;;  %v4833_v33 = vpop.f32.mrf.mxu1  ;;  %v6446_v36 = vpop.f32.mrf.mxu0  ;;  %7213 = vst [vmem:[#allocation14_spill] sm:$0xff] %v6458_v20  ;;  %v2196_v9 = vsel %vm2095_vm4, %v6424_v51, -inf }
 0x3cc   :  { %2167 = vmax.xlane.f32.xlu1 %v2166_v43  ;;  %v6452_v35 = vpop.f32.mrf.mxu1  ;;  %v4824_v62 = vpop.f32.mrf.mxu0 }
 0x3cd   :  { %v6464_v43 = vpop.permute.xlu1 %3227  ;;  %v2181_v62 = vsel %vm2095_vm4, %v6404_v11, -inf }
 0x3ce   :  { %2206 = vmax.xlane.f32.xlu0 %v2205_v16  ;;  %v4836_v2 = vpop.f32.mrf.mxu1  ;;  %v6456_v8 = vpop.f32.mrf.mxu0  ;;  %7214 = vst [vmem:[#allocation15_spill] sm:$0xff] %v6464_v43 }
 0x3cf   :  { %v2199_v2 = vsel %vm2095_vm4, %v6436_v7, -inf }
 0x3d0   :  { %2197 = vmax.xlane.f32.xlu1 %v2196_v9  ;;  %v6462_v33 = vpop.f32.mrf.mxu1  ;;  %v4848_v59 = vpop.f32.mrf.mxu0 }
 0x3d1   :  { %v6474_v9 = vpop.permute.xlu0 %3329  ;;  %v2208_v59 = vsel %vm2095_vm4, %v6452_v35, -inf }
 0x3d2   :  { %2182 = vmax.xlane.f32.xlu0 %v2181_v62  ;;  %v4839_v41 = vpop.f32.mrf.mxu1  ;;  %v6468_v16 = vpop.f32.mrf.mxu0  ;;  %7215 = vst [vmem:[#allocation16_spill] sm:$0xff] %v6474_v9 }
 0x3d3   :  { %v6480_v62 = vpop.permute.xlu1 %3225  ;;  %v2202_v41 = vsel %vm2102_vm5, %v6446_v36, -inf }
 0x3d4   :  { %2200 = vmax.xlane.f32.xlu1 %v2199_v2  ;;  %v4851_v48 = vpop.f32.mrf.mxu0  ;;  %v6472_v54 = vpop.f32.mrf.mxu1  ;;  %7217 = vst [vmem:[#allocation18_spill] sm:$0xff] %v6480_v62 }
 0x3d5   :  { %v2184_v48 = vsel %vm2102_vm5, %v6414_v30, -inf }
 0x3d6   :  { %2209 = vmax.xlane.f32.xlu0 %v2208_v59  ;;  %v6478_v43 = vpop.f32.mrf.mxu0  ;;  %v4863_v20 = vpop.f32.mrf.mxu1 }
 0x3d7   :  { %7216 = vst [vmem:[#allocation17_spill] sm:$0xff] %v6478_v43  ;;  %v6490_v59 = vpop.permute.xlu0 %3223  ;;  %v2214_v20 = vsel %vm2095_vm4, %v6456_v8, -inf }
 0x3d8   :  { %2203 = vmax.xlane.f32.xlu1 %v2202_v41  ;;  %v4854_v42 = vpop.f32.mrf.mxu0  ;;  %v6484_v2 = vpop.f32.mrf.mxu1  ;;  %7218 = vst [vmem:[#allocation19_spill] sm:$0xff] %v6490_v59 }
 0x3d9   :  { %v6496_v41 = vpop.permute.xlu1 %3325  ;;  %v2211_v42 = vsel %vm2102_vm5, %v6462_v33, -inf }
 0x3da   :  { %2185 = vmax.xlane.f32.xlu0 %v2184_v48  ;;  %v6488_v9 = vpop.f32.mrf.mxu0  ;;  %v4866_v27 = vpop.f32.mrf.mxu1  ;;  %7219 = vst [vmem:[#allocation20_spill] sm:$0xff] %v6496_v41 }
 0x3db   :  { %v2217_v27 = vsel %vm2095_vm4, %v6468_v16, -inf }
 0x3dc   :  { %2215 = vmax.xlane.f32.xlu1 %v2214_v20  ;;  %v4878_v62 = vpop.f32.mrf.mxu0  ;;  %v6494_v6 = vpop.f32.mrf.mxu1 }
 0x3dd   :  { %v2223_v62 = vsel %vm2095_vm4, %v6472_v54, -inf  ;;  %v6508_v20 = vpop.permute.xlu0 %3327  ;;  %v6512_v22 = vpop.permute.xlu1 %3631 }
 0x3de   :  { %2212 = vmax.xlane.f32.xlu0 %v2211_v42  ;;  %v6500_v12 = vpop.f32.mrf.mxu0  ;;  %v4869_v48 = vpop.f32.mrf.mxu1  ;;  %7221 = vst [vmem:[#allocation22_spill] sm:$0xff] %v6508_v20  ;;  %v2220_v42 = vsel %vm2102_vm5, %v6478_v43, -inf  ;;  %7222 = vst [vmem:[#allocation23_spill] sm:$0xff] %v6512_v22 }
 0x3df   :  { %v2226_v48 = vsel %vm2095_vm4, %v6484_v2, -inf }
 0x3e0   :  { %2218 = vmax.xlane.f32.xlu1 %v2217_v27  ;;  %v4881_v59 = vpop.f32.mrf.mxu0  ;;  %v6504_v32 = vpop.f32.mrf.mxu1 }
 0x3e1   :  { %7220 = vst [vmem:[#allocation21_spill] sm:$0xff] %v6504_v32  ;;  %v2232_v59 = vsel %vm2095_vm4, %v6488_v9, -inf  ;;  %v6518_v27 = vpop.permute.xlu0 %3441  ;;  %v2238_v22 = vsel %vm2102_vm5, %v6504_v32, -inf }
 0x3e2   :  { %2224 = vmax.xlane.f32.xlu0 %v2223_v62  ;;  %v4884_v41 = vpop.f32.mrf.mxu1  ;;  %7223 = vst [vmem:[#allocation24_spill] sm:$0xff] %v6518_v27  ;;  %v2229_v62 = vsel %vm2102_vm5, %v6494_v6, -inf }
 0x3e3   :  { %v6522_v41 = vpop.permute.xlu1 %3735 }
 0x3e4   :  { %2221 = vmax.xlane.f32.xlu1 %v2220_v42  ;;  %7224 = vst [vmem:[#allocation25_spill] sm:$0xff] %v6522_v41 }
 0x3e5   :  { %v6526_v42 = vpop.permute.xlu0 %3733 }
 0x3e6   :  { %2227 = vmax.xlane.f32.xlu0 %v2226_v48  ;;  %7225 = vst [vmem:[#allocation26_spill] sm:$0xff] %v6526_v42  ;;  %v2235_v48 = vsel %vm2095_vm4, %v6500_v12, -inf }
 0x3e7   :  { %v6528_v20 = vpop.permute.xlu1 %3635 }
 0x3e8   :  { %2233 = vmax.xlane.f32.xlu1 %v2232_v59  ;;  %7226 = vst [vmem:[#allocation27_spill] sm:$0xff] %v6528_v20 }
 0x3e9   :  { %v6532_v27 = vpop.permute.xlu0 %3443 }
 0x3ea   :  { %2230 = vmax.xlane.f32.xlu0 %v2229_v62  ;;  %7227 = vst [vmem:[#allocation28_spill] sm:$0xff] %v6532_v27 }
 0x3eb   :  { %v6534_v59 = vpop.permute.xlu1 %3936 }
 0x3ec   :  { %7228 = vst [vmem:[#allocation29_spill] sm:$0xff] %v6534_v59 }
 0x3ed   :  { %v6536_v1 = vpop.permute.xlu0 %3633 }
 0x3ee   :  { %2239 = vmax.xlane.f32.xlu0 %v2238_v22  ;;  %7229 = vst [vmem:[#allocation30_spill] sm:$0xff] %v6536_v1 }
 0x3f1   :  { %v6539_v43 = vpop.permute.xlu0 %3445 }
 0x3f2   :  { %2236 = vmax.xlane.f32.xlu0 %v2235_v48  ;;  %7230 = vst [vmem:[#allocation31_spill] sm:$0xff] %v6539_v43 }
 0x3f5   :  { %v6541_v22 = vpop.permute.xlu0 %3737 }
 0x3f6   :  { %7231 = vst [vmem:[#allocation32_spill] sm:$0xff] %v6541_v22 }
 0x3fa   :  { %v2098_v41 = vpop.xlane.xlu1 %2097 }
 0x3fb   :  { %v2241_v62 = vsub.f32 %v6300_v18, %v2098_v41 }
 0x3fd   :  { %v2289_v10 = vmul.f32 1.442695, %v2241_v62 }
 0x3ff   :  { %5174 = vpow2.f32 %v2289_v10 }
 0x402   :  { %v2105_v42 = vpop.xlane.xlu1 %2104 }
 0x403   :  { %v2243_v27 = vsub.f32 %v6306_v26, %v2105_v42 }
 0x405   :  { %v2293_v41 = vmul.f32 1.442695, %v2243_v27 }
 0x40a   :  { %v2117_v20 = vpop.xlane.xlu0 %2116 }
 0x40b   :  { %v2247_v32 = vsub.f32 %v6312_v39, %v2117_v20 }
 0x40c   :  { %v6544_v48 = vpop.eup %5174 }
 0x40d   :  { %v2301_v59 = vmul.f32 1.442695, %v2247_v32  ;;  %v2385_v1 = vsel %vm2095_vm4, %v6544_v48, 0.0 }
 0x40e   :  { %2386 = vadd.xlane.f32.xlu1 %v2385_v1  ;;  %v2101_v18 = vpop.xlane.xlu0 %2100 }
 0x40f   :  { %5176 = vpow2.f32 %v2301_v59  ;;  %v2242_v10 = vsub.f32 %v6304_v23, %v2101_v18 }
 0x411   :  { %v2291_v62 = vmul.f32 1.442695, %v2242_v10 }
 0x412   :  { %v2120_v22 = vpop.xlane.xlu0 %2119 }
 0x413   :  { %5178 = vpow2.f32 %v2291_v62  ;;  %v2248_v43 = vsub.f32 %v6318_v24, %v2120_v22 }
 0x414   :  { %5180 = vpow2.f32 %v2293_v41 }
 0x415   :  { %v2303_v39 = vmul.f32 1.442695, %v2248_v43 }
 0x416   :  { %v2123_v20 = vpop.xlane.xlu0 %2122 }
 0x417   :  { %5182 = vpow2.f32 %v2303_v39  ;;  %v2249_v32 = vsub.f32 %v6324_v55, %v2123_v20 }
 0x418   :  { %v2126_v41 = vpop.xlane.xlu1 %2125 }
 0x419   :  { %v2305_v26 = vmul.f32 1.442695, %v2249_v32 }
 0x41a   :  { %v2108_v42 = vpop.xlane.xlu0 %2107 }
 0x41b   :  { %5184 = vpow2.f32 %v2305_v26  ;;  %v2244_v1 = vsub.f32 %v6310_v38, %v2108_v42 }
 0x41c   :  { %v6553_v59 = vpop.eup %5176 }
 0x41d   :  { %v2295_v23 = vmul.f32 1.442695, %v2244_v1  ;;  %v2403_v27 = vsel %vm2095_vm4, %v6553_v59, 0.0 }
 0x41e   :  { %2404 = vadd.xlane.f32.xlu0 %v2403_v27  ;;  %v2135_v18 = vpop.xlane.xlu0 %2134 }
 0x41f   :  { %5186 = vpow2.f32 %v2295_v23  ;;  %v2253_v24 = vsub.f32 %v6332_v57, %v2135_v18  ;;  %v2129_v23 = vpop.xlane.xlu1 %2128 }
 0x420   :  { %v6558_v43 = vpop.eup %5178 }
 0x421   :  { %v2313_v22 = vmul.f32 1.442695, %v2253_v24  ;;  %v2388_v55 = vsel %vm2095_vm4, %v6558_v43, 0.0  ;;  %v6562_v10 = vpop.eup %5180 }
 0x422   :  { %2389 = vadd.xlane.f32.xlu1 %v2388_v55  ;;  %v2111_v38 = vpop.xlane.xlu0 %2110  ;;  %v2391_v57 = vsel %vm2102_vm5, %v6562_v10, 0.0  ;;  %v2250_v55 = vsub.f32 %v6330_v56, %v2126_v41 }
 0x423   :  { %5188 = vpow2.f32 %v2313_v22  ;;  %v2245_v62 = vsub.f32 %v6316_v47, %v2111_v38 }
 0x424   :  { %v6565_v39 = vpop.eup %5182 }
 0x425   :  { %v2297_v20 = vmul.f32 1.442695, %v2245_v62  ;;  %v2406_v32 = vsel %vm2095_vm4, %v6565_v39, 0.0 }
 0x426   :  { %2392 = vadd.xlane.f32.xlu1 %v2391_v57  ;;  %2407 = vadd.xlane.f32.xlu0 %v2406_v32  ;;  %v2138_v26 = vpop.xlane.xlu0 %2137 }
 0x427   :  { %v2254_v42 = vsub.f32 %v6340_v46, %v2138_v26  ;;  %5190 = vpow2.f32 %v2297_v20  ;;  %v2132_v20 = vpop.xlane.xlu1 %2131  ;;  %v2251_v26 = vsub.f32 %v6338_v58, %v2129_v23 }
 0x428   :  { %v6572_v1 = vpop.eup %5184 }
 0x429   :  { %v2315_v27 = vmul.f32 1.442695, %v2254_v42  ;;  %v2409_v47 = vsel %vm2102_vm5, %v6572_v1, 0.0  ;;  %v2307_v42 = vmul.f32 1.442695, %v2250_v55 }
 0x42a   :  { %2410 = vadd.xlane.f32.xlu0 %v2409_v47  ;;  %v2114_v18 = vpop.xlane.xlu0 %2113  ;;  %v2309_v47 = vmul.f32 1.442695, %v2251_v26 }
 0x42b   :  { %5192 = vpow2.f32 %v2315_v27  ;;  %v2246_v24 = vsub.f32 %v6322_v53, %v2114_v18 }
 0x42c   :  { %v6577_v22 = vpop.eup %5186 }
 0x42d   :  { %v2299_v38 = vmul.f32 1.442695, %v2246_v24  ;;  %v2394_v46 = vsel %vm2095_vm4, %v6577_v22, 0.0  ;;  %v2144_v24 = vpop.xlane.xlu1 %2143 }
 0x42e   :  { %2395 = vadd.xlane.f32.xlu1 %v2394_v46  ;;  %v2141_v62 = vpop.xlane.xlu0 %2140 }
 0x42f   :  { %5194 = vpow2.f32 %v2299_v38  ;;  %v2255_v57 = vsub.f32 %v6348_v5, %v2141_v62  ;;  %v2252_v5 = vsub.f32 %v6346_v4, %v2132_v20 }
 0x430   :  { %v6583_v32 = vpop.eup %5188 }
 0x431   :  { %v2317_v53 = vmul.f32 1.442695, %v2255_v57  ;;  %v2421_v27 = vsel %vm2095_vm4, %v6583_v32, 0.0  ;;  %v2311_v62 = vmul.f32 1.442695, %v2252_v5 }
 0x432   :  { %2422 = vadd.xlane.f32.xlu1 %v2421_v27  ;;  %v2153_v56 = vpop.xlane.xlu0 %2152 }
 0x433   :  { %5196 = vpow2.f32 %v2317_v53  ;;  %v2259_v41 = vsub.f32 %v6356_v15, %v2153_v56  ;;  %v2256_v15 = vsub.f32 %v6354_v13, %v2144_v24 }
 0x434   :  { %v6589_v18 = vpop.eup %5190  ;;  %5198 = vpow2.f32 %v2307_v42 }
 0x435   :  { %v2325_v38 = vmul.f32 1.442695, %v2259_v41  ;;  %v2397_v58 = vsel %vm2095_vm4, %v6589_v18, 0.0 }
 0x436   :  { %v2156_v23 = vpop.xlane.xlu0 %2155  ;;  %2398 = vadd.xlane.f32.xlu1 %v2397_v58 }
 0x437   :  { %5200 = vpow2.f32 %v2325_v38  ;;  %v2260_v55 = vsub.f32 %v6366_v29, %v2156_v23  ;;  %v2319_v29 = vmul.f32 1.442695, %v2256_v15 }
 0x438   :  { %v6595_v46 = vpop.eup %5192  ;;  %5202 = vpow2.f32 %v2309_v47 }
 0x439   :  { %v2171_v57 = vpop.xlane.xlu1 %2170  ;;  %v2327_v26 = vmul.f32 1.442695, %v2260_v55  ;;  %v2424_v4 = vsel %vm2095_vm4, %v6595_v46, 0.0 }
 0x43a   :  { %v2265_v20 = vsub.f32 %v6382_v17, %v2171_v57  ;;  %2425 = vadd.xlane.f32.xlu0 %v2424_v4  ;;  %v2159_v42 = vpop.xlane.xlu0 %2158 }
 0x43b   :  { %5204 = vpow2.f32 %v2327_v26  ;;  %v2261_v53 = vsub.f32 %v6372_v31, %v2159_v42 }
 0x43c   :  { %v6602_v27 = vpop.eup %5194  ;;  %5206 = vpow2.f32 %v2311_v62  ;;  %v2337_v56 = vmul.f32 1.442695, %v2265_v20 }
 0x43d   :  { %v2147_v41 = vpop.xlane.xlu1 %2146  ;;  %v2329_v13 = vmul.f32 1.442695, %v2261_v53  ;;  %v2400_v47 = vsel %vm2102_vm5, %v6602_v27, 0.0 }
 0x43e   :  { %v2257_v5 = vsub.f32 %v6364_v28, %v2147_v41  ;;  %2401 = vadd.xlane.f32.xlu0 %v2400_v47 }
 0x43f   :  { %5208 = vpow2.f32 %v2329_v13 }
 0x440   :  { %v6607_v17 = vpop.eup %5196  ;;  %5210 = vpow2.f32 %v2319_v29  ;;  %v2321_v24 = vmul.f32 1.442695, %v2257_v5 }
 0x441   :  { %5212 = vpow2.f32 %v2337_v56  ;;  %v2174_v31 = vpop.xlane.xlu1 %2173  ;;  %v2427_v38 = vsel %vm2102_vm5, %v6607_v17, 0.0  ;;  %v6611_v58 = vpop.eup %5198 }
 0x442   :  { %v2266_v23 = vsub.f32 %v6390_v61, %v2174_v31  ;;  %2428 = vadd.xlane.f32.xlu1 %v2427_v38  ;;  %5214 = vpow2.f32 %v2321_v24  ;;  %v2412_v57 = vsel %vm2095_vm4, %v6611_v58, 0.0 }
 0x444   :  { %v6614_v55 = vpop.eup %5200  ;;  %v2339_v28 = vmul.f32 1.442695, %v2266_v23 }
 0x445   :  { %v6616_v15 = vpop.eup %5202  ;;  %v2150_v62 = vpop.xlane.xlu1 %2149  ;;  %v2439_v26 = vsel %vm2095_vm4, %v6614_v55, 0.0 }
 0x446   :  { %v2258_v4 = vsub.f32 %v6370_v14, %v2150_v62  ;;  %2413 = vadd.xlane.f32.xlu1 %v2412_v57  ;;  %2440 = vadd.xlane.f32.xlu0 %v2439_v26  ;;  %v2415_v42 = vsel %vm2095_vm4, %v6616_v15, 0.0  ;;  %5216 = vpow2.f32 %v2339_v28 }
 0x447   :  { %v2189_v20 = vpop.xlane.xlu0 %2188 }
 0x448   :  { %v6623_v61 = vpop.eup %5204  ;;  %v2323_v53 = vmul.f32 1.442695, %v2258_v4  ;;  %v2271_v56 = vsub.f32 %v6408_v21, %v2189_v20 }
 0x449   :  { %7232 = vst [vmem:[#allocation33_spill] sm:$0xff] %v6623_v61  ;;  %v2177_v29 = vpop.xlane.xlu1 %2176  ;;  %v2442_v41 = vsel %vm2095_vm4, %v6623_v61, 0.0  ;;  %v6630_v13 = vpop.eup %5206 }
 0x44a   :  { %v2267_v14 = vsub.f32 %v6394_v0, %v2177_v29  ;;  %2416 = vadd.xlane.f32.xlu1 %v2415_v42  ;;  %2443 = vadd.xlane.f32.xlu0 %v2442_v41  ;;  %5218 = vpow2.f32 %v2323_v53  ;;  %v2349_v38 = vmul.f32 1.442695, %v2271_v56  ;;  %v2418_v21 = vsel %vm2102_vm5, %v6630_v13, 0.0 }
 0x44b   :  { %v2192_v47 = vpop.xlane.xlu0 %2191 }
 0x44c   :  { %v6633_v5 = vpop.eup %5208  ;;  %v2341_v24 = vmul.f32 1.442695, %v2267_v14  ;;  %v2272_v4 = vsub.f32 %v6420_v37, %v2192_v47 }
 0x44d   :  { %7233 = vst [vmem:[#allocation34_spill] sm:$0xff] %v6633_v5  ;;  %v6635_v31 = vpop.eup %5210  ;;  %v2162_v23 = vpop.xlane.xlu1 %2161  ;;  %v2445_v28 = vsel %vm2102_vm5, %v6633_v5, 0.0 }
 0x44e   :  { %v6641_v62 = vpop.eup %5212  ;;  %5220 = vpow2.f32 %v2341_v24  ;;  %v2262_v0 = vsub.f32 %v6376_v40, %v2162_v23  ;;  %2419 = vadd.xlane.f32.xlu1 %v2418_v21  ;;  %2446 = vadd.xlane.f32.xlu0 %v2445_v28  ;;  %v2430_v42 = vsel %vm2095_vm4, %v6635_v31, 0.0  ;;  %v2351_v41 = vmul.f32 1.442695, %v2272_v4 }
 0x44f   :  { %7234 = vst [vmem:[#allocation35_spill] sm:$0xff] %v6641_v62  ;;  %v2195_v26 = vpop.xlane.xlu0 %2194  ;;  %5222 = vpow2.f32 %v2349_v38  ;;  %v2457_v53 = vsel %vm2095_vm4, %v6641_v62, 0.0  ;;  %v6649_v29 = vpop.eup %5214 }
 0x450   :  { %v2331_v57 = vmul.f32 1.442695, %v2262_v0  ;;  %v2273_v14 = vsub.f32 %v6430_v60, %v2195_v26  ;;  %v2433_v37 = vsel %vm2095_vm4, %v6649_v29, 0.0 }
 0x451   :  { %v2165_v20 = vpop.xlane.xlu1 %2164 }
 0x452   :  { %5224 = vpow2.f32 %v2331_v57  ;;  %v2263_v56 = vsub.f32 %v6380_v50, %v2165_v20  ;;  %2431 = vadd.xlane.f32.xlu1 %v2430_v42  ;;  %2458 = vadd.xlane.f32.xlu0 %v2457_v53  ;;  %v2353_v50 = vmul.f32 1.442695, %v2273_v14 }
 0x453   :  { %v6655_v47 = vpop.eup %5216  ;;  %v2180_v23 = vpop.xlane.xlu0 %2179 }
 0x454   :  { %v2333_v40 = vmul.f32 1.442695, %v2263_v56  ;;  %7235 = vst [vmem:[#allocation36_spill] sm:$0xff] %v6655_v47  ;;  %v2268_v28 = vsub.f32 %v6396_v44, %v2180_v23  ;;  %v2460_v0 = vsel %vm2095_vm4, %v6655_v47, 0.0 }
 0x455   :  { %v2168_v24 = vpop.xlane.xlu1 %2167 }
 0x456   :  { %5226 = vpow2.f32 %v2333_v40  ;;  %v2264_v38 = vsub.f32 %v6388_v34, %v2168_v24  ;;  %2434 = vadd.xlane.f32.xlu0 %v2433_v37  ;;  %v2343_v34 = vmul.f32 1.442695, %v2268_v28 }
 0x457   :  { %5228 = vpow2.f32 %v2351_v41  ;;  %v6661_v60 = vpop.eup %5218  ;;  %v2207_v53 = vpop.xlane.xlu0 %2206 }
 0x458   :  { %v2335_v21 = vmul.f32 1.442695, %v2264_v38  ;;  %7236 = vst [vmem:[#allocation37_spill] sm:$0xff] %v6661_v60  ;;  %v2436_v4 = vsel %vm2102_vm5, %v6661_v60, 0.0 }
 0x45a   :  { %5230 = vpow2.f32 %v2335_v21  ;;  %2461 = vadd.xlane.f32.xlu0 %v2460_v0 }
 0x45b   :  { %v6663_v57 = vpop.eup %5220  ;;  %5232 = vpow2.f32 %v2353_v50  ;;  %v2183_v37 = vpop.xlane.xlu0 %2182 }
 0x45c   :  { %7237 = vst [vmem:[#allocation38_spill] sm:$0xff] %v6663_v57  ;;  %v2463_v26 = vsel %vm2102_vm5, %v6663_v57, 0.0  ;;  %v6669_v20 = vpop.eup %5222  ;;  %5234 = vpow2.f32 %v2343_v34  ;;  %v2269_v60 = vsub.f32 %v6404_v11, %v2183_v37 }
 0x45d   :  { %2464 = vadd.xlane.f32.xlu1 %v2463_v26  ;;  %7238 = vst [vmem:[#allocation39_spill] sm:$0xff] %v6669_v20  ;;  %v2475_v56 = vsel %vm2095_vm4, %v6669_v20, 0.0  ;;  %v6695_v26 = vpop.xlane.xlu1 %2197 }
 0x45e   :  { %2437 = vadd.xlane.f32.xlu0 %v2436_v4 }
 0x45f   :  { %v6671_v44 = vpop.eup %5224  ;;  %v2210_v50 = vpop.xlane.xlu0 %2209 }
 0x460   :  { %7239 = vst [vmem:[#allocation40_spill] sm:$0xff] %v6671_v44  ;;  %v2448_v42 = vsel %vm2095_vm4, %v6671_v44, 0.0 }
 0x461   :  { %2449 = vadd.xlane.f32.xlu1 %v2448_v42  ;;  %v6699_v42 = vpop.xlane.xlu1 %2200 }
 0x462   :  { %2476 = vadd.xlane.f32.xlu0 %v2475_v56 }
 0x463   :  { %v6677_v40 = vpop.eup %5226  ;;  %v2186_v4 = vpop.xlane.xlu0 %2185 }
 0x464   :  { %7240 = vst [vmem:[#allocation41_spill] sm:$0xff] %v6677_v40  ;;  %v2451_v41 = vsel %vm2095_vm4, %v6677_v40, 0.0  ;;  %v6681_v14 = vpop.eup %5228 }
 0x465   :  { %7241 = vst [vmem:[#allocation42_spill] sm:$0xff] %v6681_v14  ;;  %v2478_v23 = vsel %vm2095_vm4, %v6681_v14, 0.0 }
 0x466   :  { %2452 = vadd.xlane.f32.xlu0 %v2451_v41  ;;  %v2204_v41 = vpop.xlane.xlu1 %2203 }
 0x467   :  { %v6683_v24 = vpop.eup %5230  ;;  %v2213_v56 = vpop.xlane.xlu0 %2212  ;;  %v2276_v20 = vsub.f32 %v6446_v36, %v2204_v41 }
 0x468   :  { %7242 = vst [vmem:[#allocation43_spill] sm:$0xff] %v6683_v24  ;;  %v2454_v38 = vsel %vm2102_vm5, %v6683_v24, 0.0  ;;  %v6689_v21 = vpop.eup %5232 }
 0x469   :  { %2455 = vadd.xlane.f32.xlu1 %v2454_v38  ;;  %7243 = vst [vmem:[#allocation44_spill] sm:$0xff] %v6689_v21  ;;  %v2481_v28 = vsel %vm2102_vm5, %v6689_v21, 0.0  ;;  %v6693_v0 = vpop.eup %5234  ;;  %v2359_v47 = vmul.f32 1.442695, %v2276_v20  ;;  %v2345_v20 = vmul.f32 1.442695, %v2269_v60 }
 0x46a   :  { %2479 = vadd.xlane.f32.xlu0 %v2478_v23  ;;  %7244 = vst [vmem:[#allocation45_spill] sm:$0xff] %v6693_v0  ;;  %v2466_v34 = vsel %vm2095_vm4, %v6693_v0, 0.0  ;;  %v6707_v23 = vpop.xlane.xlu1 %2215  ;;  %v7245_v60 = vmov 0.0  }
 0x46b   :  { %v6705_v38 = vpop.xlane.xlu0 %2224  ;;  %5236 = vpow2.f32 %v2359_v47 }
 0x46e   :  { %2482 = vadd.xlane.f32.xlu0 %v2481_v28 }
 0x46f   :  { %v6711_v28 = vpop.xlane.xlu0 %2227 }
 0x472   :  { %2467 = vadd.xlane.f32.xlu0 %v2466_v34  ;;  %v2219_v34 = vpop.xlane.xlu1 %2218 }
 0x473   :  { %v6719_v21 = vpop.xlane.xlu0 %2230  ;;  %v2281_v0 = vsub.f32 %v6468_v16, %v2219_v34  ;;  %v2278_v16 = vsub.f32 %v6452_v35, %v2210_v50  ;;  %v2284_v34 = vsub.f32 %v6484_v2, %v6711_v28 }
 0x475   :  { %v2369_v24 = vmul.f32 1.442695, %v2281_v0  ;;  %v2363_v47 = vmul.f32 1.442695, %v2278_v16 }
 0x476   :  { %v6721_v14 = vpop.xlane.xlu1 %2221 }
 0x477   :  { %v6724_v57 = vpop.xlane.xlu0 %2239 }
 0x47a   :  { %3932 = vrot.lane.b32.xlu1 %v6020_v45, %s5367_s10  ;;  %v2234_v62 = vpop.xlane.xlu1 %2233 }
 0x47b   :  { %v2286_v40 = vsub.f32 %v6488_v9, %v2234_v62  ;;  %v2237_v5 = vpop.xlane.xlu0 %2236  ;;  %v2270_v9 = vsub.f32 %v6414_v30, %v2186_v4  ;;  %v6733_v62 = vpop.eup %5236  ;;  %v2274_v30 = vsub.f32 %v6424_v51, %v6695_v26 }
 0x47c   :  { %v2287_v41 = vsub.f32 %v6500_v12, %v2237_v5 }
 0x47d   :  { %v2379_v36 = vmul.f32 1.442695, %v2286_v40  ;;  %v2347_v11 = vmul.f32 1.442695, %v2270_v9  ;;  %v2283_v40 = vsub.f32 %v6472_v54, %v6705_v38  ;;  %v2275_v54 = vsub.f32 %v6436_v7, %v6699_v42 }
 0x47e   :  { %4038 = vrot.lane.b32.xlu1 %v6092_v52, %s5383_s23 }
 0x47f   :  { %v2373_v26 = vmul.f32 1.442695, %v2283_v40  ;;  %v2357_v38 = vmul.f32 1.442695, %v2275_v54  ;;  %v7247_v40 = vld [vmem:[#allocation17_spill] sm:$0xff] }
 0x482   :  { %4036 = vrot.lane.b32.xlu1 %v6056_v49, %s5383_s23 }
 0x486   :  { %4140 = vrot.lane.b32.xlu1 %v6092_v52, %s5384_s24  ;;  %v2277_v52 = vsub.f32 %v6440_v19, %v2207_v53  ;;  %v2381_v19 = vmul.f32 1.442695, %v2287_v41 }
 0x488   :  { %3934 = vrot.lane.b32.xlu0 %v6056_v49, %s5367_s10  ;;  %v2361_v61 = vmul.f32 1.442695, %v2277_v52 }
 0x48a   :  { %4034 = vrot.lane.b32.xlu1 %v6020_v45, %s5383_s23 }
 0x497   :  { %v2387_v44 = vpop.xlane.xlu1 %2386 }
 0x498   :  { %5238 = vrcp.f32 %v2387_v44  ;;  %v2279_v44 = vsub.f32 %v6462_v33, %v2213_v56 }
 0x499   :  { %5240 = vpow2.f32 %v2369_v24 }
 0x49a   :  { %5242 = vpow2.f32 %v2361_v61  ;;  %v2490_v61 = vsel %vm2102_vm5, %v6733_v62, 0.0  ;;  %v2365_v5 = vmul.f32 1.442695, %v2279_v44 }
 0x49b   :  { %5244 = vpow2.f32 %v2379_v36 }
 0x49c   :  { %5246 = vpow2.f32 %v2345_v20  ;;  %v2285_v20 = vsub.f32 %v6494_v6, %v6719_v21  ;;  %v2280_v6 = vsub.f32 %v6456_v8, %v6707_v23  ;;  %v7246_v8 = vld [vmem:[#allocation21_spill] sm:$0xff] }
 0x49d   :  { %5248 = vpow2.f32 %v2381_v19  ;;  %v2375_v19 = vmul.f32 1.442695, %v2284_v34  ;;  %v2288_v23 = vsub.f32 %v7246_v8, %v6724_v57 }
 0x49e   :  { %5250 = vpow2.f32 %v2363_v47 }
 0x49f   :  { %5252 = vpow2.f32 %v2347_v11  ;;  %v2377_v11 = vmul.f32 1.442695, %v2285_v20  ;;  %v7250_v20 = vld [vmem:[#allocation11_spill] sm:$0xff] }
 0x4a5   :  { %v5239_v52 = vpop.eup %5238 }
 0x4a6   :  { %v2577_v12 = vmul.f32 %v5239_v52, %v6544_v48  ;;  %v6739_v35 = vpop.eup %5240 }
 0x4a7   :  { %2491 = vadd.xlane.f32.xlu0 %v2490_v61  ;;  %v6748_v33 = vpop.eup %5242  ;;  %v2505_v48 = vsel %vm2095_vm4, %v6739_v35, 0.0  ;;  %v2405_v36 = vpop.xlane.xlu0 %2404 }
 0x4a8   :  { %4907 = vmatmul.mubr.msk.f32.vlgmr.msra.gmra.mxu0 %vm2095_vm4, %v2577_v12  ;;  %v6753_v53 = vpop.eup %5244  ;;  %v2493_v24 = vsel %vm2095_vm4, %v6748_v33, 0.0 }
 0x4a9   :  { %4931 = vmatpush3.msk.msra.mxu0 %vm2646_vm3, %v6416_v3  ;;  %4909 = vmatprep.mubr.msk.f32.mxu0 %vm5382_vm1, %v7245_v60  ;;  %v2355_v3 = vmul.f32 1.442695, %v2274_v30  ;;  %v6762_v37 = vpop.eup %5246 }
 0x4aa   :  { %4932 = vmatprep.subr.mxu0 %v7245_v60  ;;  %v6767_v50 = vpop.eup %5248 }
 0x4ab   :  { %4933 = vmatpush3.msra.mxu0 %v6426_v25  ;;  %v2390_v51 = vpop.xlane.xlu1 %2389  ;;  %2506 = vadd.xlane.f32.xlu0 %v2505_v48  ;;  %v2520_v25 = vsel %vm2095_vm4, %v6753_v53, 0.0  ;;  %v6773_v4 = vpop.eup %5250  ;;  %v2523_v56 = vsel %vm2095_vm4, %v6767_v50, 0.0 }
 0x4ac   :  { %4934 = vmatprep.subr.mxu0 %v7245_v60  ;;  %5254 = vrcp.f32 %v2390_v51  ;;  %v2496_v7 = vsel %vm2095_vm4, %v6773_v4, 0.0  ;;  %v6781_v42 = vpop.eup %5252 }
 0x4ad   :  { %5256 = vpow2.f32 %v2365_v5  ;;  %4935 = vmatpush3.msra.mxu0 %v6432_v63  ;;  %v2469_v63 = vsel %vm2095_vm4, %v6762_v37, 0.0  ;;  %v2472_v9 = vsel %vm2102_vm5, %v6781_v42, 0.0  ;;  %v2367_v5 = vmul.f32 1.442695, %v2280_v6 }
 0x4ae   :  { %2494 = vadd.xlane.f32.xlu1 %v2493_v24  ;;  %4960 = vmatprep.subr.mxu0 %v7245_v60  ;;  %v2282_v24 = vsub.f32 %v7247_v40, %v6721_v14 }
 0x4af   :  { %v2393_v0 = vpop.xlane.xlu1 %2392  ;;  %2521 = vadd.xlane.f32.xlu0 %v2520_v25  ;;  %v2408_v47 = vpop.xlane.xlu0 %2407  ;;  %v2383_v25 = vmul.f32 1.442695, %v2288_v23 }
 0x4b0   :  { %5258 = vrcp.f32 %v2393_v0 }
 0x4b1   :  { %5260 = vpow2.f32 %v2355_v3 }
 0x4b2   :  { %2470 = vadd.xlane.f32.xlu1 %v2469_v63  ;;  %5262 = vpow2.f32 %v2373_v26  ;;  %v2371_v63 = vmul.f32 1.442695, %v2282_v24 }
 0x4b3   :  { %2524 = vadd.xlane.f32.xlu0 %v2523_v56  ;;  %v2411_v61 = vpop.xlane.xlu0 %2410 }
 0x4b6   :  { %2497 = vadd.xlane.f32.xlu1 %v2496_v7 }
 0x4b7   :  { %v2396_v41 = vpop.xlane.xlu1 %2395 }
 0x4b8   :  { %5264 = vrcp.f32 %v2396_v41 }
 0x4b9   :  { %v5255_v16 = vpop.eup %5254  ;;  %5266 = vpow2.f32 %v2357_v38  ;;  %v7248_v38 = vld [vmem:[#allocation10_spill] sm:$0xff] }
 0x4ba   :  { %v6787_v2 = vpop.eup %5256  ;;  %2473 = vadd.xlane.f32.xlu1 %v2472_v9  ;;  %v2578_v28 = vmul.f32 %v5255_v16, %v6558_v43  ;;  %5268 = vpow2.f32 %v2375_v19 }
 0x4bb   :  { %v6790_v52 = vpop.xlane.xlu1 %2422  ;;  %v2499_v21 = vsel %vm2102_vm5, %v6787_v2, 0.0  ;;  %5270 = vpow2.f32 %v2377_v11 }
 0x4bc   :  { %4910 = vmatmul.mubr.msk.f32.gmra.mxu0 %vm2095_vm4, %v2578_v28 }
 0x4bd   :  { %v5259_v44 = vpop.eup %5258  ;;  %4912 = vmatprep.mubr.msk.f32.mxu0 %vm5382_vm1, %v7245_v60 }
 0x4be   :  { %v6799_v12 = vpop.eup %5260  ;;  %2500 = vadd.xlane.f32.xlu1 %v2499_v21  ;;  %v2579_v43 = vmul.f32 %v5259_v44, %v6562_v10 }
 0x4bf   :  { %v2399_v30 = vpop.xlane.xlu1 %2398  ;;  %v2484_v48 = vsel %vm2095_vm4, %v6799_v12, 0.0  ;;  %v6809_v51 = vpop.eup %5262 }
 0x4c0   :  { %4913 = vmatmul.mubr.msk.f32.gmra.mxu0 %vm2095_vm4, %v2579_v43  ;;  %5272 = vrcp.f32 %v2399_v30  ;;  %v2511_v57 = vsel %vm2095_vm4, %v6809_v51, 0.0 }
 0x4c1   :  { %4936 = vmatprep.mubr.msk.f32.mxu0 %vm5382_vm1, %v7245_v60  ;;  %5274 = vpow2.f32 %v2367_v5 }
 0x4c2   :  { %2485 = vadd.xlane.f32.xlu1 %v2484_v48 }
 0x4c3   :  { %v2426_v10 = vpop.xlane.xlu0 %2425 }
 0x4c5   :  { %v5265_v3 = vpop.eup %5264 }
 0x4c6   :  { %v6815_v0 = vpop.eup %5266  ;;  %2512 = vadd.xlane.f32.xlu1 %v2511_v57  ;;  %v2580_v54 = vmul.f32 %v5265_v3, %v6577_v22  ;;  %v7249_v22 = vld [vmem:[#allocation9_spill] sm:$0xff] }
 0x4c7   :  { %v2402_v26 = vpop.xlane.xlu0 %2401  ;;  %v2487_v56 = vsel %vm2095_vm4, %v6815_v0, 0.0  ;;  %v6825_v14 = vpop.eup %5268 }
 0x4c8   :  { %5276 = vrcp.f32 %v2402_v26  ;;  %4892 = vmatmul.mubr.msk.f32.vlgmr.msra.gmra.mxu1 %vm2095_vm4, %v2580_v54  ;;  %v6832_v7 = vpop.eup %5270  ;;  %v2514_v41 = vsel %vm2095_vm4, %v6825_v14, 0.0  ;;  %v7252_v54 = vld [vmem:[#allocation3_spill] sm:$0xff] }
 0x4c9   :  { %5278 = vpow2.f32 %v2383_v25  ;;  %4916 = vmatpush3.msk.msra.mxu1 %vm2646_vm3, %v7248_v38  ;;  %4138 = vrot.lane.b32.xlu0 %v6056_v49, %s5384_s24  ;;  %v2517_v28 = vsel %vm2102_vm5, %v6832_v7, 0.0  ;;  %v7251_v25 = vld [vmem:[#allocation4_spill] sm:$0xff] }
 0x4ca   :  { %5280 = vrcp.f32 %v2405_v36  ;;  %2488 = vadd.xlane.f32.xlu1 %v2487_v56  ;;  %4917 = vmatprep.subr.mxu1 %v7245_v60  ;;  %v7253_v56 = vld [vmem:[#allocation2_spill] sm:$0xff] }
 0x4cb   :  { %4918 = vmatpush3.msra.mxu1 %v7249_v22  ;;  %v2429_v34 = vpop.xlane.xlu1 %2428  ;;  %4894 = vmatprep.mubr.msk.f32.mxu1 %vm5382_vm1, %v7245_v60  ;;  %5282 = vpow2.f32 %v2371_v63 }
 0x4cc   :  { %4919 = vmatprep.subr.mxu1 %v7245_v60  ;;  %5284 = vrcp.f32 %v2408_v47 }
 0x4cd   :  { %4920 = vmatpush3.msra.mxu1 %v7250_v20  ;;  %v5273_v36 = vpop.eup %5272 }
 0x4ce   :  { %2515 = vadd.xlane.f32.xlu1 %v2514_v41  ;;  %4945 = vmatprep.subr.mxu1 %v7245_v60  ;;  %v2581_v9 = vmul.f32 %v5273_v36, %v6589_v18  ;;  %v6842_v11 = vpop.eup %5274  ;;  %v7255_v41 = vld [vmem:[#allocation13_spill] sm:$0xff]  ;;  %v7256_v36 = vld [vmem:[#allocation14_spill] sm:$0xff] }
 0x4cf   :  { %v2414_v16 = vpop.xlane.xlu1 %2413  ;;  %v2441_v19 = vpop.xlane.xlu0 %2440  ;;  %v2502_v18 = vsel %vm2095_vm4, %v6842_v11, 0.0 }
 0x4d0   :  { %5286 = vrcp.f32 %v2414_v16  ;;  %4895 = vmatmul.mubr.msk.f32.gmra.mxu1 %vm2095_vm4, %v2581_v9 }
 0x4d1   :  { %5288 = vrcp.f32 %v2411_v61  ;;  %4897 = vmatprep.mubr.msk.f32.mxu1 %vm5382_vm1, %v7245_v60 }
 0x4d2   :  { %2518 = vadd.xlane.f32.xlu1 %v2517_v28  ;;  %v7257_v28 = vld [vmem:[#allocation15_spill] sm:$0xff] }
 0x4d3   :  { %v2417_v47 = vpop.xlane.xlu1 %2416  ;;  %v2444_v44 = vpop.xlane.xlu0 %2443 }
 0x4d4   :  { %5290 = vrcp.f32 %v2417_v47 }
 0x4d5   :  { %v5277_v6 = vpop.eup %5276  ;;  %5292 = vrcp.f32 %v6790_v52 }
 0x4d6   :  { %v6848_v21 = vpop.eup %5278  ;;  %2503 = vadd.xlane.f32.xlu1 %v2502_v18  ;;  %v2582_v43 = vmul.f32 %v5277_v6, %v6602_v27  ;;  %v7258_v6 = vld [vmem:[#allocation18_spill] sm:$0xff] }
 0x4d7   :  { %v5281_v30 = vpop.eup %5280  ;;  %v2420_v61 = vpop.xlane.xlu1 %2419  ;;  %v2526_v8 = vsel %vm2102_vm5, %v6848_v21, 0.0 }
 0x4d8   :  { %v2447_v5 = vpop.xlane.xlu0 %2446  ;;  %5294 = vrcp.f32 %v2420_v61  ;;  %4898 = vmatmul.mubr.msk.f32.gmra.mxu1 %vm2095_vm4, %v2582_v43  ;;  %v6857_v23 = vpop.eup %5282  ;;  %v2583_v48 = vmul.f32 %v5281_v30, %v6553_v59  ;;  %v7259_v30 = vld [vmem:[#allocation19_spill] sm:$0xff]  ;;  %v7260_v61 = vld [vmem:[#allocation16_spill] sm:$0xff] }
 0x4d9   :  { %4921 = vmatprep.mubr.msk.f32.mxu1 %vm5382_vm1, %v7245_v60  ;;  %5296 = vrcp.f32 %v2426_v10  ;;  %v5285_v52 = vpop.eup %5284  ;;  %v2508_v24 = vsel %vm2102_vm5, %v6857_v23, 0.0 }
 0x4da   :  { %2527 = vadd.xlane.f32.xlu1 %v2526_v8  ;;  %v2584_v10 = vmul.f32 %v5285_v52, %v6565_v39  ;;  %v7261_v52 = vld [vmem:[#allocation22_spill] sm:$0xff] }
 0x4db   :  { %v2432_v27 = vpop.xlane.xlu1 %2431 }
 0x4dc   :  { %v6860_v3 = vpop.xlane.xlu0 %2458  ;;  %5298 = vrcp.f32 %v2432_v27  ;;  %4922 = vmatmul.mubr.msk.f32.vlgmr.msra.gmra.mxu1 %vm2095_vm4, %v2583_v48 }
 0x4dd   :  { %v5287_v40 = vpop.eup %5286  ;;  %4946 = vmatpush3.msk.msra.mxu1 %vm2646_vm3, %v7251_v25  ;;  %4924 = vmatprep.mubr.msk.f32.mxu1 %vm5382_vm1, %v7245_v60  ;;  %5300 = vrcp.f32 %v2429_v34 }
 0x4de   :  { %v2586_v59 = vmul.f32 %v5287_v40, %v6611_v58  ;;  %2509 = vadd.xlane.f32.xlu1 %v2508_v24  ;;  %4947 = vmatprep.subr.mxu1 %v7245_v60  ;;  %v5289_v57 = vpop.eup %5288  ;;  %v7254_v58 = vld [vmem:[#allocation12_spill] sm:$0xff] }
 0x4df   :  { %4948 = vmatpush3.msra.mxu1 %v7252_v54  ;;  %v2585_v39 = vmul.f32 %v5289_v57, %v6572_v1 }
 0x4e0   :  { %v2435_v26 = vpop.xlane.xlu0 %2434  ;;  %4949 = vmatprep.subr.mxu1 %v7245_v60  ;;  %4925 = vmatmul.mubr.msk.f32.gmra.mxu1 %vm2095_vm4, %v2584_v10 }
 0x4e1   :  { %5302 = vrcp.f32 %v2435_v26  ;;  %v5291_v63 = vpop.eup %5290  ;;  %4937 = vmatmul.mubr.msk.f32.vlgmr.msra.gmra.mxu0 %vm2095_vm4, %v2586_v59  ;;  %4950 = vmatpush3.msra.mxu1 %v7253_v56  ;;  %v7263_v59 = vld [vmem:[#allocation31_spill] sm:$0xff]  ;;  %v7265_v26 = vld [vmem:[#allocation33_spill] sm:$0xff] }
 0x4e2   :  { %4961 = vmatpush3.msk.msra.mxu0 %vm2646_vm3, %v7254_v58  ;;  %4939 = vmatprep.mubr.msk.f32.mxu0 %vm5382_vm1, %v7245_v60  ;;  %v2587_v38 = vmul.f32 %v5291_v63, %v6616_v15  ;;  %v5293_v22 = vpop.eup %5292  ;;  %5304 = vrcp.f32 %v2441_v19  ;;  %v7266_v58 = vld [vmem:[#allocation28_spill] sm:$0xff] }
 0x4e3   :  { %4962 = vmatprep.subr.mxu0 %v7245_v60  ;;  %4927 = vmatprep.mubr.msk.f32.mxu1 %vm5382_vm1, %v7245_v60  ;;  %v2589_v1 = vmul.f32 %v5293_v22, %v6583_v32  ;;  %5306 = vrcp.f32 %v2444_v44 }
 0x4e4   :  { %v6886_v34 = vpop.xlane.xlu0 %2461  ;;  %4963 = vmatpush3.msra.mxu0 %v7255_v41  ;;  %4928 = vmatmul.mubr.msk.f32.gmra.mxu1 %vm2095_vm4, %v2585_v39  ;;  %v7269_v41 = vld [vmem:[#allocation34_spill] sm:$0xff] }
 0x4e5   :  { %v5295_v20 = vpop.eup %5294  ;;  %4964 = vmatprep.subr.mxu0 %v7245_v60  ;;  %4940 = vmatmul.mubr.msk.f32.gmra.mxu0 %vm2095_vm4, %v2587_v38  ;;  %v7268_v38 = vld [vmem:[#allocation24_spill] sm:$0xff] }
 0x4e6   :  { %v6893_v15 = vpop.xlane.xlu1 %2464  ;;  %4965 = vmatpush3.msra.mxu0 %v7256_v36  ;;  %4942 = vmatprep.mubr.msk.f32.mxu0 %vm5382_vm1, %v7245_v60  ;;  %v2588_v16 = vmul.f32 %v5295_v20, %v6630_v13  ;;  %v5297_v19 = vpop.eup %5296  ;;  %v7270_v36 = vld [vmem:[#allocation7_spill] sm:$0xff] }
 0x4e7   :  { %4951 = vmatprep.mubr.msk.f32.mxu1 %vm5382_vm1, %v7245_v60  ;;  %4975 = vmatprep.subr.mxu1 %v7245_v60  ;;  %v2590_v44 = vmul.f32 %v5297_v19, %v6595_v46  ;;  %v7272_v19 = vld [vmem:[#allocation6_spill] sm:$0xff] }
 0x4e8   :  { %v2438_v9 = vpop.xlane.xlu0 %2437  ;;  %4952 = vmatmul.mubr.msk.f32.vlgmr.msra.gmra.mxu1 %vm2095_vm4, %v2589_v1  ;;  %4990 = vmatprep.subr.mxu0 %v7245_v60 }
 0x4e9   :  { %5308 = vrcp.f32 %v2438_v9  ;;  %v5299_v32 = vpop.eup %5298  ;;  %4943 = vmatmul.mubr.msk.f32.gmra.mxu0 %vm2095_vm4, %v2588_v16  ;;  %4976 = vmatpush3.msk.msra.mxu1 %vm2646_vm3, %v7257_v28  ;;  %v7274_v28 = vld [vmem:[#allocation43_spill] sm:$0xff] }
 0x4ea   :  { %5310 = vrcp.f32 %v2447_v5  ;;  %v2592_v13 = vmul.f32 %v5299_v32, %v6635_v31  ;;  %v2450_v47 = vpop.xlane.xlu1 %2449  ;;  %4977 = vmatprep.subr.mxu1 %v7245_v60  ;;  %4966 = vmatprep.mubr.msk.f32.mxu0 %vm5382_vm1, %v7245_v60  ;;  %v5301_v43 = vpop.eup %5300  ;;  %v7273_v32 = vld [vmem:[#allocation5_spill] sm:$0xff] }
 0x4eb   :  { %5312 = vrcp.f32 %v2450_v47  ;;  %4978 = vmatpush3.msra.mxu1 %v7258_v6  ;;  %4954 = vmatprep.mubr.msk.f32.mxu1 %vm5382_vm1, %v7245_v60  ;;  %v2591_v8 = vmul.f32 %v5301_v43, %v6607_v17  ;;  %v7262_v17 = vld [vmem:[#allocation20_spill] sm:$0xff]  ;;  %v7275_v47 = vld [vmem:[#allocation35_spill] sm:$0xff] }
 0x4ec   :  { %v6915_v18 = vpop.xlane.xlu0 %2476  ;;  %4979 = vmatprep.subr.mxu1 %v7245_v60  ;;  %4955 = vmatmul.mubr.msk.f32.gmra.mxu1 %vm2095_vm4, %v2590_v44 }
 0x4ed   :  { %4967 = vmatmul.mubr.msk.f32.vlgmr.msra.gmra.mxu0 %vm2095_vm4, %v2592_v13  ;;  %4980 = vmatpush3.msra.mxu1 %v7259_v30  ;;  %v7277_v30 = vld [vmem:[#allocation45_spill] sm:$0xff] }
 0x4ee   :  { %v5303_v31 = vpop.eup %5302  ;;  %4991 = vmatpush3.msk.msra.mxu0 %vm2646_vm3, %v7260_v61  ;;  %4969 = vmatprep.mubr.msk.f32.mxu0 %vm5382_vm1, %v7245_v60 }
 0x4ef   :  { %v2593_v46 = vmul.f32 %v5303_v31, %v6649_v29  ;;  %4136 = vrot.lane.b32.xlu1 %v6020_v45, %s5384_s24  ;;  %4992 = vmatprep.subr.mxu0 %v7245_v60  ;;  %v5305_v48 = vpop.eup %5304  ;;  %v7276_v31 = vld [vmem:[#allocation32_spill] sm:$0xff] }
 0x4f0   :  { %v2453_v5 = vpop.xlane.xlu0 %2452  ;;  %4993 = vmatpush3.msra.mxu0 %v7261_v52  ;;  %4957 = vmatprep.mubr.msk.f32.mxu1 %vm5382_vm1, %v7245_v60  ;;  %v2595_v27 = vmul.f32 %v5305_v48, %v6614_v55  ;;  %v5307_v24 = vpop.eup %5306  ;;  %v7264_v55 = vld [vmem:[#allocation37_spill] sm:$0xff]  ;;  %v7280_v52 = vld [vmem:[#allocation27_spill] sm:$0xff] }
 0x4f1   :  { %5314 = vrcp.f32 %v2453_v5  ;;  %4994 = vmatprep.subr.mxu0 %v7245_v60  ;;  %4958 = vmatmul.mubr.msk.f32.gmra.mxu1 %vm2095_vm4, %v2591_v8  ;;  %v2596_v63 = vmul.f32 %v5307_v24, %v7265_v26  ;;  %v7279_v5 = vld [vmem:[#allocation36_spill] sm:$0xff] }
 0x4f2   :  { %v2456_v29 = vpop.xlane.xlu1 %2455  ;;  %4970 = vmatmul.mubr.msk.f32.gmra.mxu0 %vm2095_vm4, %v2593_v46  ;;  %4981 = vmatprep.mubr.msk.f32.mxu1 %vm5382_vm1, %v7245_v60  ;;  %v7278_v46 = vld [vmem:[#allocation25_spill] sm:$0xff] }
 0x4f3   :  { %5316 = vrcp.f32 %v2456_v29  ;;  %4995 = vmatpush3.msra.mxu0 %v7262_v17  ;;  %5005 = vmatprep.subr.mxu1 %v7245_v60  ;;  %v7281_v29 = vld [vmem:[#allocation26_spill] sm:$0xff] }
 0x4f4   :  { %v6941_v40 = vpop.xlane.xlu0 %2479  ;;  %4972 = vmatprep.mubr.msk.f32.mxu0 %vm5382_vm1, %v7245_v60  ;;  %5020 = vmatprep.subr.mxu0 %v7245_v60  ;;  %5318 = vrcp.f32 %v6860_v3  ;;  %v7267_v3 = vld [vmem:[#allocation40_spill] sm:$0xff]  ;;  %v7283_v17 = vld [vmem:[#allocation38_spill] sm:$0xff] }
 0x4f5   :  { %4982 = vmatmul.mubr.msk.f32.vlgmr.msra.gmra.mxu1 %vm2095_vm4, %v2595_v27  ;;  %5320 = vrcp.f32 %v6886_v34  ;;  %v7271_v34 = vld [vmem:[#allocation41_spill] sm:$0xff]  ;;  %v7282_v27 = vld [vmem:[#allocation30_spill] sm:$0xff] }
 0x4f6   :  { %v5309_v25 = vpop.eup %5308  ;;  %5006 = vmatpush3.msk.msra.mxu1 %vm2646_vm3, %v7263_v59  ;;  %4984 = vmatprep.mubr.msk.f32.mxu1 %vm5382_vm1, %v7245_v60  ;;  %v7022_v59 = vpop.permute.xlu1 %3932 }
 0x4f7   :  { %v2594_v10 = vmul.f32 %v5309_v25, %v7264_v55  ;;  %v5311_v57 = vpop.eup %5310  ;;  %5007 = vmatprep.subr.mxu1 %v7245_v60  ;;  %v7284_v25 = vld [vmem:[#allocation23_spill] sm:$0xff] }
 0x4f8   :  { %v6954_v54 = vpop.xlane.xlu0 %2482  ;;  %v5313_v56 = vpop.eup %5312  ;;  %5008 = vmatpush3.msra.mxu1 %v7266_v58  ;;  %v2597_v20 = vmul.f32 %v5311_v57, %v7269_v41 }
 0x4f9   :  { %4973 = vmatmul.mubr.msk.f32.gmra.mxu0 %vm2095_vm4, %v2594_v10  ;;  %5009 = vmatprep.subr.mxu1 %v7245_v60  ;;  %v2598_v39 = vmul.f32 %v5313_v56, %v7267_v3 }
 0x4fa   :  { %4985 = vmatmul.mubr.msk.f32.gmra.mxu1 %vm2095_vm4, %v2596_v63  ;;  %4996 = vmatprep.mubr.msk.f32.mxu0 %vm5382_vm1, %v7245_v60  ;;  %v7024_v55 = vpop.permute.xlu1 %4038 }
 0x4fb   :  { %5010 = vmatpush3.msra.mxu1 %v7268_v38  ;;  %4987 = vmatprep.mubr.msk.f32.mxu1 %vm5382_vm1, %v7245_v60 }
 0x4fc   :  { %v2468_v22 = vpop.xlane.xlu0 %2467  ;;  %5035 = vmatprep.subr.mxu1 %v7245_v60 }
 0x4fd   :  { %5322 = vrcp.f32 %v2468_v22  ;;  %4997 = vmatmul.mubr.msk.f32.vlgmr.msra.gmra.mxu0 %vm2095_vm4, %v2598_v39 }
 0x4fe   :  { %v5315_v1 = vpop.eup %5314  ;;  %4988 = vmatmul.mubr.msk.f32.gmra.mxu1 %vm2095_vm4, %v2597_v20  ;;  %5021 = vmatpush3.msk.msra.mxu0 %vm2646_vm3, %v7270_v36  ;;  %5324 = vrcp.f32 %v6893_v15  ;;  %v7026_v10 = vpop.permute.xlu1 %4036 }
 0x4ff   :  { %5022 = vmatprep.subr.mxu0 %v7245_v60  ;;  %4999 = vmatprep.mubr.msk.f32.mxu0 %vm5382_vm1, %v7245_v60  ;;  %v2599_v16 = vmul.f32 %v5315_v1, %v7271_v34 }
 0x500   :  { %5023 = vmatpush3.msra.mxu0 %v7272_v19  ;;  %5011 = vmatprep.mubr.msk.f32.mxu1 %vm5382_vm1, %v7245_v60  ;;  %v5317_v9 = vpop.eup %5316  ;;  %v3935_v20 = vpop.permute.xlu0 %3934 }
 0x501   :  { %5024 = vmatprep.subr.mxu0 %v7245_v60  ;;  %5000 = vmatmul.mubr.msk.f32.gmra.mxu0 %vm2095_vm4, %v2599_v16  ;;  %v2600_v13 = vmul.f32 %v5317_v9, %v7274_v28  ;;  %v5319_v15 = vpop.eup %5318  ;;  %v7286_v28 = vld [vmem:[#allocation8_spill] sm:$0xff] }
 0x502   :  { %5025 = vmatpush3.msra.mxu0 %v7273_v32  ;;  %5002 = vmatprep.mubr.msk.f32.mxu0 %vm5382_vm1, %v7245_v60  ;;  %v2601_v44 = vmul.f32 %v5319_v15, %v7275_v47  ;;  %v5321_v6 = vpop.eup %5320  ;;  %v7028_v57 = vpop.permute.xlu1 %4140 }
 0x503   :  { %5050 = vmatprep.subr.mxu0 %v7245_v60  ;;  %v2602_v8 = vmul.f32 %v5321_v6, %v7279_v5  ;;  %v7288_v6 = vld [vmem:[#allocation29_spill] sm:$0xff] }
 0x505   :  { %5003 = vmatmul.mubr.msk.f32.gmra.mxu0 %vm2095_vm4, %v2600_v13  ;;  %v7287_v13 = vld [vmem:[#allocation42_spill] sm:$0xff] }
 0x506   :  { %5026 = vmatprep.mubr.msk.f32.mxu0 %vm5382_vm1, %v7245_v60  ;;  %v7030_v26 = vpop.permute.xlu1 %4034 }
 0x509   :  { %5027 = vmatmul.mubr.msk.f32.vlgmr.msra.gmra.mxu0 %vm2095_vm4, %v2601_v44 }
 0x50a   :  { %v5323_v43 = vpop.eup %5322  ;;  %5051 = vmatpush3.msk.msra.mxu0 %vm2646_vm3, %v7276_v31  ;;  %5029 = vmatprep.mubr.msk.f32.mxu0 %vm5382_vm1, %v7245_v60 }
 0x50b   :  { %v2604_v61 = vmul.f32 %v5323_v43, %v7277_v30  ;;  %5052 = vmatprep.subr.mxu0 %v7245_v60  ;;  %v5325_v48 = vpop.eup %5324 }
 0x50c   :  { %5053 = vmatpush3.msra.mxu0 %v7278_v46  ;;  %v2603_v24 = vmul.f32 %v5325_v48, %v7283_v17 }
 0x50d   :  { %5054 = vmatprep.subr.mxu0 %v7245_v60  ;;  %5012 = vmatmul.mubr.msk.f32.vlgmr.msra.gmra.mxu1 %vm2095_vm4, %v2604_v61 }
 0x50e   :  { %5030 = vmatmul.mubr.msk.f32.gmra.mxu0 %vm2095_vm4, %v2602_v8  ;;  %5036 = vmatpush3.msk.msra.mxu1 %vm2646_vm3, %v7280_v52 }
 0x50f   :  { %5055 = vmatpush3.msra.mxu0 %v7281_v29  ;;  %5037 = vmatprep.subr.mxu1 %v7245_v60 }
 0x510   :  { %5038 = vmatpush3.msra.mxu1 %v7282_v27  ;;  %5032 = vmatprep.mubr.msk.f32.mxu0 %vm5382_vm1, %v7245_v60 }
 0x511   :  { %5039 = vmatprep.subr.mxu1 %v7245_v60  ;;  %5014 = vmatprep.mubr.msk.f32.mxu1 %vm5382_vm1, %v7245_v60 }
 0x512   :  { %5033 = vmatmul.mubr.msk.f32.gmra.mxu0 %vm2095_vm4, %v2603_v24  ;;  %5040 = vmatpush3.msra.mxu1 %v7284_v25 }
 0x513   :  { %5065 = vmatprep.subr.mxu1 %v7245_v60  ;;  %5056 = vmatprep.mubr.msk.f32.mxu0 %vm5382_vm1, %v7245_v60 }
 0x514   :  { %5080 = vmatprep.subr.mxu0 %v7245_v60 }
 0x530   :  { %v2492_v16 = vpop.xlane.xlu0 %2491 }
 0x534   :  { %v2507_v30 = vpop.xlane.xlu0 %2506 }
 0x537   :  { %v2495_v63 = vpop.xlane.xlu1 %2494 }
 0x538   :  { %v2522_v52 = vpop.xlane.xlu0 %2521 }
 0x53b   :  { %v2471_v56 = vpop.xlane.xlu1 %2470 }
 0x53c   :  { %5326 = vrcp.f32 %v2471_v56 }
 0x53f   :  { %v2498_v58 = vpop.xlane.xlu1 %2497 }
 0x543   :  { %v2474_v3 = vpop.xlane.xlu1 %2473 }
 0x544   :  { %5328 = vrcp.f32 %v2474_v3 }
 0x545   :  { %5330 = vrcp.f32 %v6915_v18 }
 0x546   :  { %5332 = vrcp.f32 %v6941_v40 }
 0x547   :  { %v2501_v39 = vpop.xlane.xlu1 %2500 }
 0x549   :  { %v5327_v38 = vpop.eup %5326 }
 0x54a   :  { %v2605_v22 = vmul.f32 %v5327_v38, %v6762_v37  ;;  %v7285_v37 = vld [vmem:[#allocation39_spill] sm:$0xff] }
 0x54b   :  { %v2486_v41 = vpop.xlane.xlu1 %2485 }
 0x54c   :  { %5334 = vrcp.f32 %v2486_v41  ;;  %5015 = vmatmul.mubr.msk.f32.gmra.mxu1 %vm2095_vm4, %v2605_v22 }
 0x54d   :  { %5017 = vmatprep.mubr.msk.f32.mxu1 %vm5382_vm1, %v7245_v60  ;;  %5336 = vrcp.f32 %v6954_v54 }
 0x54e   :  { %5338 = vrcp.f32 %v2495_v63 }
 0x54f   :  { %v2513_v1 = vpop.xlane.xlu1 %2512 }
 0x551   :  { %v5329_v36 = vpop.eup %5328 }
 0x552   :  { %v2606_v18 = vmul.f32 %v5329_v36, %v6781_v42  ;;  %v5331_v34 = vpop.eup %5330 }
 0x553   :  { %v2489_v40 = vpop.xlane.xlu1 %2488  ;;  %v2607_v19 = vmul.f32 %v5331_v34, %v7285_v37  ;;  %v5333_v9 = vpop.eup %5332 }
 0x554   :  { %5340 = vrcp.f32 %v2489_v40  ;;  %5018 = vmatmul.mubr.msk.f32.gmra.mxu1 %vm2095_vm4, %v2606_v18  ;;  %v2608_v15 = vmul.f32 %v5333_v9, %v7287_v13 }
 0x555   :  { %5041 = vmatprep.mubr.msk.f32.mxu1 %vm5382_vm1, %v7245_v60  ;;  %5342 = vrcp.f32 %v2492_v16 }
 0x556   :  { %5344 = vrcp.f32 %v2498_v58 }
 0x557   :  { %v2516_v54 = vpop.xlane.xlu1 %2515  ;;  %5346 = vrcp.f32 %v2501_v39 }
 0x558   :  { %5042 = vmatmul.mubr.msk.f32.vlgmr.msra.gmra.mxu1 %vm2095_vm4, %v2607_v19  ;;  %5348 = vrcp.f32 %v2513_v1 }
 0x559   :  { %v5335_v32 = vpop.eup %5334  ;;  %5066 = vmatpush3.msk.msra.mxu1 %vm2646_vm3, %v7286_v28  ;;  %5044 = vmatprep.mubr.msk.f32.mxu1 %vm5382_vm1, %v7245_v60 }
 0x55a   :  { %v2610_v42 = vmul.f32 %v5335_v32, %v6799_v12  ;;  %5067 = vmatprep.subr.mxu1 %v7245_v60  ;;  %v5337_v47 = vpop.eup %5336  ;;  %v7289_v12 = vld [vmem:[#allocation44_spill] sm:$0xff] }
 0x55b   :  { %5068 = vmatpush3.msra.mxu1 %v6056_v49  ;;  %v2519_v44 = vpop.xlane.xlu1 %2518  ;;  %v2609_v43 = vmul.f32 %v5337_v47, %v7289_v12  ;;  %v5339_v31 = vpop.eup %5338 }
 0x55c   :  { %5069 = vmatprep.subr.mxu1 %v7245_v60  ;;  %5045 = vmatmul.mubr.msk.f32.gmra.mxu1 %vm2095_vm4, %v2608_v15  ;;  %v2613_v61 = vmul.f32 %v5339_v31, %v6748_v33 }
 0x55d   :  { %5057 = vmatmul.mubr.msk.f32.vlgmr.msra.gmra.mxu0 %vm2095_vm4, %v2610_v42  ;;  %5070 = vmatpush3.msra.mxu1 %v6020_v45 }
 0x55e   :  { %5081 = vmatpush3.msk.msra.mxu0 %vm2646_vm3, %v7288_v6  ;;  %5047 = vmatprep.mubr.msk.f32.mxu1 %vm5382_vm1, %v7245_v60 }
 0x55f   :  { %5082 = vmatprep.subr.mxu0 %v7245_v60  ;;  %v2504_v49 = vpop.xlane.xlu1 %2503  ;;  %5059 = vmatprep.mubr.msk.f32.mxu0 %vm5382_vm1, %v7245_v60 }
 0x560   :  { %5083 = vmatpush3.msra.mxu0 %v3935_v20  ;;  %5350 = vrcp.f32 %v2504_v49  ;;  %5048 = vmatmul.mubr.msk.f32.gmra.mxu1 %vm2095_vm4, %v2609_v43 }
 0x561   :  { %v5341_v45 = vpop.eup %5340  ;;  %5084 = vmatprep.subr.mxu0 %v7245_v60  ;;  %5071 = vmatprep.mubr.msk.f32.mxu1 %vm5382_vm1, %v7245_v60  ;;  %5352 = vrcp.f32 %v2507_v30 }
 0x562   :  { %5085 = vmatpush3.msra.mxu0 %v7022_v59  ;;  %5095 = vmatprep.subr.mxu1 %v7245_v60  ;;  %v2611_v46 = vmul.f32 %v5341_v45, %v6815_v0  ;;  %v5343_v5 = vpop.eup %5342  ;;  %5354 = vrcp.f32 %v2516_v54 }
 0x563   :  { %v2528_v8 = vpop.xlane.xlu1 %2527  ;;  %5110 = vmatprep.subr.mxu0 %v7245_v60  ;;  %v5345_v48 = vpop.eup %5344  ;;  %v2612_v33 = vmul.f32 %v5343_v5, %v6733_v62  ;;  %5356 = vrcp.f32 %v2519_v44 }
 0x564   :  { %5060 = vmatmul.mubr.msk.f32.gmra.mxu0 %vm2095_vm4, %v2611_v46  ;;  %5072 = vmatmul.mubr.msk.f32.vlgmr.msra.gmra.mxu1 %vm2095_vm4, %v2613_v61  ;;  %v2614_v29 = vmul.f32 %v5345_v48, %v6773_v4  ;;  %v5347_v27 = vpop.eup %5346  ;;  %v2525_v4 = vpop.xlane.xlu0 %2524 }
 0x565   :  { %5096 = vmatpush3.msk.msra.mxu1 %vm2646_vm3, %v7024_v55  ;;  %5062 = vmatprep.mubr.msk.f32.mxu0 %vm5382_vm1, %v7245_v60  ;;  %v2615_v24 = vmul.f32 %v5347_v27, %v6787_v2  ;;  %v5349_v25 = vpop.eup %5348 }
 0x566   :  { %5097 = vmatprep.subr.mxu1 %v7245_v60  ;;  %5074 = vmatprep.mubr.msk.f32.mxu1 %vm5382_vm1, %v7245_v60 }
 0x567   :  { %5098 = vmatpush3.msra.mxu1 %v7026_v10  ;;  %v2510_v0 = vpop.xlane.xlu1 %2509 }
 0x568   :  { %5358 = vrcp.f32 %v2510_v0  ;;  %5099 = vmatprep.subr.mxu1 %v7245_v60  ;;  %5063 = vmatmul.mubr.msk.f32.gmra.mxu0 %vm2095_vm4, %v2612_v33  ;;  %v7088_v17 = vpop.f32.mrf.mxu0  ;;  %v4139_v2 = vpop.permute.xlu0 %4138 }
 0x569   :  { %5075 = vmatmul.mubr.msk.f32.gmra.mxu1 %vm2095_vm4, %v2614_v29  ;;  %5086 = vmatprep.mubr.msk.f32.mxu0 %vm5382_vm1, %v7245_v60  ;;  %5360 = vrcp.f32 %v2522_v52 }
 0x56a   :  { %5100 = vmatpush3.msra.mxu1 %v7030_v26  ;;  %5077 = vmatprep.mubr.msk.f32.mxu1 %vm5382_vm1, %v7245_v60  ;;  %v4908_v62 = vpop.f32.mrf.mxu0  ;;  %5362 = vrcp.f32 %v2525_v4  ;;  %v2619_v26 = vmul.f32 %v5349_v25, %v6809_v51 }
 0x56b   :  { %5364 = vrcp.f32 %v2528_v8  ;;  %v4137_v58 = vpop.permute.xlu1 %4136 }
 0x56d   :  { %v5351_v59 = vpop.eup %5350  ;;  %5078 = vmatmul.mubr.msk.f32.gmra.mxu1 %vm2095_vm4, %v2615_v24 }
 0x56e   :  { %v2616_v55 = vmul.f32 %v5351_v59, %v6842_v11  ;;  %5101 = vmatprep.mubr.msk.f32.mxu1 %vm5382_vm1, %v7245_v60  ;;  %v5353_v10 = vpop.eup %5352 }
 0x56f   :  { %v5355_v63 = vpop.eup %5354  ;;  %v2617_v11 = vmul.f32 %v5353_v10, %v6739_v35 }
 0x570   :  { %5087 = vmatmul.mubr.msk.f32.vlgmr.msra.gmra.mxu0 %vm2095_vm4, %v2616_v55  ;;  %v2620_v51 = vmul.f32 %v5355_v63, %v6825_v14  ;;  %v5357_v56 = vpop.eup %5356 }
 0x571   :  { %5102 = vmatmul.mubr.msk.f32.vlgmr.msra.gmra.mxu1 %vm2095_vm4, %v2619_v26  ;;  %5111 = vmatpush3.msk.msra.mxu0 %vm2646_vm3, %v7028_v57  ;;  %v2621_v14 = vmul.f32 %v5357_v56, %v6832_v7 }
 0x572   :  { %5112 = vmatprep.subr.mxu0 %v7245_v60  ;;  %5089 = vmatprep.mubr.msk.f32.mxu0 %vm5382_vm1, %v7245_v60 }
 0x573   :  { %5113 = vmatpush3.msra.mxu0 %v4139_v2  ;;  %5104 = vmatprep.mubr.msk.f32.mxu1 %vm5382_vm1, %v7245_v60  ;;  %v7140_v2 = vld [vmem:[%s7175_s3 + $0x1] ss:$0 sm:$0xff] }
 0x574   :  { %5114 = vmatprep.subr.mxu0 %v7245_v60  ;;  %5090 = vmatmul.mubr.msk.f32.gmra.mxu0 %vm2095_vm4, %v2617_v11 }
 0x575   :  { %v5359_v57 = vpop.eup %5358  ;;  %5105 = vmatmul.mubr.msk.f32.gmra.mxu1 %vm2095_vm4, %v2620_v51  ;;  %5115 = vmatpush3.msra.mxu0 %v4137_v58 }
 0x576   :  { %5092 = vmatprep.mubr.msk.f32.mxu0 %vm5382_vm1, %v7245_v60  ;;  %5107 = vmatprep.mubr.msk.f32.mxu1 %vm5382_vm1, %v7245_v60  ;;  %v2618_v35 = vmul.f32 %v5359_v57, %v6857_v23  ;;  %v5361_v3 = vpop.eup %5360 }
 0x577   :  { %v2622_v39 = vmul.f32 %v5361_v3, %v6753_v53  ;;  %v5363_v38 = vpop.eup %5362 }
 0x578   :  { %5093 = vmatmul.mubr.msk.f32.gmra.mxu0 %vm2095_vm4, %v2618_v35  ;;  %v2623_v23 = vmul.f32 %v5363_v38, %v6767_v50  ;;  %v5365_v7 = vpop.eup %5364 }
 0x579   :  { %5108 = vmatmul.mubr.msk.f32.gmra.mxu1 %vm2095_vm4, %v2621_v14  ;;  %5116 = vmatprep.mubr.msk.f32.mxu0 %vm5382_vm1, %v7245_v60  ;;  %v2624_v1 = vmul.f32 %v5365_v7, %v6848_v21 }
 0x57c   :  { %5117 = vmatmul.mubr.msk.f32.vlgmr.msra.gmra.mxu0 %vm2095_vm4, %v2622_v39  ;;  %v2811_v22 = vpop.f32.mrf.mxu0 }
 0x57d   :  { %5119 = vmatprep.mubr.msk.f32.mxu0 %vm5382_vm1, %v7245_v60 }
 0x57e   :  { %v4911_v41 = vpop.f32.mrf.mxu0 }
 0x580   :  { %5120 = vmatmul.mubr.msk.f32.gmra.mxu0 %vm2095_vm4, %v2623_v23  ;;  %v2816_v20 = vpop.f32.mrf.mxu0 }
 0x581   :  { %5122 = vmatprep.mubr.msk.f32.mxu0 %vm5382_vm1, %v7245_v60 }
 0x582   :  { %v4914_v53 = vpop.f32.mrf.mxu0 }
 0x584   :  { %5123 = vmatmul.mubr.msk.f32.gmra.mxu0 %vm2095_vm4, %v2624_v1 }
 0x588   :  { %v2715_v36 = vpop.f32.mrf.mxu1 }
 0x589   :  { %v2807_v49 = vadd.f32 %v7088_v17, %v2715_v36 }
 0x58a   :  { %v4893_v18 = vpop.f32.mrf.mxu1 }
 0x590   :  { %v2720_v34 = vpop.f32.mrf.mxu1 }
 0x591   :  { %v2812_v48 = vadd.f32 %v2811_v22, %v2720_v34 }
 0x592   :  { %v4896_v16 = vpop.f32.mrf.mxu1 }
 0x598   :  { %v2725_v40 = vpop.f32.mrf.mxu1 }
 0x599   :  { %v2817_v4 = vadd.f32 %v2816_v20, %v2725_v40 }
 0x59a   :  { %v4899_v37 = vpop.f32.mrf.mxu1 }
 0x59c   :  { %v2905_v50 = vpop.f32.mrf.mxu1 }
 0x59d   :  { %v2919_v46 = vadd.f32 %v2905_v50, %v2807_v49 }
 0x59e   :  { %v4923_v19 = vpop.f32.mrf.mxu1 }
 0x5a0   :  { %v2910_v9 = vpop.f32.mrf.mxu1 }
 0x5a1   :  { %v3007_v54 = vpop.f32.mrf.mxu0  ;;  %v2920_v0 = vadd.f32 %v2910_v9, %v2812_v48 }
 0x5a2   :  { %v4926_v32 = vpop.f32.mrf.mxu1  ;;  %v3021_v52 = vadd.f32 %v3007_v54, %v2919_v46 }
 0x5a3   :  { %v4938_v28 = vpop.f32.mrf.mxu0 }
 0x5a4   :  { %v2915_v42 = vpop.f32.mrf.mxu1 }
 0x5a5   :  { %v3012_v13 = vpop.f32.mrf.mxu0  ;;  %v2921_v10 = vadd.f32 %v2915_v42, %v2817_v4 }
 0x5a6   :  { %v4929_v60 = vpop.f32.mrf.mxu1  ;;  %v3022_v24 = vadd.f32 %v3012_v13, %v2920_v0 }
 0x5a7   :  { %v4941_v15 = vpop.f32.mrf.mxu0 }
 0x5a8   :  { %v3102_v21 = vpop.f32.mrf.mxu1 }
 0x5a9   :  { %v3017_v47 = vpop.f32.mrf.mxu0  ;;  %v3116_v29 = vadd.f32 %v3102_v21, %v3021_v52 }
 0x5aa   :  { %v4953_v44 = vpop.f32.mrf.mxu1  ;;  %v3023_v51 = vadd.f32 %v3017_v47, %v2921_v10 }
 0x5ab   :  { %v4944_v6 = vpop.f32.mrf.mxu0 }
 0x5ac   :  { %v3107_v12 = vpop.f32.mrf.mxu1 }
 0x5ad   :  { %v3206_v43 = vpop.f32.mrf.mxu0  ;;  %v3117_v26 = vadd.f32 %v3107_v12, %v3022_v24 }
 0x5ae   :  { %v4956_v31 = vpop.f32.mrf.mxu1  ;;  %v3220_v25 = vadd.f32 %v3206_v43, %v3116_v29 }
 0x5af   :  { %v4968_v30 = vpop.f32.mrf.mxu0 }
 0x5b1   :  { %v3112_v45 = vpop.f32.mrf.mxu1 }
 0x5b2   :  { %v3211_v61 = vpop.f32.mrf.mxu0  ;;  %v3118_v3 = vadd.f32 %v3112_v45, %v3023_v51 }
 0x5b3   :  { %v4959_v5 = vpop.f32.mrf.mxu1  ;;  %v3221_v56 = vadd.f32 %v3211_v61, %v3117_v26 }
 0x5b4   :  { %v4971_v8 = vpop.f32.mrf.mxu0 }
 0x5b5   :  { %v3308_v33 = vpop.f32.mrf.mxu1 }
 0x5b6   :  { %v3322_v17 = vadd.f32 %v3308_v33, %v3220_v25 }
 0x5b7   :  { %v4983_v27 = vpop.f32.mrf.mxu1 }
 0x5b9   :  { %v3216_v62 = vpop.f32.mrf.mxu0 }
 0x5ba   :  { %v3313_v59 = vpop.f32.mrf.mxu1  ;;  %v3222_v23 = vadd.f32 %v3216_v62, %v3118_v3 }
 0x5bb   :  { %v4974_v55 = vpop.f32.mrf.mxu0  ;;  %v3323_v14 = vadd.f32 %v3313_v59, %v3221_v56 }
 0x5bc   :  { %v4986_v63 = vpop.f32.mrf.mxu1 }
 0x5bd   :  { %v3410_v11 = vpop.f32.mrf.mxu0 }
 0x5be   :  { %v3318_v58 = vpop.f32.mrf.mxu1  ;;  %v3424_v57 = vadd.f32 %v3410_v11, %v3322_v17 }
 0x5bf   :  { %v4998_v35 = vpop.f32.mrf.mxu0  ;;  %v3324_v20 = vadd.f32 %v3318_v58, %v3222_v23 }
 0x5c0   :  { %v3431_v39 = vadd.f32 %v7140_v2, %v3424_v57  ;;  %v4989_v38 = vpop.f32.mrf.mxu1 }
 0x5c1   :  { %v3415_v22 = vpop.f32.mrf.mxu0 }
 0x5c2   :  { %3434 = vst.msk [vmem:[%s7176_s4] sm:$0xff] %vm29_vm0, %v3431_v39  ;;  %v3425_v41 = vadd.f32 %v3415_v22, %v3323_v14 }
 0x5c3   :  { %v5001_v7 = vpop.f32.mrf.mxu0 }
 0x5c4   :  { %v3432_v1 = vadd.f32 %v7140_v2, %v3425_v41 }
 0x5c5   :  { %v3420_v53 = vpop.f32.mrf.mxu0 }
 0x5c6   :  { %3435 = vst.msk [vmem:[%s7176_s4 + $0x8] sm:$0xff] %vm29_vm0, %v3432_v1  ;;  %v3426_v36 = vadd.f32 %v3420_v53, %v3324_v20 }
 0x5c7   :  { %v5004_v18 = vpop.f32.mrf.mxu0 }
 0x5c8   :  { %v3433_v34 = vadd.f32 %v7140_v2, %v3426_v36 }
 0x5c9   :  { %v3617_v16 = vpop.f32.mrf.mxu0 }
 0x5ca   :  { %3437 = vst.msk [vmem:[%s7176_s4 + $0x10] sm:$0x1] %vm3436_vm6, %v3433_v34 }
 0x5cb   :  { %v5028_v40 = vpop.f32.mrf.mxu0 }
 0x5cd   :  { %v3526_v37 = vpop.f32.mrf.mxu1 }
 0x5ce   :  { %v3618_v50 = vadd.f32 %v3617_v16, %v3526_v37  ;;  %v3622_v19 = vpop.f32.mrf.mxu0 }
 0x5cf   :  { %v5013_v9 = vpop.f32.mrf.mxu1 }
 0x5d0   :  { %v5031_v54 = vpop.f32.mrf.mxu0 }
 0x5d2   :  { %v3627_v32 = vpop.f32.mrf.mxu0 }
 0x5d4   :  { %v5034_v28 = vpop.f32.mrf.mxu0 }
 0x60c   :  { %v3531_v42 = vpop.f32.mrf.mxu1 }
 0x60d   :  { %v3623_v24 = vadd.f32 %v3622_v19, %v3531_v42 }
 0x60e   :  { %v5016_v13 = vpop.f32.mrf.mxu1 }
 0x614   :  { %v3536_v60 = vpop.f32.mrf.mxu1 }
 0x615   :  { %v3628_v11 = vadd.f32 %v3627_v32, %v3536_v60 }
 0x616   :  { %v5019_v15 = vpop.f32.mrf.mxu1 }
 0x618   :  { %v3716_v21 = vpop.f32.mrf.mxu1 }
 0x619   :  { %v3730_v27 = vadd.f32 %v3716_v21, %v3618_v50 }
 0x61a   :  { %v5043_v47 = vpop.f32.mrf.mxu1 }
 0x61c   :  { %v3721_v44 = vpop.f32.mrf.mxu1 }
 0x61d   :  { %v3818_v6 = vpop.f32.mrf.mxu0  ;;  %v3731_v10 = vadd.f32 %v3721_v44, %v3623_v24 }
 0x61e   :  { %v5046_v12 = vpop.f32.mrf.mxu1  ;;  %v3832_v25 = vadd.f32 %v3818_v6, %v3730_v27 }
 0x61f   :  { %v5058_v43 = vpop.f32.mrf.mxu0 }
 0x620   :  { %v3726_v31 = vpop.f32.mrf.mxu1 }
 0x621   :  { %v3732_v35 = vadd.f32 %v3726_v31, %v3628_v11 }
 0x622   :  { %v5049_v30 = vpop.f32.mrf.mxu1 }
 0x624   :  { %v3823_v49 = vpop.f32.mrf.mxu0  ;;  %v3913_v45 = vpop.f32.mrf.mxu1 }
 0x625   :  { %v3927_v26 = vadd.f32 %v3913_v45, %v3832_v25  ;;  %v3833_v51 = vadd.f32 %v3823_v49, %v3731_v10 }
 0x626   :  { %v5061_v61 = vpop.f32.mrf.mxu0  ;;  %v5073_v46 = vpop.f32.mrf.mxu1 }
 0x628   :  { %v3828_v5 = vpop.f32.mrf.mxu0 }
 0x629   :  { %v3918_v8 = vpop.f32.mrf.mxu1  ;;  %v3834_v38 = vadd.f32 %v3828_v5, %v3732_v35 }
 0x62a   :  { %v5064_v48 = vpop.f32.mrf.mxu0  ;;  %v3928_v3 = vadd.f32 %v3918_v8, %v3833_v51 }
 0x62b   :  { %v5076_v52 = vpop.f32.mrf.mxu1 }
 0x62d   :  { %v3923_v33 = vpop.f32.mrf.mxu1 }
 0x62e   :  { %v3929_v20 = vadd.f32 %v3923_v33, %v3834_v38 }
 0x62f   :  { %v5079_v0 = vpop.f32.mrf.mxu1 }
 0x630   :  { %v4017_v29 = vpop.f32.mrf.mxu0 }
 0x631   :  { %v4119_v62 = vpop.f32.mrf.mxu1  ;;  %v4031_v56 = vadd.f32 %v4017_v29, %v3927_v26 }
 0x632   :  { %v5088_v4 = vpop.f32.mrf.mxu0 }
 0x633   :  { %v5103_v59 = vpop.f32.mrf.mxu1  ;;  %v4133_v22 = vadd.f32 %v4119_v62, %v4031_v56 }
 0x634   :  { %v4022_v55 = vpop.f32.mrf.mxu0 }
 0x635   :  { %v4124_v17 = vpop.f32.mrf.mxu1  ;;  %v4032_v23 = vadd.f32 %v4022_v55, %v3928_v3 }
 0x636   :  { %v5091_v63 = vpop.f32.mrf.mxu0 }
 0x637   :  { %v5106_v58 = vpop.f32.mrf.mxu1  ;;  %v4134_v36 = vadd.f32 %v4124_v17, %v4032_v23 }
 0x638   :  { %v4027_v57 = vpop.f32.mrf.mxu0 }
 0x639   :  { %v4129_v14 = vpop.f32.mrf.mxu1  ;;  %v4033_v18 = vadd.f32 %v4027_v57, %v3929_v20 }
 0x63a   :  { %v5094_v39 = vpop.f32.mrf.mxu0 }
 0x63b   :  { %v5109_v41 = vpop.f32.mrf.mxu1  ;;  %v4135_v50 = vadd.f32 %v4129_v14, %v4033_v18 }
 0x63c   :  { %v4221_v7 = vpop.f32.mrf.mxu0 }
 0x63d   :  { %v4235_v1 = vadd.f32 %v4221_v7, %v4133_v22 }
 0x63e   :  { %v5118_v53 = vpop.f32.mrf.mxu0 }
 0x63f   :  { %v4238_v34 = vadd.f32 %v7140_v2, %v4235_v1 }
 0x640   :  { %v4226_v16 = vpop.f32.mrf.mxu0 }
 0x641   :  { %4423 = vst.msk [vmem:[%s7176_s4 + $0x18] sm:$0xff] %vm29_vm0, %v4238_v34  ;;  %v4236_v40 = vadd.f32 %v4226_v16, %v4134_v36 }
 0x642   :  { %v5121_v37 = vpop.f32.mrf.mxu0 }
 0x643   :  { %v4239_v19 = vadd.f32 %v7140_v2, %v4236_v40 }
 0x644   :  { %v4231_v9 = vpop.f32.mrf.mxu0 }
 0x645   :  { %4424 = vst.msk [vmem:[%s7176_s4 + $0x20] sm:$0xff] %vm29_vm0, %v4239_v19  ;;  %v4237_v54 = vadd.f32 %v4231_v9, %v4135_v50 }
 0x646   :  { %v5124_v32 = vpop.f32.mrf.mxu0 }
 0x647   :  { %v4240_v28 = vadd.f32 %v7140_v2, %v4237_v54 }
 0x649   :  { %4425 = vst.msk [vmem:[%s7176_s4 + $0x28] sm:$0x1] %vm3436_vm6, %v4240_v28 }

</bundles_post_ra>
